<compile_context>
chip_gen: v7x
topology: tpu7x:2x2x1
jax: 0.10.0
libtpu: 0.0.40
codegen_flags: <defaults>
</compile_context>

<pallas_src>
import functools

import jax
import jax.numpy as jnp
from jax.experimental import pallas as pl
from jax.experimental.pallas import tpu as pltpu

F32 = jnp.float32
BF16 = jnp.bfloat16

_K = (7, 5, 3)      # conv kernel sizes (fixed by the module)
_PAD = (2, 2, 2)    # conv paddings     (fixed by the module)


# ----------------------------------------------------------------------------
# Geometry helpers
# ----------------------------------------------------------------------------
def _lengths(L0):
    L1 = L0 + 2 * _PAD[0] - _K[0] + 1
    L2 = L1 + 2 * _PAD[1] - _K[1] + 1
    L3 = L2 + 2 * _PAD[2] - _K[2] + 1
    return L1, L2, L3


def _geometry(L0, tile_b):
    """Flat-row geometry: every layer's activations live in a (tile_b*S, C)
    slab; sample b's layer-j data occupies rows [b*S + A[j], b*S + A[j] + L[j])."""
    L1, L2, L3 = _lengths(L0)
    A1 = _PAD[0] + _PAD[1] + _PAD[2]
    A2 = A1 - _PAD[0]
    A3 = A2 - _PAD[1]
    A4 = A3 - _PAD[2]
    need = max(A1 + L0 + _PAD[0], A2 + L1 + _PAD[1], A3 + L2 + _PAD[2], A4 + L3)
    S = -(-need // 8) * 8          # per-sample row stride, sublane aligned
    M = tile_b * S                 # rows computed by every conv matmul
    R = M + 8                      # scratch rows (covers reads at r + K - 1)
    return (L1, L2, L3), (A1, A2, A3, A4), S, M, R


# ----------------------------------------------------------------------------
# Fused kernel: 3 x (Conv1d + folded BN + Sigmoid) + AvgPool + Linear + Linear
# ----------------------------------------------------------------------------
def _make_kernel(tile_b, L0):
    (L1, L2, L3), (A1, A2, A3, A4), S, M, R = _geometry(L0, tile_b)
    K1, K2, K3 = _K

    def row_mask(a_off, length):
        # (M, 1) f32: 1.0 on rows holding valid per-sample data, else 0.0.
        r = jax.lax.broadcasted_iota(jnp.int32, (M, 1), 0)
        m = None
        for b in range(tile_b):
            lo = b * S + a_off
            mb = jnp.logical_and(r >= lo, r < lo + length)
            m = mb if m is None else jnp.logical_or(m, mb)
        return m.astype(F32)

    def kernel(x_ref, w1_ref, w2_ref, w3_ref, wl1_ref, wl2_ref, sm_ref,
               o_ref, buf0, buf1, buf2, acc):
        # ---- small params, all packed in one (8, 256) slab -----------------
        s1 = sm_ref[0:1, 0:128]
        s3 = sm_ref[0:1, 128:256]
        t1 = sm_ref[1:2, 0:128]
        t3 = sm_ref[1:2, 128:256]
        s2 = sm_ref[2:3, :]
        t2 = sm_ref[3:4, :]
        bl1 = sm_ref[4:5, 0:128]
        bl2 = sm_ref[4:5, 128:256]

        # ---- stage input tile into the flat zero-padded slab ---------------
        buf0[...] = jnp.zeros_like(buf0)
        for b in range(tile_b):
            buf0[pl.ds(b * S + A1, L0), :] = x_ref[b]
        # Un-written tail rows only feed masked "gap" rows, but must be finite
        # (0 * inf would be NaN), so zero them every step (cheap).
        buf1[pl.ds(M, 8), :] = jnp.zeros((8, buf1.shape[1]), buf1.dtype)
        buf2[pl.ds(M, 8), :] = jnp.zeros((8, buf2.shape[1]), buf2.dtype)

        # ---- conv1 (K=7, C_in small): one deep matmul on im2col lanes ------
        cols = jnp.concatenate([buf0[pl.ds(k, M), :] for k in range(K1)], axis=1)
        y = jnp.dot(cols.astype(BF16), w1_ref[...], preferred_element_type=F32)
        y = y * s1 + t1                                  # folded BN (+conv bias)
        a = jax.nn.sigmoid(y) * row_mask(A2, L1)
        buf1[pl.ds(0, M), :] = a.astype(BF16)

        # ---- conv2 (K=5, 128->256): K accumulating matmuls off shifted refs
        acc[...] = jnp.dot(buf1[pl.ds(0, M), :], w2_ref[pl.ds(0, 128), :],
                           preferred_element_type=F32)
        for k in range(1, K2):
            acc[...] += jnp.dot(buf1[pl.ds(k, M), :],
                                w2_ref[pl.ds(k * 128, 128), :],
                                preferred_element_type=F32)
        y = acc[...] * s2 + t2
        a = jax.nn.sigmoid(y) * row_mask(A3, L2)
        buf2[pl.ds(0, M), :] = a.astype(BF16)

        # ---- conv3 (K=3, 256->128) -----------------------------------------
        acc[:, 0:128] = jnp.dot(buf2[pl.ds(0, M), :], w3_ref[pl.ds(0, 256), :],
                                preferred_element_type=F32)
        for k in range(1, K3):
            acc[:, 0:128] += jnp.dot(buf2[pl.ds(k, M), :],
                                     w3_ref[pl.ds(k * 256, 256), :],
                                     preferred_element_type=F32)
        y3 = acc[:, 0:128] * s3 + t3
        a3 = jax.nn.sigmoid(y3)                          # (M, 128) f32

        # ---- AdaptiveAvgPool1d(1) as a 0/1 selection matmul (1/L3 is folded
        #      into wl1); selection matrix generated in-kernel from iota ------
        r_idx = jax.lax.broadcasted_iota(jnp.int32, (tile_b, M), 1)
        b_idx = jax.lax.broadcasted_iota(jnp.int32, (tile_b, M), 0)
        lo = b_idx * S + A4
        pool = jnp.logical_and(r_idx >= lo, r_idx < lo + L3).astype(BF16)
        pooled = jnp.dot(pool, a3.astype(BF16), preferred_element_type=F32)

        # ---- linear1 (+ folded 1/L3) / dropout / linear2 (128-lane padded) --
        h = jnp.dot(pooled.astype(BF16), wl1_ref[...],
                    preferred_element_type=F32) + bl1
        # TODO(synk): nn.Dropout(p=0.5) constructed inside forward() is
        # stochastic in torch training mode; implemented as eval-mode identity.
        o = jnp.dot(h.astype(BF16), wl2_ref[...],
                    preferred_element_type=F32) + bl2
        o_ref[...] = o

    return kernel, (S, M, R)


# ----------------------------------------------------------------------------
# Parameter prep (done once): BN folding, re-layout, bf16 cast, packing
# ----------------------------------------------------------------------------
def _fold_conv_bn(p, cv, bn, eps=1e-5):
    w, b = p[f"{cv}_w"], p[f"{cv}_b"]
    g, beta = p[f"{bn}_g"], p[f"{bn}_b"]
    m, v = p[f"{bn}_m"], p[f"{bn}_v"]
    C_out, C_in, K = w.shape
    scale = g / jnp.sqrt(v + eps)
    shift = beta - m * scale + scale * b
    # w_mat[k*C_in + c, o] = w[o, c, k]  (matches the shifted-row read order)
    w_mat = jnp.transpose(w, (2, 1, 0)).reshape(K * C_in, C_out)
    return w_mat.astype(F32), scale.astype(F32), shift.astype(F32)


def prepare_params(p, seq_len, eps=1e-5):
    _, _, L3 = _lengths(seq_len)
    num_classes = p["lin2_w"].shape[0]
    assert num_classes <= 128

    w1, s1, t1 = _fold_conv_bn(p, "conv1", "bn1", eps)
    w2, s2, t2 = _fold_conv_bn(p, "conv2", "bn2", eps)
    w3, s3, t3 = _fold_conv_bn(p, "conv3", "bn3", eps)

    wl1 = p["lin1_w"].T / float(L3)                      # fold avg-pool 1/L3
    wl2 = jnp.zeros((128, 128), F32).at[:, :num_classes].set(p["lin2_w"].T)
    bl2 = jnp.zeros((128,), F32).at[:num_classes].set(p["lin2_b"])

    # All tiny (1, C) params packed into a single (8, 256) f32 slab (one DMA).
    smalls = jnp.zeros((8, 256), F32)
    smalls = smalls.at[0, 0:128].set(s1).at[0, 128:256].set(s3)
    smalls = smalls.at[1, 0:128].set(t1).at[1, 128:256].set(t3)
    smalls = smalls.at[2, :].set(s2).at[3, :].set(t2)
    smalls = smalls.at[4, 0:128].set(p["lin1_b"]).at[4, 128:256].set(bl2)

    return {
        "w1": w1.astype(BF16), "w2": w2.astype(BF16), "w3": w3.astype(BF16),
        "wl1": wl1.astype(BF16), "wl2": wl2.astype(BF16),
        "smalls": smalls,
        "seq_len": int(seq_len), "num_classes": int(num_classes),
    }


# ----------------------------------------------------------------------------
# Wrapper
# ----------------------------------------------------------------------------
def forward(pp, x, tile_b=8):
    B, C0, L0 = x.shape
    assert L0 == pp["seq_len"], "prepare_params() was built for a different L"
    num_classes = pp["num_classes"]

    kernel, (S, M, R) = _make_kernel(tile_b, L0)

    x_t = jnp.transpose(x, (0, 2, 1)).astype(F32)        # (B, L, C) channel-last
    Bp = -(-B // tile_b) * tile_b
    if Bp != B:
        x_t = jnp.pad(x_t, ((0, Bp - B), (0, 0), (0, 0)))

    out = pl.pallas_call(
        kernel,
        out_shape=jax.ShapeDtypeStruct((Bp, 128), F32),
        grid_spec=pltpu.PrefetchScalarGridSpec(
            num_scalar_prefetch=0,
            grid=(Bp // tile_b,),
            in_specs=[
                pl.BlockSpec((tile_b, L0, C0), lambda i: (i, 0, 0)),   # x tile
                # weights pinned in VMEM across all grid steps (DMA'd once):
                pl.BlockSpec(pp["w1"].shape, lambda i: (0, 0)),
                pl.BlockSpec(pp["w2"].shape, lambda i: (0, 0)),
                pl.BlockSpec(pp["w3"].shape, lambda i: (0, 0)),
                pl.BlockSpec(pp["wl1"].shape, lambda i: (0, 0)),
                pl.BlockSpec(pp["wl2"].shape, lambda i: (0, 0)),
                pl.BlockSpec(pp["smalls"].shape, lambda i: (0, 0)),
            ],
            out_specs=pl.BlockSpec((tile_b, 128), lambda i: (i, 0)),
            scratch_shapes=[
                pltpu.VMEM((R, C0), F32),      # buf0: padded input slab
                pltpu.VMEM((R, 128), BF16),    # buf1: conv1 activations
                pltpu.VMEM((R, 256), BF16),    # buf2: conv2 activations
                pltpu.VMEM((M, 256), F32),     # acc : f32 conv accumulator
            ],
        ),
        compiler_params=pltpu.CompilerParams(
            dimension_semantics=("parallel",)),   # shards across v7x's 2 TCs
    )(x_t, pp["w1"], pp["w2"], pp["w3"], pp["wl1"], pp["wl2"], pp["smalls"])

    return out[:B, :num_classes]


# ----------------------------------------------------------------------------
# References
# ----------------------------------------------------------------------------
def matched_reference(p, x, eps=1e-5):
    """Pure-JAX reference that mirrors the kernel's numerics exactly
    (bf16 MXU inputs, f32 accumulation, folded BN, bf16-stored activations,
    pool-sum with 1/L3 folded into linear1) -> comparable at tight tolerance."""
    num_classes = p["lin2_w"].shape[0]
    a = jnp.transpose(x, (0, 2, 1)).astype(F32)          # (B, L, C_in)

    def conv_block(a, cv, bn, K, pad):
        w_mat, scale, shift = _fold_conv_bn(p, cv, bn, eps)
        _, L_, _ = a.shape
        Lout = L_ + 2 * pad - K + 1
        ap = jnp.pad(a, ((0, 0), (pad, pad), (0, 0)))
        cols = jnp.concatenate([ap[:, k:k + Lout, :] for k in range(K)], axis=-1)
        y = jnp.einsum("blm,mn->bln", cols.astype(BF16), w_mat.astype(BF16),
                       preferred_element_type=F32)
        y = y * scale[None, None, :] + shift[None, None, :]
        return jax.nn.sigmoid(y)

    a = conv_block(a, "conv1", "bn1", 7, 2)
    a = conv_block(a.astype(BF16).astype(F32), "conv2", "bn2", 5, 2)
    a = conv_block(a.astype(BF16).astype(F32), "conv3", "bn3", 3, 2)
    L3 = a.shape[1]
    pooled = jnp.sum(a.astype(BF16).astype(F32), axis=1)
    wl1 = (p["lin1_w"].T / float(L3)).astype(BF16)
    h = jnp.dot(pooled.astype(BF16), wl1, preferred_element_type=F32) + p["lin1_b"]
    o = jnp.dot(h.astype(BF16), p["lin2_w"].T.astype(BF16),
                preferred_element_type=F32) + p["lin2_b"]
    return o[:, :num_classes]


def reference_forward(p, x, eps=1e-5):
    """All-f32 reference, numerically equivalent to the PyTorch module (eval)."""
    def conv1d(h, w, b, pad):
        y = jax.lax.conv_general_dilated(h, w, (1,), [(pad, pad)],
                                         dimension_numbers=("NCH", "OIH", "NCH"))
        return y + b[None, :, None]

    def bn(h, g, b, m, v):
        return (h - m[None, :, None]) / jnp.sqrt(v[None, :, None] + eps) \
            * g[None, :, None] + b[None, :, None]

    h = jax.nn.sigmoid(bn(conv1d(x, p["conv1_w"], p["conv1_b"], 2),
                          p["bn1_g"], p["bn1_b"], p["bn1_m"], p["bn1_v"]))
    h = jax.nn.sigmoid(bn(conv1d(h, p["conv2_w"], p["conv2_b"], 2),
                          p["bn2_g"], p["bn2_b"], p["bn2_m"], p["bn2_v"]))
    h = jax.nn.sigmoid(bn(conv1d(h, p["conv3_w"], p["conv3_b"], 2),
                          p["bn3_g"], p["bn3_b"], p["bn3_m"], p["bn3_v"]))
    avg = jnp.mean(h, axis=2)
    ful1 = avg @ p["lin1_w"].T + p["lin1_b"]
    return ful1 @ p["lin2_w"].T + p["lin2_b"]


def init_params(key, input_dims, num_classes):
    ks = jax.random.split(key, 12)
    p = {
        "conv1_w": 0.1 * jax.random.normal(ks[0], (128, input_dims, 7), F32),
        "conv1_b": 0.05 * jax.random.normal(ks[1], (128,), F32),
        "bn1_g": 1.0 + 0.1 * jax.random.normal(ks[2], (128,), F32),
        "bn1_b": 0.1 * jax.random.normal(ks[3], (128,), F32),
        "bn1_m": jnp.zeros((128,), F32), "bn1_v": jnp.ones((128,), F32),
        "conv2_w": 0.05 * jax.random.normal(ks[4], (256, 128, 5), F32),
        "conv2_b": 0.05 * jax.random.normal(ks[5], (256,), F32),
        "bn2_g": 1.0 + 0.1 * jax.random.normal(ks[6], (256,), F32),
        "bn2_b": 0.1 * jax.random.normal(ks[7], (256,), F32),
        "bn2_m": jnp.zeros((256,), F32), "bn2_v": jnp.ones((256,), F32),
        "conv3_w": 0.05 * jax.random.normal(ks[8], (128, 256, 3), F32),
        "conv3_b": 0.05 * jax.random.normal(ks[9], (128,), F32),
        "bn3_g": 1.0 + 0.1 * jax.random.normal(ks[10], (128,), F32),
        "bn3_b": 0.1 * jax.random.normal(ks[11], (128,), F32),
        "bn3_m": jnp.zeros((128,), F32), "bn3_v": jnp.ones((128,), F32),
    }
    k1, k2, k3 = jax.random.split(jax.random.fold_in(key, 99), 3)
    p["lin1_w"] = 0.1 * jax.random.normal(k1, (128, 128), F32)
    p["lin1_b"] = 0.05 * jax.random.normal(k2, (128,), F32)
    # linear2: kaiming_normal_ (std = sqrt(2/fan_in)), bias = 0
    p["lin2_w"] = jnp.sqrt(2.0 / 128.0) * jax.random.normal(k3, (num_classes, 128), F32)
    p["lin2_b"] = jnp.zeros((num_classes,), F32)
    return p


if __name__ == "__main__":
    B, input_dims, L, num_classes = 16, 4, 16, 10
    TILE_B = 8                                    # -> grid of 2 batch tiles

    key = jax.random.PRNGKey(0)
    kp, kx = jax.random.split(key)
    params = init_params(kp, input_dims, num_classes)
    x = jax.random.normal(kx, (B, input_dims, L), F32)

    pp = prepare_params(params, seq_len=L)
    fwd = jax.jit(functools.partial(forward, pp, tile_b=TILE_B))
    out = jax.block_until_ready(fwd(x))
    assert out.shape == (B, num_classes), out.shape

    # Tight check vs a reference mirroring the kernel's bf16 cast points
    # (catches any row-layout / offset bug).
    ref_bf16 = matched_reference(params, x)
    if not jnp.allclose(out, ref_bf16, atol=2e-3, rtol=2e-3):
        raise AssertionError(
            f"mismatch vs bf16-matched ref: max abs err {jnp.max(jnp.abs(out - ref_bf16))}")

    # Looser sanity check vs the all-f32 PyTorch-equivalent reference;
    # tolerance is the bf16 MXU-input / bf16-activation error budget.
    ref_f32 = reference_forward(params, x)
    if not jnp.allclose(out, ref_f32, atol=8e-2, rtol=8e-2):
        raise AssertionError(
            f"mismatch vs f32 ref: max abs err {jnp.max(jnp.abs(out - ref_f32))}")

    print("KERNEL_OK")
</pallas_src>

<mosaic_0001>
module attributes {stable_mosaic.version = 11 : i64} {
  func.func @kernel(%arg0: i32, %arg1: memref<8x16x4xf32, #tpu.memory_space<vmem>>, %arg2: memref<28x128xbf16, #tpu.memory_space<vmem>>, %arg3: memref<640x256xbf16, #tpu.memory_space<vmem>>, %arg4: memref<768x128xbf16, #tpu.memory_space<vmem>>, %arg5: memref<128x128xbf16, #tpu.memory_space<vmem>>, %arg6: memref<128x128xbf16, #tpu.memory_space<vmem>>, %arg7: memref<8x256xf32, #tpu.memory_space<vmem>>, %arg8: memref<8x128xf32, #tpu.memory_space<vmem>>, %arg9: memref<200x4xf32, #tpu.memory_space<vmem>>, %arg10: memref<200x128xbf16, #tpu.memory_space<vmem>>, %arg11: memref<200x256xbf16, #tpu.memory_space<vmem>>, %arg12: memref<192x256xf32, #tpu.memory_space<vmem>>) attributes {dimension_semantics = [#tpu.dimension_semantics<parallel>], iteration_bounds = array<i64: 2>, scalar_prefetch = 0 : i64, scratch_operands = 4 : i64, tpu.core_type = #tpu.core_type<tc>, window_params = [{transform_indices = @transform_0, window_bounds = array<i64: 8, 16, 4>}, {pipeline_mode = #tpu.pipeline_mode<synchronous>, transform_indices = @transform_1, window_bounds = array<i64: 28, 128>}, {pipeline_mode = #tpu.pipeline_mode<synchronous>, transform_indices = @transform_2, window_bounds = array<i64: 640, 256>}, {pipeline_mode = #tpu.pipeline_mode<synchronous>, transform_indices = @transform_3, window_bounds = array<i64: 768, 128>}, {pipeline_mode = #tpu.pipeline_mode<synchronous>, transform_indices = @transform_4, window_bounds = array<i64: 128, 128>}, {pipeline_mode = #tpu.pipeline_mode<synchronous>, transform_indices = @transform_5, window_bounds = array<i64: 128, 128>}, {pipeline_mode = #tpu.pipeline_mode<synchronous>, transform_indices = @transform_6, window_bounds = array<i64: 8, 256>}, {transform_indices = @transform_7, window_bounds = array<i64: 8, 128>}]} {
    %c0 = arith.constant 0 : index
    %c0_0 = arith.constant 0 : index
    %0 = vector.load %arg7[%c0, %c0_0] : memref<8x256xf32, #tpu.memory_space<vmem>>, vector<1x128xf32>
    %c0_1 = arith.constant 0 : index
    %c128 = arith.constant 128 : index
    %1 = vector.load %arg7[%c0_1, %c128] : memref<8x256xf32, #tpu.memory_space<vmem>>, vector<1x128xf32>
    %c1 = arith.constant 1 : index
    %c0_2 = arith.constant 0 : index
    %2 = vector.load %arg7[%c1, %c0_2] : memref<8x256xf32, #tpu.memory_space<vmem>>, vector<1x128xf32>
    %c1_3 = arith.constant 1 : index
    %c128_4 = arith.constant 128 : index
    %3 = vector.load %arg7[%c1_3, %c128_4] : memref<8x256xf32, #tpu.memory_space<vmem>>, vector<1x128xf32>
    %c2 = arith.constant 2 : index
    %c0_5 = arith.constant 0 : index
    %4 = vector.load %arg7[%c2, %c0_5] : memref<8x256xf32, #tpu.memory_space<vmem>>, vector<1x256xf32>
    %c3 = arith.constant 3 : index
    %c0_6 = arith.constant 0 : index
    %5 = vector.load %arg7[%c3, %c0_6] : memref<8x256xf32, #tpu.memory_space<vmem>>, vector<1x256xf32>
    %c4 = arith.constant 4 : index
    %c0_7 = arith.constant 0 : index
    %6 = vector.load %arg7[%c4, %c0_7] : memref<8x256xf32, #tpu.memory_space<vmem>>, vector<1x128xf32>
    %c4_8 = arith.constant 4 : index
    %c128_9 = arith.constant 128 : index
    %7 = vector.load %arg7[%c4_8, %c128_9] : memref<8x256xf32, #tpu.memory_space<vmem>>, vector<1x128xf32>
    %cst = arith.constant 0.000000e+00 : f32
    %8 = vector.broadcast %cst : f32 to vector<200x4xf32>
    %c0_10 = arith.constant 0 : index
    %c0_11 = arith.constant 0 : index
    %9 = vector.load %arg9[%c0_10, %c0_11] : memref<200x4xf32, #tpu.memory_space<vmem>>, vector<200x4xf32>
    tpu.vector_store %arg9[%c0_10, %c0_11], %8 {strides = array<i32>} : memref<200x4xf32, #tpu.memory_space<vmem>>, vector<200x4xf32>,
    %c0_12 = arith.constant 0 : index
    %c0_13 = arith.constant 0 : index
    %c0_14 = arith.constant 0 : index
    %10 = vector.load %arg1[%c0_12, %c0_13, %c0_14] : memref<8x16x4xf32, #tpu.memory_space<vmem>>, vector<1x16x4xf32>
    %11 = vector.shape_cast %10 : vector<1x16x4xf32> to vector<16x4xf32>
    %c6 = arith.constant 6 : index
    %c0_15 = arith.constant 0 : index
    %12 = vector.load %arg9[%c6, %c0_15] : memref<200x4xf32, #tpu.memory_space<vmem>>, vector<16x4xf32>
    tpu.vector_store %arg9[%c6, %c0_15], %11 {strides = array<i32>} : memref<200x4xf32, #tpu.memory_space<vmem>>, vector<16x4xf32>,
    %c1_16 = arith.constant 1 : index
    %c0_17 = arith.constant 0 : index
    %c0_18 = arith.constant 0 : index
    %13 = vector.load %arg1[%c1_16, %c0_17, %c0_18] : memref<8x16x4xf32, #tpu.memory_space<vmem>>, vector<1x16x4xf32>
    %14 = vector.shape_cast %13 : vector<1x16x4xf32> to vector<16x4xf32>
    %c30 = arith.constant 30 : index
    %c0_19 = arith.constant 0 : index
    %15 = vector.load %arg9[%c30, %c0_19] : memref<200x4xf32, #tpu.memory_space<vmem>>, vector<16x4xf32>
    tpu.vector_store %arg9[%c30, %c0_19], %14 {strides = array<i32>} : memref<200x4xf32, #tpu.memory_space<vmem>>, vector<16x4xf32>,
    %c2_20 = arith.constant 2 : index
    %c0_21 = arith.constant 0 : index
    %c0_22 = arith.constant 0 : index
    %16 = vector.load %arg1[%c2_20, %c0_21, %c0_22] : memref<8x16x4xf32, #tpu.memory_space<vmem>>, vector<1x16x4xf32>
    %17 = vector.shape_cast %16 : vector<1x16x4xf32> to vector<16x4xf32>
    %c54 = arith.constant 54 : index
    %c0_23 = arith.constant 0 : index
    %18 = vector.load %arg9[%c54, %c0_23] : memref<200x4xf32, #tpu.memory_space<vmem>>, vector<16x4xf32>
    tpu.vector_store %arg9[%c54, %c0_23], %17 {strides = array<i32>} : memref<200x4xf32, #tpu.memory_space<vmem>>, vector<16x4xf32>,
    %c3_24 = arith.constant 3 : index
    %c0_25 = arith.constant 0 : index
    %c0_26 = arith.constant 0 : index
    %19 = vector.load %arg1[%c3_24, %c0_25, %c0_26] : memref<8x16x4xf32, #tpu.memory_space<vmem>>, vector<1x16x4xf32>
    %20 = vector.shape_cast %19 : vector<1x16x4xf32> to vector<16x4xf32>
    %c78 = arith.constant 78 : index
    %c0_27 = arith.constant 0 : index
    %21 = vector.load %arg9[%c78, %c0_27] : memref<200x4xf32, #tpu.memory_space<vmem>>, vector<16x4xf32>
    tpu.vector_store %arg9[%c78, %c0_27], %20 {strides = array<i32>} : memref<200x4xf32, #tpu.memory_space<vmem>>, vector<16x4xf32>,
    %c4_28 = arith.constant 4 : index
    %c0_29 = arith.constant 0 : index
    %c0_30 = arith.constant 0 : index
    %22 = vector.load %arg1[%c4_28, %c0_29, %c0_30] : memref<8x16x4xf32, #tpu.memory_space<vmem>>, vector<1x16x4xf32>
    %23 = vector.shape_cast %22 : vector<1x16x4xf32> to vector<16x4xf32>
    %c102 = arith.constant 102 : index
    %c0_31 = arith.constant 0 : index
    %24 = vector.load %arg9[%c102, %c0_31] : memref<200x4xf32, #tpu.memory_space<vmem>>, vector<16x4xf32>
    tpu.vector_store %arg9[%c102, %c0_31], %23 {strides = array<i32>} : memref<200x4xf32, #tpu.memory_space<vmem>>, vector<16x4xf32>,
    %c5 = arith.constant 5 : index
    %c0_32 = arith.constant 0 : index
    %c0_33 = arith.constant 0 : index
    %25 = vector.load %arg1[%c5, %c0_32, %c0_33] : memref<8x16x4xf32, #tpu.memory_space<vmem>>, vector<1x16x4xf32>
    %26 = vector.shape_cast %25 : vector<1x16x4xf32> to vector<16x4xf32>
    %c126 = arith.constant 126 : index
    %c0_34 = arith.constant 0 : index
    %27 = vector.load %arg9[%c126, %c0_34] : memref<200x4xf32, #tpu.memory_space<vmem>>, vector<16x4xf32>
    tpu.vector_store %arg9[%c126, %c0_34], %26 {strides = array<i32>} : memref<200x4xf32, #tpu.memory_space<vmem>>, vector<16x4xf32>,
    %c6_35 = arith.constant 6 : index
    %c0_36 = arith.constant 0 : index
    %c0_37 = arith.constant 0 : index
    %28 = vector.load %arg1[%c6_35, %c0_36, %c0_37] : memref<8x16x4xf32, #tpu.memory_space<vmem>>, vector<1x16x4xf32>
    %29 = vector.shape_cast %28 : vector<1x16x4xf32> to vector<16x4xf32>
    %c150 = arith.constant 150 : index
    %c0_38 = arith.constant 0 : index
    %30 = vector.load %arg9[%c150, %c0_38] : memref<200x4xf32, #tpu.memory_space<vmem>>, vector<16x4xf32>
    tpu.vector_store %arg9[%c150, %c0_38], %29 {strides = array<i32>} : memref<200x4xf32, #tpu.memory_space<vmem>>, vector<16x4xf32>,
    %c7 = arith.constant 7 : index
    %c0_39 = arith.constant 0 : index
    %c0_40 = arith.constant 0 : index
    %31 = vector.load %arg1[%c7, %c0_39, %c0_40] : memref<8x16x4xf32, #tpu.memory_space<vmem>>, vector<1x16x4xf32>
    %32 = vector.shape_cast %31 : vector<1x16x4xf32> to vector<16x4xf32>
    %c174 = arith.constant 174 : index
    %c0_41 = arith.constant 0 : index
    %33 = vector.load %arg9[%c174, %c0_41] : memref<200x4xf32, #tpu.memory_space<vmem>>, vector<16x4xf32>
    tpu.vector_store %arg9[%c174, %c0_41], %32 {strides = array<i32>} : memref<200x4xf32, #tpu.memory_space<vmem>>, vector<16x4xf32>,
    %cst_42 = arith.constant 0.000000e+00 : bf16
    %34 = vector.broadcast %cst_42 : bf16 to vector<8x128xbf16>
    %c192 = arith.constant 192 : index
    %c0_43 = arith.constant 0 : index
    %35 = vector.load %arg10[%c192, %c0_43] : memref<200x128xbf16, #tpu.memory_space<vmem>>, vector<8x128xbf16>
    tpu.vector_store %arg10[%c192, %c0_43], %34 {strides = array<i32>} : memref<200x128xbf16, #tpu.memory_space<vmem>>, vector<8x128xbf16>,
    %cst_44 = arith.constant 0.000000e+00 : bf16
    %36 = vector.broadcast %cst_44 : bf16 to vector<8x256xbf16>
    %c192_45 = arith.constant 192 : index
    %c0_46 = arith.constant 0 : index
    %37 = vector.load %arg11[%c192_45, %c0_46] : memref<200x256xbf16, #tpu.memory_space<vmem>>, vector<8x256xbf16>
    tpu.vector_store %arg11[%c192_45, %c0_46], %36 {strides = array<i32>} : memref<200x256xbf16, #tpu.memory_space<vmem>>, vector<8x256xbf16>,
    %c0_47 = arith.constant 0 : index
    %c0_48 = arith.constant 0 : index
    %38 = vector.load %arg9[%c0_47, %c0_48] : memref<200x4xf32, #tpu.memory_space<vmem>>, vector<192x4xf32>
    %c1_49 = arith.constant 1 : index
    %c0_50 = arith.constant 0 : index
    %39 = vector.load %arg9[%c1_49, %c0_50] : memref<200x4xf32, #tpu.memory_space<vmem>>, vector<192x4xf32>
    %c2_51 = arith.constant 2 : index
    %c0_52 = arith.constant 0 : index
    %40 = vector.load %arg9[%c2_51, %c0_52] : memref<200x4xf32, #tpu.memory_space<vmem>>, vector<192x4xf32>
    %c3_53 = arith.constant 3 : index
    %c0_54 = arith.constant 0 : index
    %41 = vector.load %arg9[%c3_53, %c0_54] : memref<200x4xf32, #tpu.memory_space<vmem>>, vector<192x4xf32>
    %c4_55 = arith.constant 4 : index
    %c0_56 = arith.constant 0 : index
    %42 = vector.load %arg9[%c4_55, %c0_56] : memref<200x4xf32, #tpu.memory_space<vmem>>, vector<192x4xf32>
    %c5_57 = arith.constant 5 : index
    %c0_58 = arith.constant 0 : index
    %43 = vector.load %arg9[%c5_57, %c0_58] : memref<200x4xf32, #tpu.memory_space<vmem>>, vector<192x4xf32>
    %c6_59 = arith.constant 6 : index
    %c0_60 = arith.constant 0 : index
    %44 = vector.load %arg9[%c6_59, %c0_60] : memref<200x4xf32, #tpu.memory_space<vmem>>, vector<192x4xf32>
    %45 = tpu.concatenate %38, %39, %40, %41, %42, %43, %44 in 1 : vector<192x4xf32>, vector<192x4xf32>, vector<192x4xf32>, vector<192x4xf32>, vector<192x4xf32>, vector<192x4xf32>, vector<192x4xf32> -> vector<192x28xf32>
    %46 = arith.truncf %45 : vector<192x28xf32> to vector<192x28xbf16>
    %c0_61 = arith.constant 0 : index
    %c0_62 = arith.constant 0 : index
    %47 = vector.load %arg2[%c0_61, %c0_62] : memref<28x128xbf16, #tpu.memory_space<vmem>>, vector<28x128xbf16>
    %cst_63 = arith.constant dense<0.000000e+00> : vector<192x128xf32>
    %48 = tpu.matmul %46, %47, %cst_63 {dimension_numbers = #tpu.dot_dimension_numbers<[1], [0], [0], [1], [0, 0, 1, 1], [], []>} : vector<192x28xbf16>, vector<28x128xbf16>, vector<192x128xf32> -> vector<192x128xf32>
    %49 = vector.broadcast %0 : vector<1x128xf32> to vector<192x128xf32>
    %50 = arith.mulf %48, %49 : vector<192x128xf32>
    %51 = vector.broadcast %2 : vector<1x128xf32> to vector<192x128xf32>
    %52 = arith.addf %50, %51 : vector<192x128xf32>
    %53 = arith.negf %52 : vector<192x128xf32>
    %54 = math.exp %53 : vector<192x128xf32>
    %cst_64 = arith.constant 1.000000e+00 : f32
    %55 = vector.broadcast %cst_64 : f32 to vector<192x128xf32>
    %56 = arith.addf %55, %54 : vector<192x128xf32>
    %57 = arith.divf %55, %56 : vector<192x128xf32>
    %58 = tpu.iota {dimensions = array<i32: 0>} : vector<192x1xi32>
    %c4_i32 = arith.constant 4 : i32
    %59 = vector.broadcast %c4_i32 : i32 to vector<192x1xi32>
    %60 = arith.cmpi sge, %58, %59 : vector<192x1xi32>
    %c18_i32 = arith.constant 18 : i32
    %61 = vector.broadcast %c18_i32 : i32 to vector<192x1xi32>
    %62 = arith.cmpi slt, %58, %61 : vector<192x1xi32>
    %63 = arith.andi %60, %62 : vector<192x1xi1>
    %c28_i32 = arith.constant 28 : i32
    %64 = vector.broadcast %c28_i32 : i32 to vector<192x1xi32>
    %65 = arith.cmpi sge, %58, %64 : vector<192x1xi32>
    %c42_i32 = arith.constant 42 : i32
    %66 = vector.broadcast %c42_i32 : i32 to vector<192x1xi32>
    %67 = arith.cmpi slt, %58, %66 : vector<192x1xi32>
    %68 = arith.andi %65, %67 : vector<192x1xi1>
    %69 = arith.ori %63, %68 : vector<192x1xi1>
    %c52_i32 = arith.constant 52 : i32
    %70 = vector.broadcast %c52_i32 : i32 to vector<192x1xi32>
    %71 = arith.cmpi sge, %58, %70 : vector<192x1xi32>
    %c66_i32 = arith.constant 66 : i32
    %72 = vector.broadcast %c66_i32 : i32 to vector<192x1xi32>
    %73 = arith.cmpi slt, %58, %72 : vector<192x1xi32>
    %74 = arith.andi %71, %73 : vector<192x1xi1>
    %75 = arith.ori %69, %74 : vector<192x1xi1>
    %c76_i32 = arith.constant 76 : i32
    %76 = vector.broadcast %c76_i32 : i32 to vector<192x1xi32>
    %77 = arith.cmpi sge, %58, %76 : vector<192x1xi32>
    %c90_i32 = arith.constant 90 : i32
    %78 = vector.broadcast %c90_i32 : i32 to vector<192x1xi32>
    %79 = arith.cmpi slt, %58, %78 : vector<192x1xi32>
    %80 = arith.andi %77, %79 : vector<192x1xi1>
    %81 = arith.ori %75, %80 : vector<192x1xi1>
    %c100_i32 = arith.constant 100 : i32
    %82 = vector.broadcast %c100_i32 : i32 to vector<192x1xi32>
    %83 = arith.cmpi sge, %58, %82 : vector<192x1xi32>
    %c114_i32 = arith.constant 114 : i32
    %84 = vector.broadcast %c114_i32 : i32 to vector<192x1xi32>
    %85 = arith.cmpi slt, %58, %84 : vector<192x1xi32>
    %86 = arith.andi %83, %85 : vector<192x1xi1>
    %87 = arith.ori %81, %86 : vector<192x1xi1>
    %c124_i32 = arith.constant 124 : i32
    %88 = vector.broadcast %c124_i32 : i32 to vector<192x1xi32>
    %89 = arith.cmpi sge, %58, %88 : vector<192x1xi32>
    %c138_i32 = arith.constant 138 : i32
    %90 = vector.broadcast %c138_i32 : i32 to vector<192x1xi32>
    %91 = arith.cmpi slt, %58, %90 : vector<192x1xi32>
    %92 = arith.andi %89, %91 : vector<192x1xi1>
    %93 = arith.ori %87, %92 : vector<192x1xi1>
    %c148_i32 = arith.constant 148 : i32
    %94 = vector.broadcast %c148_i32 : i32 to vector<192x1xi32>
    %95 = arith.cmpi sge, %58, %94 : vector<192x1xi32>
    %c162_i32 = arith.constant 162 : i32
    %96 = vector.broadcast %c162_i32 : i32 to vector<192x1xi32>
    %97 = arith.cmpi slt, %58, %96 : vector<192x1xi32>
    %98 = arith.andi %95, %97 : vector<192x1xi1>
    %99 = arith.ori %93, %98 : vector<192x1xi1>
    %c172_i32 = arith.constant 172 : i32
    %100 = vector.broadcast %c172_i32 : i32 to vector<192x1xi32>
    %101 = arith.cmpi sge, %58, %100 : vector<192x1xi32>
    %c186_i32 = arith.constant 186 : i32
    %102 = vector.broadcast %c186_i32 : i32 to vector<192x1xi32>
    %103 = arith.cmpi slt, %58, %102 : vector<192x1xi32>
    %104 = arith.andi %101, %103 : vector<192x1xi1>
    %105 = arith.ori %99, %104 : vector<192x1xi1>
    %106 = arith.extui %105 : vector<192x1xi1> to vector<192x1xi32>
    %107 = arith.sitofp %106 : vector<192x1xi32> to vector<192x1xf32>
    %108 = vector.broadcast %107 : vector<192x1xf32> to vector<192x128xf32>
    %109 = arith.mulf %57, %108 : vector<192x128xf32>
    %110 = arith.truncf %109 : vector<192x128xf32> to vector<192x128xbf16>
    %c0_65 = arith.constant 0 : index
    %c0_66 = arith.constant 0 : index
    %111 = vector.load %arg10[%c0_65, %c0_66] : memref<200x128xbf16, #tpu.memory_space<vmem>>, vector<192x128xbf16>
    tpu.vector_store %arg10[%c0_65, %c0_66], %110 {strides = array<i32>} : memref<200x128xbf16, #tpu.memory_space<vmem>>, vector<192x128xbf16>,
    %c0_67 = arith.constant 0 : index
    %c0_68 = arith.constant 0 : index
    %112 = vector.load %arg10[%c0_67, %c0_68] : memref<200x128xbf16, #tpu.memory_space<vmem>>, vector<192x128xbf16>
    %c0_69 = arith.constant 0 : index
    %c0_70 = arith.constant 0 : index
    %113 = vector.load %arg3[%c0_69, %c0_70] : memref<640x256xbf16, #tpu.memory_space<vmem>>, vector<128x256xbf16>
    %cst_71 = arith.constant dense<0.000000e+00> : vector<192x256xf32>
    %114 = tpu.matmul %112, %113, %cst_71 {dimension_numbers = #tpu.dot_dimension_numbers<[1], [0], [0], [1], [0, 0, 1, 1], [], []>} : vector<192x128xbf16>, vector<128x256xbf16>, vector<192x256xf32> -> vector<192x256xf32>
    %c0_72 = arith.constant 0 : index
    %c0_73 = arith.constant 0 : index
    %115 = vector.load %arg12[%c0_72, %c0_73] : memref<192x256xf32, #tpu.memory_space<vmem>>, vector<192x256xf32>
    tpu.vector_store %arg12[%c0_72, %c0_73], %114 {strides = array<i32>} : memref<192x256xf32, #tpu.memory_space<vmem>>, vector<192x256xf32>,
    %c0_74 = arith.constant 0 : index
    %c0_75 = arith.constant 0 : index
    %116 = vector.load %arg12[%c0_74, %c0_75] : memref<192x256xf32, #tpu.memory_space<vmem>>, vector<192x256xf32>
    %c1_76 = arith.constant 1 : index
    %c0_77 = arith.constant 0 : index
    %117 = vector.load %arg10[%c1_76, %c0_77] : memref<200x128xbf16, #tpu.memory_space<vmem>>, vector<192x128xbf16>
    %c128_78 = arith.constant 128 : index
    %c0_79 = arith.constant 0 : index
    %118 = vector.load %arg3[%c128_78, %c0_79] : memref<640x256xbf16, #tpu.memory_space<vmem>>, vector<128x256xbf16>
    %cst_80 = arith.constant dense<0.000000e+00> : vector<192x256xf32>
    %119 = tpu.matmul %117, %118, %cst_80 {dimension_numbers = #tpu.dot_dimension_numbers<[1], [0], [0], [1], [0, 0, 1, 1], [], []>} : vector<192x128xbf16>, vector<128x256xbf16>, vector<192x256xf32> -> vector<192x256xf32>
    %120 = arith.addf %116, %119 : vector<192x256xf32>
    %c0_81 = arith.constant 0 : index
    %c0_82 = arith.constant 0 : index
    %121 = vector.load %arg12[%c0_81, %c0_82] : memref<192x256xf32, #tpu.memory_space<vmem>>, vector<192x256xf32>
    tpu.vector_store %arg12[%c0_81, %c0_82], %120 {strides = array<i32>} : memref<192x256xf32, #tpu.memory_space<vmem>>, vector<192x256xf32>,
    %c0_83 = arith.constant 0 : index
    %c0_84 = arith.constant 0 : index
    %122 = vector.load %arg12[%c0_83, %c0_84] : memref<192x256xf32, #tpu.memory_space<vmem>>, vector<192x256xf32>
    %c2_85 = arith.constant 2 : index
    %c0_86 = arith.constant 0 : index
    %123 = vector.load %arg10[%c2_85, %c0_86] : memref<200x128xbf16, #tpu.memory_space<vmem>>, vector<192x128xbf16>
    %c256 = arith.constant 256 : index
    %c0_87 = arith.constant 0 : index
    %124 = vector.load %arg3[%c256, %c0_87] : memref<640x256xbf16, #tpu.memory_space<vmem>>, vector<128x256xbf16>
    %cst_88 = arith.constant dense<0.000000e+00> : vector<192x256xf32>
    %125 = tpu.matmul %123, %124, %cst_88 {dimension_numbers = #tpu.dot_dimension_numbers<[1], [0], [0], [1], [0, 0, 1, 1], [], []>} : vector<192x128xbf16>, vector<128x256xbf16>, vector<192x256xf32> -> vector<192x256xf32>
    %126 = arith.addf %122, %125 : vector<192x256xf32>
    %c0_89 = arith.constant 0 : index
    %c0_90 = arith.constant 0 : index
    %127 = vector.load %arg12[%c0_89, %c0_90] : memref<192x256xf32, #tpu.memory_space<vmem>>, vector<192x256xf32>
    tpu.vector_store %arg12[%c0_89, %c0_90], %126 {strides = array<i32>} : memref<192x256xf32, #tpu.memory_space<vmem>>, vector<192x256xf32>,
    %c0_91 = arith.constant 0 : index
    %c0_92 = arith.constant 0 : index
    %128 = vector.load %arg12[%c0_91, %c0_92] : memref<192x256xf32, #tpu.memory_space<vmem>>, vector<192x256xf32>
    %c3_93 = arith.constant 3 : index
    %c0_94 = arith.constant 0 : index
    %129 = vector.load %arg10[%c3_93, %c0_94] : memref<200x128xbf16, #tpu.memory_space<vmem>>, vector<192x128xbf16>
    %c384 = arith.constant 384 : index
    %c0_95 = arith.constant 0 : index
    %130 = vector.load %arg3[%c384, %c0_95] : memref<640x256xbf16, #tpu.memory_space<vmem>>, vector<128x256xbf16>
    %cst_96 = arith.constant dense<0.000000e+00> : vector<192x256xf32>
    %131 = tpu.matmul %129, %130, %cst_96 {dimension_numbers = #tpu.dot_dimension_numbers<[1], [0], [0], [1], [0, 0, 1, 1], [], []>} : vector<192x128xbf16>, vector<128x256xbf16>, vector<192x256xf32> -> vector<192x256xf32>
    %132 = arith.addf %128, %131 : vector<192x256xf32>
    %c0_97 = arith.constant 0 : index
    %c0_98 = arith.constant 0 : index
    %133 = vector.load %arg12[%c0_97, %c0_98] : memref<192x256xf32, #tpu.memory_space<vmem>>, vector<192x256xf32>
    tpu.vector_store %arg12[%c0_97, %c0_98], %132 {strides = array<i32>} : memref<192x256xf32, #tpu.memory_space<vmem>>, vector<192x256xf32>,
    %c0_99 = arith.constant 0 : index
    %c0_100 = arith.constant 0 : index
    %134 = vector.load %arg12[%c0_99, %c0_100] : memref<192x256xf32, #tpu.memory_space<vmem>>, vector<192x256xf32>
    %c4_101 = arith.constant 4 : index
    %c0_102 = arith.constant 0 : index
    %135 = vector.load %arg10[%c4_101, %c0_102] : memref<200x128xbf16, #tpu.memory_space<vmem>>, vector<192x128xbf16>
    %c512 = arith.constant 512 : index
    %c0_103 = arith.constant 0 : index
    %136 = vector.load %arg3[%c512, %c0_103] : memref<640x256xbf16, #tpu.memory_space<vmem>>, vector<128x256xbf16>
    %cst_104 = arith.constant dense<0.000000e+00> : vector<192x256xf32>
    %137 = tpu.matmul %135, %136, %cst_104 {dimension_numbers = #tpu.dot_dimension_numbers<[1], [0], [0], [1], [0, 0, 1, 1], [], []>} : vector<192x128xbf16>, vector<128x256xbf16>, vector<192x256xf32> -> vector<192x256xf32>
    %138 = arith.addf %134, %137 : vector<192x256xf32>
    %c0_105 = arith.constant 0 : index
    %c0_106 = arith.constant 0 : index
    %139 = vector.load %arg12[%c0_105, %c0_106] : memref<192x256xf32, #tpu.memory_space<vmem>>, vector<192x256xf32>
    tpu.vector_store %arg12[%c0_105, %c0_106], %138 {strides = array<i32>} : memref<192x256xf32, #tpu.memory_space<vmem>>, vector<192x256xf32>,
    %c0_107 = arith.constant 0 : index
    %c0_108 = arith.constant 0 : index
    %140 = vector.load %arg12[%c0_107, %c0_108] : memref<192x256xf32, #tpu.memory_space<vmem>>, vector<192x256xf32>
    %141 = vector.broadcast %4 : vector<1x256xf32> to vector<192x256xf32>
    %142 = arith.mulf %140, %141 : vector<192x256xf32>
    %143 = vector.broadcast %5 : vector<1x256xf32> to vector<192x256xf32>
    %144 = arith.addf %142, %143 : vector<192x256xf32>
    %145 = arith.negf %144 : vector<192x256xf32>
    %146 = math.exp %145 : vector<192x256xf32>
    %cst_109 = arith.constant 1.000000e+00 : f32
    %147 = vector.broadcast %cst_109 : f32 to vector<192x256xf32>
    %148 = arith.addf %147, %146 : vector<192x256xf32>
    %149 = arith.divf %147, %148 : vector<192x256xf32>
    %150 = tpu.iota {dimensions = array<i32: 0>} : vector<192x1xi32>
    %c2_i32 = arith.constant 2 : i32
    %151 = vector.broadcast %c2_i32 : i32 to vector<192x1xi32>
    %152 = arith.cmpi sge, %150, %151 : vector<192x1xi32>
    %c16_i32 = arith.constant 16 : i32
    %153 = vector.broadcast %c16_i32 : i32 to vector<192x1xi32>
    %154 = arith.cmpi slt, %150, %153 : vector<192x1xi32>
    %155 = arith.andi %152, %154 : vector<192x1xi1>
    %c26_i32 = arith.constant 26 : i32
    %156 = vector.broadcast %c26_i32 : i32 to vector<192x1xi32>
    %157 = arith.cmpi sge, %150, %156 : vector<192x1xi32>
    %c40_i32 = arith.constant 40 : i32
    %158 = vector.broadcast %c40_i32 : i32 to vector<192x1xi32>
    %159 = arith.cmpi slt, %150, %158 : vector<192x1xi32>
    %160 = arith.andi %157, %159 : vector<192x1xi1>
    %161 = arith.ori %155, %160 : vector<192x1xi1>
    %c50_i32 = arith.constant 50 : i32
    %162 = vector.broadcast %c50_i32 : i32 to vector<192x1xi32>
    %163 = arith.cmpi sge, %150, %162 : vector<192x1xi32>
    %c64_i32 = arith.constant 64 : i32
    %164 = vector.broadcast %c64_i32 : i32 to vector<192x1xi32>
    %165 = arith.cmpi slt, %150, %164 : vector<192x1xi32>
    %166 = arith.andi %163, %165 : vector<192x1xi1>
    %167 = arith.ori %161, %166 : vector<192x1xi1>
    %c74_i32 = arith.constant 74 : i32
    %168 = vector.broadcast %c74_i32 : i32 to vector<192x1xi32>
    %169 = arith.cmpi sge, %150, %168 : vector<192x1xi32>
    %c88_i32 = arith.constant 88 : i32
    %170 = vector.broadcast %c88_i32 : i32 to vector<192x1xi32>
    %171 = arith.cmpi slt, %150, %170 : vector<192x1xi32>
    %172 = arith.andi %169, %171 : vector<192x1xi1>
    %173 = arith.ori %167, %172 : vector<192x1xi1>
    %c98_i32 = arith.constant 98 : i32
    %174 = vector.broadcast %c98_i32 : i32 to vector<192x1xi32>
    %175 = arith.cmpi sge, %150, %174 : vector<192x1xi32>
    %c112_i32 = arith.constant 112 : i32
    %176 = vector.broadcast %c112_i32 : i32 to vector<192x1xi32>
    %177 = arith.cmpi slt, %150, %176 : vector<192x1xi32>
    %178 = arith.andi %175, %177 : vector<192x1xi1>
    %179 = arith.ori %173, %178 : vector<192x1xi1>
    %c122_i32 = arith.constant 122 : i32
    %180 = vector.broadcast %c122_i32 : i32 to vector<192x1xi32>
    %181 = arith.cmpi sge, %150, %180 : vector<192x1xi32>
    %c136_i32 = arith.constant 136 : i32
    %182 = vector.broadcast %c136_i32 : i32 to vector<192x1xi32>
    %183 = arith.cmpi slt, %150, %182 : vector<192x1xi32>
    %184 = arith.andi %181, %183 : vector<192x1xi1>
    %185 = arith.ori %179, %184 : vector<192x1xi1>
    %c146_i32 = arith.constant 146 : i32
    %186 = vector.broadcast %c146_i32 : i32 to vector<192x1xi32>
    %187 = arith.cmpi sge, %150, %186 : vector<192x1xi32>
    %c160_i32 = arith.constant 160 : i32
    %188 = vector.broadcast %c160_i32 : i32 to vector<192x1xi32>
    %189 = arith.cmpi slt, %150, %188 : vector<192x1xi32>
    %190 = arith.andi %187, %189 : vector<192x1xi1>
    %191 = arith.ori %185, %190 : vector<192x1xi1>
    %c170_i32 = arith.constant 170 : i32
    %192 = vector.broadcast %c170_i32 : i32 to vector<192x1xi32>
    %193 = arith.cmpi sge, %150, %192 : vector<192x1xi32>
    %c184_i32 = arith.constant 184 : i32
    %194 = vector.broadcast %c184_i32 : i32 to vector<192x1xi32>
    %195 = arith.cmpi slt, %150, %194 : vector<192x1xi32>
    %196 = arith.andi %193, %195 : vector<192x1xi1>
    %197 = arith.ori %191, %196 : vector<192x1xi1>
    %198 = arith.extui %197 : vector<192x1xi1> to vector<192x1xi32>
    %199 = arith.sitofp %198 : vector<192x1xi32> to vector<192x1xf32>
    %200 = vector.broadcast %199 : vector<192x1xf32> to vector<192x256xf32>
    %201 = arith.mulf %149, %200 : vector<192x256xf32>
    %202 = arith.truncf %201 : vector<192x256xf32> to vector<192x256xbf16>
    %c0_110 = arith.constant 0 : index
    %c0_111 = arith.constant 0 : index
    %203 = vector.load %arg11[%c0_110, %c0_111] : memref<200x256xbf16, #tpu.memory_space<vmem>>, vector<192x256xbf16>
    tpu.vector_store %arg11[%c0_110, %c0_111], %202 {strides = array<i32>} : memref<200x256xbf16, #tpu.memory_space<vmem>>, vector<192x256xbf16>,
    %c0_112 = arith.constant 0 : index
    %c0_113 = arith.constant 0 : index
    %204 = vector.load %arg11[%c0_112, %c0_113] : memref<200x256xbf16, #tpu.memory_space<vmem>>, vector<192x256xbf16>
    %c0_114 = arith.constant 0 : index
    %c0_115 = arith.constant 0 : index
    %205 = vector.load %arg4[%c0_114, %c0_115] : memref<768x128xbf16, #tpu.memory_space<vmem>>, vector<256x128xbf16>
    %cst_116 = arith.constant dense<0.000000e+00> : vector<192x128xf32>
    %206 = tpu.matmul %204, %205, %cst_116 {dimension_numbers = #tpu.dot_dimension_numbers<[1], [0], [0], [1], [0, 0, 1, 1], [], []>} : vector<192x256xbf16>, vector<256x128xbf16>, vector<192x128xf32> -> vector<192x128xf32>
    %c0_117 = arith.constant 0 : index
    %c0_118 = arith.constant 0 : index
    %207 = vector.load %arg12[%c0_117, %c0_118] : memref<192x256xf32, #tpu.memory_space<vmem>>, vector<192x128xf32>
    tpu.vector_store %arg12[%c0_117, %c0_118], %206 {strides = array<i32>} : memref<192x256xf32, #tpu.memory_space<vmem>>, vector<192x128xf32>,
    %c0_119 = arith.constant 0 : index
    %c0_120 = arith.constant 0 : index
    %208 = vector.load %arg12[%c0_119, %c0_120] : memref<192x256xf32, #tpu.memory_space<vmem>>, vector<192x128xf32>
    %c1_121 = arith.constant 1 : index
    %c0_122 = arith.constant 0 : index
    %209 = vector.load %arg11[%c1_121, %c0_122] : memref<200x256xbf16, #tpu.memory_space<vmem>>, vector<192x256xbf16>
    %c256_123 = arith.constant 256 : index
    %c0_124 = arith.constant 0 : index
    %210 = vector.load %arg4[%c256_123, %c0_124] : memref<768x128xbf16, #tpu.memory_space<vmem>>, vector<256x128xbf16>
    %cst_125 = arith.constant dense<0.000000e+00> : vector<192x128xf32>
    %211 = tpu.matmul %209, %210, %cst_125 {dimension_numbers = #tpu.dot_dimension_numbers<[1], [0], [0], [1], [0, 0, 1, 1], [], []>} : vector<192x256xbf16>, vector<256x128xbf16>, vector<192x128xf32> -> vector<192x128xf32>
    %212 = arith.addf %208, %211 : vector<192x128xf32>
    %c0_126 = arith.constant 0 : index
    %c0_127 = arith.constant 0 : index
    %213 = vector.load %arg12[%c0_126, %c0_127] : memref<192x256xf32, #tpu.memory_space<vmem>>, vector<192x128xf32>
    tpu.vector_store %arg12[%c0_126, %c0_127], %212 {strides = array<i32>} : memref<192x256xf32, #tpu.memory_space<vmem>>, vector<192x128xf32>,
    %c0_128 = arith.constant 0 : index
    %c0_129 = arith.constant 0 : index
    %214 = vector.load %arg12[%c0_128, %c0_129] : memref<192x256xf32, #tpu.memory_space<vmem>>, vector<192x128xf32>
    %c2_130 = arith.constant 2 : index
    %c0_131 = arith.constant 0 : index
    %215 = vector.load %arg11[%c2_130, %c0_131] : memref<200x256xbf16, #tpu.memory_space<vmem>>, vector<192x256xbf16>
    %c512_132 = arith.constant 512 : index
    %c0_133 = arith.constant 0 : index
    %216 = vector.load %arg4[%c512_132, %c0_133] : memref<768x128xbf16, #tpu.memory_space<vmem>>, vector<256x128xbf16>
    %cst_134 = arith.constant dense<0.000000e+00> : vector<192x128xf32>
    %217 = tpu.matmul %215, %216, %cst_134 {dimension_numbers = #tpu.dot_dimension_numbers<[1], [0], [0], [1], [0, 0, 1, 1], [], []>} : vector<192x256xbf16>, vector<256x128xbf16>, vector<192x128xf32> -> vector<192x128xf32>
    %218 = arith.addf %214, %217 : vector<192x128xf32>
    %c0_135 = arith.constant 0 : index
    %c0_136 = arith.constant 0 : index
    %219 = vector.load %arg12[%c0_135, %c0_136] : memref<192x256xf32, #tpu.memory_space<vmem>>, vector<192x128xf32>
    tpu.vector_store %arg12[%c0_135, %c0_136], %218 {strides = array<i32>} : memref<192x256xf32, #tpu.memory_space<vmem>>, vector<192x128xf32>,
    %c0_137 = arith.constant 0 : index
    %c0_138 = arith.constant 0 : index
    %220 = vector.load %arg12[%c0_137, %c0_138] : memref<192x256xf32, #tpu.memory_space<vmem>>, vector<192x128xf32>
    %221 = vector.broadcast %1 : vector<1x128xf32> to vector<192x128xf32>
    %222 = arith.mulf %220, %221 : vector<192x128xf32>
    %223 = vector.broadcast %3 : vector<1x128xf32> to vector<192x128xf32>
    %224 = arith.addf %222, %223 : vector<192x128xf32>
    %225 = arith.negf %224 : vector<192x128xf32>
    %226 = math.exp %225 : vector<192x128xf32>
    %cst_139 = arith.constant 1.000000e+00 : f32
    %227 = vector.broadcast %cst_139 : f32 to vector<192x128xf32>
    %228 = arith.addf %227, %226 : vector<192x128xf32>
    %229 = arith.divf %227, %228 : vector<192x128xf32>
    %230 = tpu.iota {dimensions = array<i32: 1>} : vector<8x192xi32>
    %231 = tpu.iota {dimensions = array<i32: 0>} : vector<8x192xi32>
    %c24_i32 = arith.constant 24 : i32
    %232 = vector.broadcast %c24_i32 : i32 to vector<8x192xi32>
    %233 = arith.muli %231, %232 : vector<8x192xi32>
    %c0_i32 = arith.constant 0 : i32
    %234 = vector.broadcast %c0_i32 : i32 to vector<8x192xi32>
    %235 = arith.addi %233, %234 : vector<8x192xi32>
    %236 = arith.cmpi sge, %230, %235 : vector<8x192xi32>
    %c16_i32_140 = arith.constant 16 : i32
    %237 = vector.broadcast %c16_i32_140 : i32 to vector<8x192xi32>
    %238 = arith.addi %235, %237 : vector<8x192xi32>
    %239 = arith.cmpi slt, %230, %238 : vector<8x192xi32>
    %240 = arith.andi %236, %239 : vector<8x192xi1>
    %241 = arith.extui %240 : vector<8x192xi1> to vector<8x192xi32>
    %242 = arith.sitofp %241 : vector<8x192xi32> to vector<8x192xf32>
    %243 = arith.truncf %242 : vector<8x192xf32> to vector<8x192xbf16>
    %244 = arith.truncf %229 : vector<192x128xf32> to vector<192x128xbf16>
    %cst_141 = arith.constant dense<0.000000e+00> : vector<8x128xf32>
    %245 = tpu.matmul %243, %244, %cst_141 {dimension_numbers = #tpu.dot_dimension_numbers<[1], [0], [0], [1], [0, 0, 1, 1], [], []>} : vector<8x192xbf16>, vector<192x128xbf16>, vector<8x128xf32> -> vector<8x128xf32>
    %246 = arith.truncf %245 : vector<8x128xf32> to vector<8x128xbf16>
    %c0_142 = arith.constant 0 : index
    %c0_143 = arith.constant 0 : index
    %247 = vector.load %arg5[%c0_142, %c0_143] : memref<128x128xbf16, #tpu.memory_space<vmem>>, vector<128x128xbf16>
    %cst_144 = arith.constant dense<0.000000e+00> : vector<8x128xf32>
    %248 = tpu.matmul %246, %247, %cst_144 {dimension_numbers = #tpu.dot_dimension_numbers<[1], [0], [0], [1], [0, 0, 1, 1], [], []>} : vector<8x128xbf16>, vector<128x128xbf16>, vector<8x128xf32> -> vector<8x128xf32>
    %249 = vector.broadcast %6 : vector<1x128xf32> to vector<8x128xf32>
    %250 = arith.addf %248, %249 : vector<8x128xf32>
    %251 = arith.truncf %250 : vector<8x128xf32> to vector<8x128xbf16>
    %c0_145 = arith.constant 0 : index
    %c0_146 = arith.constant 0 : index
    %252 = vector.load %arg6[%c0_145, %c0_146] : memref<128x128xbf16, #tpu.memory_space<vmem>>, vector<128x128xbf16>
    %cst_147 = arith.constant dense<0.000000e+00> : vector<8x128xf32>
    %253 = tpu.matmul %251, %252, %cst_147 {dimension_numbers = #tpu.dot_dimension_numbers<[1], [0], [0], [1], [0, 0, 1, 1], [], []>} : vector<8x128xbf16>, vector<128x128xbf16>, vector<8x128xf32> -> vector<8x128xf32>
    %254 = vector.broadcast %7 : vector<1x128xf32> to vector<8x128xf32>
    %255 = arith.addf %253, %254 : vector<8x128xf32>
    %c0_148 = arith.constant 0 : index
    %c0_149 = arith.constant 0 : index
    %256 = vector.load %arg8[%c0_148, %c0_149] : memref<8x128xf32, #tpu.memory_space<vmem>>, vector<8x128xf32>
    tpu.vector_store %arg8[%c0_148, %c0_149], %255 {strides = array<i32>} : memref<8x128xf32, #tpu.memory_space<vmem>>, vector<8x128xf32>,
    return
  }
  func.func @transform_0(%arg0: i32) -> (i32, i32, i32) {
    %c0_i32 = arith.constant 0 : i32
    %c0_i32_0 = arith.constant 0 : i32
    %c0_i32_1 = arith.constant 0 : i32
    return %arg0, %c0_i32, %c0_i32_0 : i32, i32, i32
  }
  func.func @transform_1(%arg0: i32) -> (i32, i32) {
    %c0_i32 = arith.constant 0 : i32
    %c0_i32_0 = arith.constant 0 : i32
    %c0_i32_1 = arith.constant 0 : i32
    return %c0_i32, %c0_i32_0 : i32, i32
  }
  func.func @transform_2(%arg0: i32) -> (i32, i32) {
    %c0_i32 = arith.constant 0 : i32
    %c0_i32_0 = arith.constant 0 : i32
    %c0_i32_1 = arith.constant 0 : i32
    return %c0_i32, %c0_i32_0 : i32, i32
  }
  func.func @transform_3(%arg0: i32) -> (i32, i32) {
    %c0_i32 = arith.constant 0 : i32
    %c0_i32_0 = arith.constant 0 : i32
    %c0_i32_1 = arith.constant 0 : i32
    return %c0_i32, %c0_i32_0 : i32, i32
  }
  func.func @transform_4(%arg0: i32) -> (i32, i32) {
    %c0_i32 = arith.constant 0 : i32
    %c0_i32_0 = arith.constant 0 : i32
    %c0_i32_1 = arith.constant 0 : i32
    return %c0_i32, %c0_i32_0 : i32, i32
  }
  func.func @transform_5(%arg0: i32) -> (i32, i32) {
    %c0_i32 = arith.constant 0 : i32
    %c0_i32_0 = arith.constant 0 : i32
    %c0_i32_1 = arith.constant 0 : i32
    return %c0_i32, %c0_i32_0 : i32, i32
  }
  func.func @transform_6(%arg0: i32) -> (i32, i32) {
    %c0_i32 = arith.constant 0 : i32
    %c0_i32_0 = arith.constant 0 : i32
    %c0_i32_1 = arith.constant 0 : i32
    return %c0_i32, %c0_i32_0 : i32, i32
  }
  func.func @transform_7(%arg0: i32) -> (i32, i32) {
    %c0_i32 = arith.constant 0 : i32
    %c0_i32_0 = arith.constant 0 : i32
    return %arg0, %c0_i32 : i32, i32
  }
}

</mosaic_0001>

<bundles_post_ra>
// kernel: forward.1
= control target key start
LH: loop header
LB: loop body
LE: loop exit
PB: predicated region body
PF: predicated region fallthrough
CT: control target
= control target key end

     0   :  { %12 = vsyncpa [#allocation7], 0  ;;  %s13264_s0 = inlined_call_operand.vmem [shape: f32[16,16,4], index: 0, kind: input, shape index: {}]   ;;  %s13265_s1 = inlined_call_operand.vmem [shape: bf16[28,128], index: 1, kind: input, shape index: {}]   ;;  %s13266_s2 = inlined_call_operand.vmem [shape: bf16[640,256], index: 2, kind: input, shape index: {}]   ;;  %s13267_s3 = inlined_call_operand.vmem [shape: bf16[768,128], index: 3, kind: input, shape index: {}]   ;;  %s13268_s4 = inlined_call_operand.vmem [shape: bf16[128,128], index: 4, kind: input, shape index: {}]   ;;  %s13269_s5 = inlined_call_operand.vmem [shape: bf16[128,128], index: 5, kind: input, shape index: {}]   ;;  %s13270_s6 = inlined_call_operand.vmem [shape: f32[8,256], index: 6, kind: input, shape index: {}]   ;;  %s13271_s7 = inlined_call_operand.hbm [shape: f32[16,128], index: 7, kind: output, shape index: {}]  }
   0x1   :  { %14 = vsyncpa [#allocation7 + $0x1], 0  ;;  %s11321_s24 = smov 0   ;;  %s11323_s25 = smov 0  }
   0x2   :  { %s11325_s26 = smov 0   ;;  %s11327_s27 = smov 0  }
   0x3 LB: > { %s11342_s28 = sadd.s32 4294967295, %s11268_s27   ;;  %s8906_s29 = sadd.s32 4294967294, %s11268_s27   ;;  %s11268_s27 = sphi %s11327_s27, %s13280_s27   ;;  %s11264_s26 = sphi %s11325_s26, %s13279_s26   ;;  %s11260_s25 = sphi %s11323_s25, %s13278_s25   ;;  %s11256_s24 = sphi %s11321_s24, %s13277_s24  }
   0x4   : > { %s11346_s30 = sadd.s32 1, %s11268_s27   ;;  %s179_s8 = sadd.s32 1, %s11264_s26 }
   0x5   : > { %s176_s9 = ssub.s32 %s11268_s27, %s11346_s30  ;;  %p189_p0 = scmp.ne.s32.totalorder %s11264_s26, %s11260_s25 }
   0x6   : > { %p177_p1 = scmp.eq.s32.totalorder %s176_s9, 0  ;;  %p190_p2 = scmp.eq.s32.totalorder %s11342_s28, 1 }
   0x7   : > { %p195_p3 = scmp.ne.s32.totalorder %s11260_s25, %s11256_s24  ;;  %p196_p4 = scmp.eq.s32.totalorder %s8906_s29, 1 }
   0x8   : > { %s11357_s10 = scalar_select %p177_p1, %s11264_s26, %s179_s8  }
   0x9   : > { %p11359_p5 = por %p190_p2, %p189_p0  ;;  %p11363_p6 = por %p196_p4, %p195_p3 }
   0xa   : > { %p8909_p7 = scmp.ge.s32.totalorder %s11268_s27, 1  ;;  %p242_p8 = scmp.lt.s32.totalorder %s11268_s27, 3 }
   0xc   : > { %p243_p9 = pnand %p8909_p7, %p242_p8 }
   0xd   : > { %s8911_s13 = sshll.u32 (!%p243_p9), %s11342_s28, 3  ;;  %vm293_vm0 = vcmask (!%p243_p9), 31744   ;;  %v11270_v0 = vmov (!%p243_p9), 0.0   ;;  %s11271_s19 = smov (!%p243_p9), 8   ;;  %vm1317_vm1 = vcmask (!%p243_p9), 1045504   ;;  %vm1128_vm2 = vcmask (!%p243_p9), 64512  }
   0xe   : > { %246 = sbr.rel (%p243_p9) target bundleno = 2315 (0x90b), region = 48  ;;  %p11370_p10 = scmp.lt.s32.totalorder (!%p243_p9), %s8911_s13, 15  ;;  %294 = vst.msk [vmem:[#allocation2] sm:$0xff] (!%p243_p9), %vm293_vm0, %v11270_v0  ;;  %295 = vst.msk [vmem:[#allocation2 + $0x8] sm:$0xff] (!%p243_p9), %vm293_vm0, %v11270_v0  ;;  %vm1153_vm3 = vcmask (!%p243_p9), 97280   ;;  %vm1178_vm4 = vcmask (!%p243_p9), 130048  }
   0xf   : > { %296 = vst.msk [vmem:[#allocation2 + $0x10] sm:$0xff] (!%p243_p9), %vm293_vm0, %v11270_v0  ;;  %297 = vst.msk [vmem:[#allocation2 + $0x18] sm:$0xff] (!%p243_p9), %vm293_vm0, %v11270_v0  ;;  %s11272_s20 = smov (!%p243_p9), 4   ;;  %s11273_s21 = smov (!%p243_p9), 12   ;;  %vm1203_vm5 = vcmask (!%p243_p9), 162816   ;;  %vm1228_vm6 = vcmask (!%p243_p9), 195584  }
  0x10   : > { %298 = vst.msk [vmem:[#allocation2 + $0x20] sm:$0xff] (!%p243_p9), %vm293_vm0, %v11270_v0  ;;  %299 = vst.msk [vmem:[#allocation2 + $0x28] sm:$0xff] (!%p243_p9), %vm293_vm0, %v11270_v0  ;;  %s11274_s22 = smov (!%p243_p9), 16   ;;  %s11275_s23 = smov (!%p243_p9), 20   ;;  %vm1280_vm7 = vcmask (!%p243_p9), 228352  }
  0x11   : > { %300 = vst.msk [vmem:[#allocation2 + $0x30] sm:$0xff] (!%p243_p9), %vm293_vm0, %v11270_v0  ;;  %301 = vst.msk [vmem:[#allocation2 + $0x38] sm:$0xff] (!%p243_p9), %vm293_vm0, %v11270_v0  ;;  %s11276_s29 = smov (!%p243_p9), 24  }
  0x12   : > { %302 = vst.msk [vmem:[#allocation2 + $0x40] sm:$0xff] (!%p243_p9), %vm293_vm0, %v11270_v0  ;;  %303 = vst.msk [vmem:[#allocation2 + $0x48] sm:$0xff] (!%p243_p9), %vm293_vm0, %v11270_v0 }
  0x13   : > { %304 = vst.msk [vmem:[#allocation2 + $0x50] sm:$0xff] (!%p243_p9), %vm293_vm0, %v11270_v0  ;;  %305 = vst.msk [vmem:[#allocation2 + $0x58] sm:$0xff] (!%p243_p9), %vm293_vm0, %v11270_v0 }
  0x14   : > { %306 = vst.msk [vmem:[#allocation2 + $0x60] sm:$0xff] (!%p243_p9), %vm293_vm0, %v11270_v0  ;;  %307 = vst.msk [vmem:[#allocation2 + $0x68] sm:$0xff] (!%p243_p9), %vm293_vm0, %v11270_v0 }
  0x15   : > { %308 = vst.msk [vmem:[#allocation2 + $0x70] sm:$0xff] %vm293_vm0, %v11270_v0  ;;  %309 = vst.msk [vmem:[#allocation2 + $0x78] sm:$0xff] %vm293_vm0, %v11270_v0  ;;  %s13282_s13 = smov (!%p11370_p10, %s8911_s13), 15 }
  0x16   : > { %310 = vst.msk [vmem:[#allocation2 + $0x80] sm:$0xff] %vm293_vm0, %v11270_v0  ;;  %311 = vst.msk [vmem:[#allocation2 + $0x88] sm:$0xff] %vm293_vm0, %v11270_v0  ;;  %s9405_s15 = sshll.u32 %s13282_s13, 4  ;;  %v506_v47 = vld [vmem:[#allocation2 + $0x16] sm:$0xff]  ;;  %s9402_s13 = sshll.u32 %s11342_s28, 7 }
  0x17   : > { %312 = vst.msk [vmem:[#allocation2 + $0x90] sm:$0xff] %vm293_vm0, %v11270_v0  ;;  %313 = vst.msk [vmem:[#allocation2 + $0x98] sm:$0xff] %vm293_vm0, %v11270_v0  ;;  %s280_s18 = scalar_lea.vmem %s13264_s0, %s9405_s15 }
  0x18   : > { %314 = vst.msk [vmem:[#allocation2 + $0xa0] sm:$0xff] %vm293_vm0, %v11270_v0  ;;  %315 = vst.msk [vmem:[#allocation2 + $0xa8] sm:$0xff] %vm293_vm0, %v11270_v0  ;;  %v319_v1 = vld [vmem:[%s280_s18] sm:$0xff]  ;;  %v320_v2 = vld [vmem:[%s280_s18 + $0x8] sm:$0xff] }
  0x19   : > { %316 = vst.msk [vmem:[#allocation2 + $0xb0] sm:$0xff] %vm293_vm0, %v11270_v0  ;;  %317 = vst.msk [vmem:[#allocation2 + $0xb8] sm:$0xff] %vm293_vm0, %v11270_v0  ;;  %v8916_v3 = vld [vmem:[%s280_s18 + $0x10] sm:$0xff]  ;;  %v8918_v4 = vld [vmem:[%s280_s18 + $0x20] sm:$0xff] }
  0x1a   : > { %318 = vst.msk [vmem:[#allocation2 + $0xc0] sm:$0xff] %vm293_vm0, %v11270_v0  ;;  %321 = vst.msk [vmem:[#allocation2 + $0x6] sm:$0xff] %vm293_vm0, %v319_v1  ;;  %v8919_v5 = vld [vmem:[%s280_s18 + $0x28] sm:$0xff]  ;;  %v8917_v6 = vld [vmem:[%s280_s18 + $0x18] sm:$0xff] }
  0x1b   : > { %322 = vst.msk [vmem:[#allocation2 + $0xe] sm:$0xff] %vm293_vm0, %v320_v2  ;;  %326 = vst.msk [vmem:[#allocation2 + $0x1e] sm:$0xff] %vm293_vm0, %v8916_v3  ;;  %v8920_v7 = vld [vmem:[%s280_s18 + $0x30] sm:$0xff]  ;;  %v8921_v8 = vld [vmem:[%s280_s18 + $0x38] sm:$0xff] }
  0x1c   : > { %331 = vst.msk [vmem:[#allocation2 + $0x36] sm:$0xff] %vm293_vm0, %v8918_v4  ;;  %332 = vst.msk [vmem:[#allocation2 + $0x3e] sm:$0xff] %vm293_vm0, %v8919_v5  ;;  %v8923_v9 = vld [vmem:[%s280_s18 + $0x48] sm:$0xff]  ;;  %v8924_v10 = vld [vmem:[%s280_s18 + $0x50] sm:$0xff] }
  0x1d   : > { %327 = vst.msk [vmem:[#allocation2 + $0x26] sm:$0xff] %vm293_vm0, %v8917_v6  ;;  %336 = vst.msk [vmem:[#allocation2 + $0x4e] sm:$0xff] %vm293_vm0, %v8920_v7  ;;  %v8922_v11 = vld [vmem:[%s280_s18 + $0x40] sm:$0xff]  ;;  %v8927_v13 = vld [vmem:[%s280_s18 + $0x68] sm:$0xff] }
  0x1e   : > { %337 = vst.msk [vmem:[#allocation2 + $0x56] sm:$0xff] %vm293_vm0, %v8921_v8  ;;  %342 = vst.msk [vmem:[#allocation2 + $0x6e] sm:$0xff] %vm293_vm0, %v8923_v9  ;;  %v8926_v12 = vld [vmem:[%s280_s18 + $0x60] sm:$0xff]  ;;  %v8925_v14 = vld [vmem:[%s280_s18 + $0x58] sm:$0xff] }
  0x1f   : > { %346 = vst.msk [vmem:[#allocation2 + $0x7e] sm:$0xff] %vm293_vm0, %v8924_v10  ;;  %341 = vst.msk [vmem:[#allocation2 + $0x66] sm:$0xff] %vm293_vm0, %v8922_v11  ;;  %v8928_v15 = vld [vmem:[%s280_s18 + $0x70] sm:$0xff]  ;;  %v8929_v16 = vld [vmem:[%s280_s18 + $0x78] sm:$0xff]  ;;  %s13222_s18 = scalar_lea.hbm %s13271_s7, %s9402_s13 }
  0x20   : > { %351 = vst.msk [vmem:[#allocation2 + $0x96] sm:$0xff] %vm293_vm0, %v8926_v12  ;;  %352 = vst.msk [vmem:[#allocation2 + $0x9e] sm:$0xff] %vm293_vm0, %v8927_v13 }
  0x21   : > { %347 = vst.msk [vmem:[#allocation2 + $0x86] sm:$0xff] %vm293_vm0, %v8925_v14  ;;  %356 = vst.msk [vmem:[#allocation2 + $0xae] sm:$0xff] %vm293_vm0, %v8928_v15  ;;  %v408_v17 = vld [vmem:[#allocation2 + $0x2] sm:$0xff] }
  0x22   : > { %v409_v18 = vld [vmem:[#allocation2 + $0xa] sm:$0xff]  ;;  %v384_v19 = vld [vmem:[#allocation2 + $0x1] sm:$0xff]  ;;  %357 = vst.msk [vmem:[#allocation2 + $0xb6] sm:$0xff] %vm293_vm0, %v8929_v16  ;;  %v410_v22 = vld [vmem:[#allocation2 + $0x12] sm:$0xff] }
  0x23   : > { %v10157_v20 = vpack.i.bf16 %v409_v18, %v408_v17  ;;  %v385_v21 = vld [vmem:[#allocation2 + $0x9] sm:$0xff]  ;;  %v411_v23 = vld [vmem:[#allocation2 + $0x1a] sm:$0xff]  ;;  %v386_v25 = vld [vmem:[#allocation2 + $0x11] sm:$0xff] }
  0x24   : > { %v10147_v24 = vpack.i.bf16 %v385_v21, %v384_v19  ;;  %v387_v26 = vld [vmem:[#allocation2 + $0x19] sm:$0xff]  ;;  %v10162_v27 = vpack.i.bf16 %v411_v23, %v410_v22  ;;  %v432_v31 = vld [vmem:[#allocation2 + $0x3] sm:$0xff]  ;;  %v433_v32 = vld [vmem:[#allocation2 + $0xb] sm:$0xff] }
  0x25   : > { %10158 = vrot.lane.b32.xlu1 %v10157_v20, %s11271_s19  ;;  %v10152_v28 = vpack.i.bf16 %v387_v26, %v386_v25  ;;  %v434_v29 = vld [vmem:[#allocation2 + $0x13] sm:$0xff]  ;;  %v435_v30 = vld [vmem:[#allocation2 + $0x1b] sm:$0xff]  ;;  %v10167_v34 = vpack.i.bf16 %v433_v32, %v432_v31  ;;  %v456_v37 = vld [vmem:[#allocation2 + $0x4] sm:$0xff] }
  0x26   : > { %10148 = vrot.lane.b32.xlu0 %v10147_v24, %s11272_s20  ;;  %v10172_v33 = vpack.i.bf16 %v435_v30, %v434_v29  ;;  %v458_v35 = vld [vmem:[#allocation2 + $0x14] sm:$0xff]  ;;  %v459_v36 = vld [vmem:[#allocation2 + $0x1c] sm:$0xff]  ;;  %v457_v38 = vld [vmem:[#allocation2 + $0xc] sm:$0xff] }
  0x27   : > { %v10182_v39 = vpack.i.bf16 %v459_v36, %v458_v35  ;;  %v10177_v40 = vpack.i.bf16 %v457_v38, %v456_v37  ;;  %v482_v41 = vld [vmem:[#allocation2 + $0x15] sm:$0xff]  ;;  %v483_v42 = vld [vmem:[#allocation2 + $0x1d] sm:$0xff]  ;;  %v480_v43 = vld [vmem:[#allocation2 + $0x5] sm:$0xff] }
  0x28   : > { %v481_v44 = vld [vmem:[#allocation2 + $0xd] sm:$0xff]  ;;  %v10192_v45 = vpack.i.bf16 %v483_v42, %v482_v41  ;;  %v507_v48 = vld [vmem:[#allocation2 + $0x1e] sm:$0xff]  ;;  %v486_v14 = vld [vmem:[#allocation2 + $0x35] sm:$0xff] }
  0x29   : > { %10163 = vrot.lane.b32.xlu1 %v10162_v27, %s11271_s19  ;;  %v10187_v46 = vpack.i.bf16 %v481_v44, %v480_v43  ;;  %v504_v49 = vld [vmem:[#allocation2 + $0x6] sm:$0xff]  ;;  %v505_v50 = vld [vmem:[#allocation2 + $0xe] sm:$0xff]  ;;  %v10202_v51 = vpack.i.bf16 %v507_v48, %v506_v47  ;;  %v391_v54 = vld [vmem:[#allocation2 + $0x39] sm:$0xff] }
  0x2a   : > { %10153 = vrot.lane.b32.xlu0 %v10152_v28, %s11272_s20  ;;  %v10197_v52 = vpack.i.bf16 %v505_v50, %v504_v49  ;;  %v390_v53 = vld [vmem:[#allocation2 + $0x31] sm:$0xff]  ;;  %v388_v55 = vld [vmem:[#allocation2 + $0x21] sm:$0xff]  ;;  %v389_v56 = vld [vmem:[#allocation2 + $0x29] sm:$0xff] }
  0x2b   : > { %v10212_v57 = vpack.i.bf16 %v391_v54, %v390_v53  ;;  %v10207_v58 = vpack.i.bf16 %v389_v56, %v388_v55  ;;  %v414_v59 = vld [vmem:[#allocation2 + $0x32] sm:$0xff]  ;;  %v415_v60 = vld [vmem:[#allocation2 + $0x3a] sm:$0xff]  ;;  %v412_v61 = vld [vmem:[#allocation2 + $0x22] sm:$0xff] }
  0x2c   : > { %v413_v62 = vld [vmem:[#allocation2 + $0x2a] sm:$0xff]  ;;  %v10222_v63 = vpack.i.bf16 %v415_v60, %v414_v59  ;;  %v438_v2 = vld [vmem:[#allocation2 + $0x33] sm:$0xff]  ;;  %v439_v3 = vld [vmem:[#allocation2 + $0x3b] sm:$0xff] }
  0x2d   : > { %10173 = vrot.lane.b32.xlu1 %v10172_v33, %s11273_s21  ;;  %v10217_v1 = vpack.i.bf16 %v413_v62, %v412_v61  ;;  %v436_v4 = vld [vmem:[#allocation2 + $0x23] sm:$0xff]  ;;  %v437_v5 = vld [vmem:[#allocation2 + $0x2b] sm:$0xff]  ;;  %v10232_v6 = vpack.i.bf16 %v439_v3, %v438_v2  ;;  %v462_v8 = vld [vmem:[#allocation2 + $0x34] sm:$0xff] }
  0x2e   : > { %10168 = vrot.lane.b32.xlu0 %v10167_v34, %s11273_s21  ;;  %v10227_v7 = vpack.i.bf16 %v437_v5, %v436_v4  ;;  %v463_v9 = vld [vmem:[#allocation2 + $0x3c] sm:$0xff]  ;;  %v460_v10 = vld [vmem:[#allocation2 + $0x24] sm:$0xff]  ;;  %v461_v11 = vld [vmem:[#allocation2 + $0x2c] sm:$0xff] }
  0x2f   : > { %v10242_v12 = vpack.i.bf16 %v463_v9, %v462_v8  ;;  %v10237_v13 = vpack.i.bf16 %v461_v11, %v460_v10  ;;  %v487_v15 = vld [vmem:[#allocation2 + $0x3d] sm:$0xff]  ;;  %v484_v16 = vld [vmem:[#allocation2 + $0x25] sm:$0xff]  ;;  %v485_v17 = vld [vmem:[#allocation2 + $0x2d] sm:$0xff] }
  0x30   : > { %v10252_v18 = vpack.i.bf16 %v487_v15, %v486_v14  ;;  %v10247_v19 = vpack.i.bf16 %v485_v17, %v484_v16  ;;  %v510_v20 = vld [vmem:[#allocation2 + $0x36] sm:$0xff]  ;;  %v511_v21 = vld [vmem:[#allocation2 + $0x3e] sm:$0xff]  ;;  %v508_v22 = vld [vmem:[#allocation2 + $0x26] sm:$0xff] }
  0x31   : > { %10183 = vrot.lane.b32.xlu1 %v10182_v39, %s11274_s22  ;;  %v509_v23 = vld [vmem:[#allocation2 + $0x2e] sm:$0xff]  ;;  %v10262_v24 = vpack.i.bf16 %v511_v21, %v510_v20  ;;  %v395_v27 = vld [vmem:[#allocation2 + $0x59] sm:$0xff]  ;;  %v392_v29 = vld [vmem:[#allocation2 + $0x41] sm:$0xff] }
  0x32   : > { %10178 = vrot.lane.b32.xlu0 %v10177_v40, %s11274_s22  ;;  %v10257_v25 = vpack.i.bf16 %v509_v23, %v508_v22  ;;  %v394_v26 = vld [vmem:[#allocation2 + $0x51] sm:$0xff]  ;;  %v10507_v28 = vld [vmem:[%s13265_s1] sm:$0xff]   ;;  %v393_v30 = vld [vmem:[#allocation2 + $0x49] sm:$0xff] }
  0x33   : > { %9821 = vmatprep.subr.bf16.mxu0 %v10507_v28  ;;  %v10508_v31 = vld [vmem:[%s13265_s1 + $0x8] sm:$0x3f]   ;;  %v10272_v32 = vpack.i.bf16 %v395_v27, %v394_v26  ;;  %v10267_v33 = vpack.i.bf16 %v393_v30, %v392_v29  ;;  %v418_v34 = vld [vmem:[#allocation2 + $0x52] sm:$0xff]  ;;  %v419_v35 = vld [vmem:[#allocation2 + $0x5a] sm:$0xff] }
  0x34   : > { %9822 = vmatpush3.bf16.msra.mxu0 %v10507_v28  ;;  %v1319_v36 = vsel %vm1317_vm1, %v10508_v31, 0  ;;  %v416_v37 = vld [vmem:[#allocation2 + $0x42] sm:$0xff]  ;;  %v417_v38 = vld [vmem:[#allocation2 + $0x4a] sm:$0xff]  ;;  %v442_v39 = vld [vmem:[#allocation2 + $0x53] sm:$0xff]  ;;  %v10282_v41 = vpack.i.bf16 %v419_v35, %v418_v34 }
  0x35   : > { %10193 = vrot.lane.b32.xlu1 %v10192_v45, %s11275_s23  ;;  %10097 = vmatprep.subr.msk.bf16.mxu0 %vm1317_vm1, %v10508_v31  ;;  %v443_v40 = vld [vmem:[#allocation2 + $0x5b] sm:$0xff]  ;;  %v440_v42 = vld [vmem:[#allocation2 + $0x43] sm:$0xff]  ;;  %v441_v43 = vld [vmem:[#allocation2 + $0x4b] sm:$0xff]  ;;  %v10277_v44 = vpack.i.bf16 %v417_v38, %v416_v37 }
  0x36   : > { %10188 = vrot.lane.b32.xlu0 %v10187_v46, %s11275_s23  ;;  %v466_v45 = vld [vmem:[#allocation2 + $0x54] sm:$0xff]  ;;  %v467_v46 = vld [vmem:[#allocation2 + $0x5c] sm:$0xff]  ;;  %v10292_v47 = vpack.i.bf16 %v443_v40, %v442_v39  ;;  %v464_v48 = vld [vmem:[#allocation2 + $0x44] sm:$0xff]  ;;  %v10287_v50 = vpack.i.bf16 %v441_v43, %v440_v42 }
  0x37   : > { %v465_v49 = vld [vmem:[#allocation2 + $0x4c] sm:$0xff]  ;;  %v10302_v53 = vpack.i.bf16 %v467_v46, %v466_v45  ;;  %v514_v61 = vld [vmem:[#allocation2 + $0x56] sm:$0xff]  ;;  %v396_v3 = vld [vmem:[#allocation2 + $0x61] sm:$0xff] }
  0x38   : > { %9824 = vmatpush3.bf16.msra.mxu0 %v1319_v36  ;;  %v488_v54 = vld [vmem:[#allocation2 + $0x45] sm:$0xff]  ;;  %v489_v55 = vld [vmem:[#allocation2 + $0x4d] sm:$0xff]  ;;  %v10297_v56 = vpack.i.bf16 %v465_v49, %v464_v48  ;;  %v518_v30 = vld [vmem:[#allocation2 + $0x76] sm:$0xff] }
  0x39   : > { %10203 = vrot.lane.b32.xlu1 %v10202_v51, %s11276_s29  ;;  %v490_v51 = vld [vmem:[#allocation2 + $0x55] sm:$0xff]  ;;  %v512_v59 = vld [vmem:[#allocation2 + $0x46] sm:$0xff]  ;;  %v10307_v60 = vpack.i.bf16 %v489_v55, %v488_v54  ;;  %v519_v31 = vld [vmem:[#allocation2 + $0x7e] sm:$0xff] }
  0x3a   : > { %10198 = vrot.lane.b32.xlu0 %v10197_v52, %s11276_s29  ;;  %v491_v52 = vld [vmem:[#allocation2 + $0x5d] sm:$0xff]  ;;  %v513_v62 = vld [vmem:[#allocation2 + $0x4e] sm:$0xff]  ;;  %v492_v27 = vld [vmem:[#allocation2 + $0x65] sm:$0xff]  ;;  %v10382_v38 = vpack.i.bf16 %v519_v31, %v518_v30 }
  0x3b   : > { %v397_v4 = vld [vmem:[#allocation2 + $0x69] sm:$0xff]  ;;  %v10317_v5 = vpack.i.bf16 %v513_v62, %v512_v59  ;;  %v402_v36 = vld [vmem:[#allocation2 + $0x91] sm:$0xff]  ;;  %v403_v37 = vld [vmem:[#allocation2 + $0x99] sm:$0xff] }
  0x3c   : > { %v420_v9 = vld [vmem:[#allocation2 + $0x62] sm:$0xff]  ;;  %v421_v10 = vld [vmem:[#allocation2 + $0x6a] sm:$0xff]  ;;  %v10327_v11 = vpack.i.bf16 %v397_v4, %v396_v3  ;;  %v426_v42 = vld [vmem:[#allocation2 + $0x92] sm:$0xff] }
  0x3d   : > { %10213 = vrot.lane.b32.xlu1 %v10212_v57, %s11272_s20  ;;  %v515_v57 = vld [vmem:[#allocation2 + $0x5e] sm:$0xff]  ;;  %v445_v16 = vld [vmem:[#allocation2 + $0x6b] sm:$0xff]  ;;  %v10337_v17 = vpack.i.bf16 %v421_v10, %v420_v9  ;;  %v450_v48 = vld [vmem:[#allocation2 + $0x93] sm:$0xff] }
  0x3e   : > { %10208 = vrot.lane.b32.xlu0 %v10207_v58, %s11272_s20  ;;  %v10312_v58 = vpack.i.bf16 %v491_v52, %v490_v51  ;;  %v10322_v2 = vpack.i.bf16 %v515_v57, %v514_v61  ;;  %v444_v15 = vld [vmem:[#allocation2 + $0x63] sm:$0xff]  ;;  %v469_v22 = vld [vmem:[#allocation2 + $0x6c] sm:$0xff]  ;;  %v427_v43 = vld [vmem:[#allocation2 + $0x9a] sm:$0xff] }
  0x3f   : > { %v468_v21 = vld [vmem:[#allocation2 + $0x64] sm:$0xff]  ;;  %v10347_v23 = vpack.i.bf16 %v445_v16, %v444_v15  ;;  %v493_v28 = vld [vmem:[#allocation2 + $0x6d] sm:$0xff]  ;;  %v451_v49 = vld [vmem:[#allocation2 + $0x9b] sm:$0xff] }
  0x40   : > { %v10357_v29 = vpack.i.bf16 %v469_v22, %v468_v21  ;;  %v516_v34 = vld [vmem:[#allocation2 + $0x66] sm:$0xff]  ;;  %v517_v35 = vld [vmem:[#allocation2 + $0x6e] sm:$0xff]  ;;  %v475_v55 = vld [vmem:[#allocation2 + $0x9c] sm:$0xff] }
  0x41   : > { %10223 = vrot.lane.b32.xlu1 %v10222_v63, %s11271_s19  ;;  %v398_v63 = vld [vmem:[#allocation2 + $0x71] sm:$0xff]  ;;  %v400_v39 = vld [vmem:[#allocation2 + $0x81] sm:$0xff]  ;;  %v401_v40 = vld [vmem:[#allocation2 + $0x89] sm:$0xff] }
  0x42   : > { %10218 = vrot.lane.b32.xlu0 %v10217_v1, %s11271_s19  ;;  %v399_v1 = vld [vmem:[#allocation2 + $0x79] sm:$0xff]  ;;  %v424_v45 = vld [vmem:[#allocation2 + $0x82] sm:$0xff]  ;;  %v425_v46 = vld [vmem:[#allocation2 + $0x8a] sm:$0xff] }
  0x43   : > { %v10332_v8 = vpack.i.bf16 %v399_v1, %v398_v63  ;;  %v448_v51 = vld [vmem:[#allocation2 + $0x83] sm:$0xff]  ;;  %v449_v52 = vld [vmem:[#allocation2 + $0x8b] sm:$0xff]  ;;  %v474_v54 = vld [vmem:[#allocation2 + $0x94] sm:$0xff] }
  0x44   : > { %v472_v57 = vld [vmem:[#allocation2 + $0x84] sm:$0xff]  ;;  %v10407_v59 = vpack.i.bf16 %v449_v52, %v448_v51  ;;  %v10422_v62 = vpack.i.bf16 %v475_v55, %v474_v54  ;;  %v497_v1 = vld [vmem:[#allocation2 + $0x8d] sm:$0xff]  ;;  %v522_v3 = vld [vmem:[#allocation2 + $0x96] sm:$0xff] }
  0x45   : > { %10233 = vrot.lane.b32.xlu1 %v10232_v6, %s11273_s21  ;;  %v422_v6 = vld [vmem:[#allocation2 + $0x72] sm:$0xff]  ;;  %v499_v61 = vld [vmem:[#allocation2 + $0x9d] sm:$0xff]  ;;  %v496_v63 = vld [vmem:[#allocation2 + $0x85] sm:$0xff] }
  0x46   : > { %10228 = vrot.lane.b32.xlu0 %v10227_v7, %s11273_s21  ;;  %v423_v7 = vld [vmem:[#allocation2 + $0x7a] sm:$0xff]  ;;  %v406_v9 = vld [vmem:[#allocation2 + $0xb1] sm:$0xff]  ;;  %v428_v22 = vld [vmem:[#allocation2 + $0xa2] sm:$0xff] }
  0x47   : > { %v10342_v14 = vpack.i.bf16 %v423_v7, %v422_v6  ;;  %v10427_v6 = vpack.i.bf16 %v497_v1, %v496_v63  ;;  %v523_v7 = vld [vmem:[#allocation2 + $0x9e] sm:$0xff]  ;;  %v11521_v31 = vld [vmem:[#allocation2 + $0xb4] sm:$0xff] }
  0x48   : > { %v407_v10 = vld [vmem:[#allocation2 + $0xb9] sm:$0xff] }
  0x49   : > { %10243 = vrot.lane.b32.xlu1 %v10242_v12, %s11274_s22  ;;  %v446_v12 = vld [vmem:[#allocation2 + $0x73] sm:$0xff] }
  0x4a   : > { %10238 = vrot.lane.b32.xlu0 %v10237_v13, %s11274_s22  ;;  %v447_v13 = vld [vmem:[#allocation2 + $0x7b] sm:$0xff] }
  0x4b   : > { %v10352_v20 = vpack.i.bf16 %v447_v13, %v446_v12  ;;  %v404_v12 = vld [vmem:[#allocation2 + $0xa1] sm:$0xff]  ;;  %v405_v13 = vld [vmem:[#allocation2 + $0xa9] sm:$0xff]  ;;  %v363_v54 = vld [vmem:[#allocation2 + $0x18] sm:$0xff] }
  0x4d   : > { %10253 = vrot.lane.b32.xlu1 %v10252_v18, %s11275_s23  ;;  %v470_v18 = vld [vmem:[#allocation2 + $0x74] sm:$0xff] }
  0x4e   : > { %10248 = vrot.lane.b32.xlu0 %v10247_v19, %s11275_s23  ;;  %v471_v19 = vld [vmem:[#allocation2 + $0x7c] sm:$0xff] }
  0x4f   : > { %v10362_v26 = vpack.i.bf16 %v471_v19, %v470_v18  ;;  %v10447_v18 = vpack.i.bf16 %v405_v13, %v404_v12  ;;  %v430_v19 = vld [vmem:[#allocation2 + $0xb2] sm:$0xff] }
  0x51   : > { %10263 = vrot.lane.b32.xlu1 %v10262_v24, %s11276_s29  ;;  %v494_v24 = vld [vmem:[#allocation2 + $0x75] sm:$0xff] }
  0x52   : > { %10258 = vrot.lane.b32.xlu0 %v10257_v25, %s11276_s29  ;;  %v495_v25 = vld [vmem:[#allocation2 + $0x7d] sm:$0xff] }
  0x55   : > { %10273 = vrot.lane.b32.xlu1 %v10272_v32, %s11272_s20  ;;  %v10372_v32 = vpack.i.bf16 %v495_v25, %v494_v24  ;;  %v454_v25 = vld [vmem:[#allocation2 + $0xb3] sm:$0xff] }
  0x56   : > { %10268 = vrot.lane.b32.xlu0 %v10267_v33, %s11272_s20  ;;  %v10367_v33 = vpack.i.bf16 %v493_v28, %v492_v27  ;;  %v455_v27 = vld [vmem:[#allocation2 + $0xbb] sm:$0xff]  ;;  %v452_v28 = vld [vmem:[#allocation2 + $0xa3] sm:$0xff] }
  0x59   : > { %10283 = vrot.lane.b32.xlu1 %v10282_v41, %s11271_s19  ;;  %v10377_v41 = vpack.i.bf16 %v517_v35, %v516_v34  ;;  %v11529_v35 = vld [vmem:[#allocation2 + $0xac] sm:$0xff] }
  0x5a   : > { %10278 = vrot.lane.b32.xlu0 %v10277_v44, %s11271_s19  ;;  %v10392_v44 = vpack.i.bf16 %v403_v37, %v402_v36  ;;  %v11531_v36 = vld [vmem:[#allocation2 + $0xb5] sm:$0xff]  ;;  %v11533_v37 = vld [vmem:[#allocation2 + $0xbd] sm:$0xff] }
  0x5d   : > { %10293 = vrot.lane.b32.xlu1 %v10292_v47, %s11273_s21  ;;  %v10387_v47 = vpack.i.bf16 %v401_v40, %v400_v39  ;;  %v11537_v39 = vld [vmem:[#allocation2 + $0xa5] sm:$0xff]  ;;  %v11539_v40 = vld [vmem:[#allocation2 + $0xad] sm:$0xff] }
  0x5e   : > { %10288 = vrot.lane.b32.xlu0 %v10287_v50, %s11273_s21  ;;  %v10402_v50 = vpack.i.bf16 %v427_v43, %v426_v42 }
  0x61   : > { %10303 = vrot.lane.b32.xlu1 %v10302_v53, %s11274_s22  ;;  %v10397_v53 = vpack.i.bf16 %v425_v46, %v424_v45  ;;  %v11546_v45 = vld [vmem:[#allocation2 + $0xbe] sm:$0xff]  ;;  %v11548_v46 = vld [vmem:[#allocation2 + $0xa6] sm:$0xff] }
  0x62   : > { %10298 = vrot.lane.b32.xlu0 %v10297_v56, %s11274_s22  ;;  %v10412_v56 = vpack.i.bf16 %v451_v49, %v450_v48  ;;  %v360_v48 = vld [vmem:[#allocation2] sm:$0xff]  ;;  %v361_v49 = vld [vmem:[#allocation2 + $0x8] sm:$0xff] }
  0x65   : > { %10313 = vrot.lane.b32.xlu1 %v10312_v58, %s11275_s23  ;;  %v473_v58 = vld [vmem:[#allocation2 + $0x8c] sm:$0xff] }
  0x66   : > { %10308 = vrot.lane.b32.xlu0 %v10307_v60, %s11275_s23  ;;  %v498_v60 = vld [vmem:[#allocation2 + $0x95] sm:$0xff] }
  0x67   : > { %v10432_v4 = vpack.i.bf16 %v499_v61, %v498_v60 }
  0x69   : > { %10323 = vrot.lane.b32.xlu1 %v10322_v2, %s11276_s29  ;;  %v10417_v2 = vpack.i.bf16 %v473_v58, %v472_v57  ;;  %v10492_v58 = vpack.i.bf16 %v11533_v37, %v11531_v36 }
  0x6a   : > { %10318 = vrot.lane.b32.xlu0 %v10317_v5, %s11276_s29  ;;  %v521_v5 = vld [vmem:[#allocation2 + $0x8e] sm:$0xff] }
  0x6d   : > { %10333 = vrot.lane.b32.xlu1 %v10332_v8, %s11272_s20  ;;  %v520_v8 = vld [vmem:[#allocation2 + $0x86] sm:$0xff] }
  0x6e   : > { %10328 = vrot.lane.b32.xlu0 %v10327_v11, %s11272_s20  ;;  %v10442_v11 = vpack.i.bf16 %v523_v7, %v522_v3 }
  0x71   : > { %10343 = vrot.lane.b32.xlu1 %v10342_v14, %s11271_s19  ;;  %v10437_v14 = vpack.i.bf16 %v521_v5, %v520_v8 }
  0x72   : > { %10338 = vrot.lane.b32.xlu0 %v10337_v17, %s11271_s19  ;;  %v10452_v17 = vpack.i.bf16 %v407_v10, %v406_v9 }
  0x75   : > { %10353 = vrot.lane.b32.xlu1 %v10352_v20, %s11273_s21  ;;  %v431_v20 = vld [vmem:[#allocation2 + $0xba] sm:$0xff] }
  0x76   : > { %10348 = vrot.lane.b32.xlu0 %v10347_v23, %s11273_s21  ;;  %v429_v23 = vld [vmem:[#allocation2 + $0xaa] sm:$0xff] }
  0x77   : > { %v10457_v30 = vpack.i.bf16 %v429_v23, %v428_v22 }
  0x79   : > { %10363 = vrot.lane.b32.xlu1 %v10362_v26, %s11274_s22  ;;  %v10462_v26 = vpack.i.bf16 %v431_v20, %v430_v19 }
  0x7a   : > { %10358 = vrot.lane.b32.xlu0 %v10357_v29, %s11274_s22  ;;  %v453_v29 = vld [vmem:[#allocation2 + $0xab] sm:$0xff] }
  0x7b   : > { %v10467_v52 = vpack.i.bf16 %v453_v29, %v452_v28 }
  0x7d   : > { %10373 = vrot.lane.b32.xlu1 %v10372_v32, %s11275_s23  ;;  %v11523_v32 = vld [vmem:[#allocation2 + $0xbc] sm:$0xff] }
  0x7e   : > { %10368 = vrot.lane.b32.xlu0 %v10367_v33, %s11275_s23  ;;  %v11525_v33 = vld [vmem:[#allocation2 + $0xa4] sm:$0xff] }
  0x7f   : > { %v10477_v57 = vpack.i.bf16 %v11529_v35, %v11525_v33 }
  0x81   : > { %10383 = vrot.lane.b32.xlu1 %v10382_v38, %s11276_s29 }
  0x82   : > { %10378 = vrot.lane.b32.xlu0 %v10377_v41, %s11276_s29  ;;  %v11541_v41 = vld [vmem:[#allocation2 + $0xb6] sm:$0xff] }
  0x83   : > { %v10502_v63 = vpack.i.bf16 %v11546_v45, %v11541_v41 }
  0x85   : > { %10393 = vrot.lane.b32.xlu1 %v10392_v44, %s11272_s20  ;;  %v10472_v44 = vpack.i.bf16 %v455_v27, %v454_v25 }
  0x86   : > { %10388 = vrot.lane.b32.xlu0 %v10387_v47, %s11272_s20  ;;  %v11550_v47 = vld [vmem:[#allocation2 + $0xae] sm:$0xff] }
  0x87   : > { %v10497_v1 = vpack.i.bf16 %v11550_v47, %v11548_v46 }
  0x89   : > { %10403 = vrot.lane.b32.xlu1 %v10402_v50, %s11271_s19 }
  0x8a   : > { %10398 = vrot.lane.b32.xlu0 %v10397_v53, %s11271_s19  ;;  %v362_v53 = vld [vmem:[#allocation2 + $0x10] sm:$0xff] }
  0x8d   : > { %10413 = vrot.lane.b32.xlu1 %v10412_v56, %s11273_s21  ;;  %v10482_v56 = vpack.i.bf16 %v11523_v32, %v11521_v31 }
  0x8e   : > { %10408 = vrot.lane.b32.xlu0 %v10407_v59, %s11273_s21  ;;  %v10487_v59 = vpack.i.bf16 %v11539_v40, %v11537_v39 }
  0x91   : > { %10423 = vrot.lane.b32.xlu1 %v10422_v62, %s11274_s22 }
  0x92   : > { %10418 = vrot.lane.b32.xlu0 %v10417_v2, %s11274_s22 }
  0x95   : > { %10433 = vrot.lane.b32.xlu1 %v10432_v4, %s11275_s23 }
  0x96   : > { %10428 = vrot.lane.b32.xlu0 %v10427_v6, %s11275_s23 }
  0x97   : > { %v11511_v15 = vpop.permute.xlu1 %10158 }
  0x98   : > { %v11513_v16 = vpop.permute.xlu0 %10148  ;;  %v10161_v60 = vunpack.i.h.bf16 %v11511_v15  ;;  %v10160_v61 = vunpack.i.l.bf16 %v11511_v15 }
  0x99   : > { %10443 = vrot.lane.b32.xlu1 %v10442_v11, %s11276_s29  ;;  %v10151_v42 = vunpack.i.h.bf16 %v11513_v16  ;;  %v10150_v43 = vunpack.i.l.bf16 %v11513_v16 }
  0x9a   : > { %10438 = vrot.lane.b32.xlu0 %v10437_v14, %s11276_s29 }
  0x9b   : > { %v11517_v21 = vpop.permute.xlu1 %10163  ;;  %v1104_v2 = vsel %vm293_vm0, %v360_v48, %v10150_v43  ;;  %v1105_v3 = vsel %vm293_vm0, %v361_v49, %v10151_v42 }
  0x9c   : > { %v10154_v24 = vpop.permute.xlu0 %10153  ;;  %v10166_v4 = vunpack.i.h.bf16 %v11517_v21  ;;  %v10165_v5 = vunpack.i.l.bf16 %v11517_v21  ;;  %v1129_v15 = vsel %vm1128_vm2, %v1104_v2, %v10160_v61  ;;  %v1130_v16 = vsel %vm1128_vm2, %v1105_v3, %v10161_v60  ;;  %v365_v2 = vld [vmem:[#allocation2 + $0x28] sm:$0xff] }
  0x9d   : > { %10453 = vrot.lane.b32.xlu1 %v10452_v17, %s11272_s20  ;;  %v10156_v50 = vunpack.i.h.bf16 %v10154_v24  ;;  %v10155_v51 = vunpack.i.l.bf16 %v10154_v24 }
  0x9e   : > { %10448 = vrot.lane.b32.xlu0 %v10447_v18, %s11272_s20  ;;  %s11280_s20 = smov [#allocation6]  }
  0x9f   : > { %v11527_v34 = vpop.permute.xlu1 %10173  ;;  %v1107_v6 = vsel %vm293_vm0, %v363_v54, %v10156_v50  ;;  %v1106_v7 = vsel %vm293_vm0, %v362_v53, %v10155_v51 }
  0xa0   : > { %v11535_v38 = vpop.permute.xlu0 %10168  ;;  %v10176_v8 = vunpack.i.h.bf16 %v11527_v34  ;;  %v10175_v9 = vunpack.i.l.bf16 %v11527_v34  ;;  %v1131_v20 = vsel %vm1128_vm2, %v1106_v7, %v10165_v5  ;;  %v1132_v21 = vsel %vm1128_vm2, %v1107_v6, %v10166_v4 }
  0xa1   : > { %10463 = vrot.lane.b32.xlu1 %v10462_v26, %s11271_s19  ;;  %v10171_v10 = vunpack.i.h.bf16 %v11535_v38  ;;  %v10170_v11 = vunpack.i.l.bf16 %v11535_v38 }
  0xa2   : > { %10458 = vrot.lane.b32.xlu0 %v10457_v30, %s11271_s19  ;;  %v1156_v24 = vsel %vm1153_vm3, %v1131_v20, %v10175_v9  ;;  %v1157_v25 = vsel %vm1153_vm3, %v1132_v21, %v10176_v8 }
  0xa3   : > { %v10184_v55 = vpop.permute.xlu1 %10183  ;;  %v1154_v28 = vsel %vm1153_vm3, %v1129_v15, %v10170_v11  ;;  %v1155_v29 = vsel %vm1153_vm3, %v1130_v16, %v10171_v10 }
  0xa4   : > { %v10179_v62 = vpop.permute.xlu0 %10178  ;;  %v10186_v12 = vunpack.i.h.bf16 %v10184_v55  ;;  %v10185_v13 = vunpack.i.l.bf16 %v10184_v55 }
  0xa5   : > { %10473 = vrot.lane.b32.xlu1 %v10472_v44, %s11273_s21  ;;  %v10181_v17 = vunpack.i.h.bf16 %v10179_v62  ;;  %v10180_v18 = vunpack.i.l.bf16 %v10179_v62  ;;  %v364_v62 = vld [vmem:[#allocation2 + $0x20] sm:$0xff] }
  0xa6   : > { %10468 = vrot.lane.b32.xlu0 %v10467_v52, %s11273_s21  ;;  %v1181_v30 = vsel %vm1178_vm4, %v1156_v24, %v10185_v13  ;;  %v1182_v31 = vsel %vm1178_vm4, %v1157_v25, %v10186_v12  ;;  %s11210_s21 = sshll.u32 %s11280_s20, 4  ;;  %s11211_s21 = int_to_ptr.vmem [resolvable:$false] %s11210_s21 }
  0xa7   : > { %v10194_v14 = vpop.permute.xlu1 %10193  ;;  %v1179_v33 = vsel %vm1178_vm4, %v1154_v28, %v10180_v18  ;;  %v1180_v34 = vsel %vm1178_vm4, %v1155_v29, %v10181_v17 }
  0xa8   : > { %v10189_v19 = vpop.permute.xlu0 %10188  ;;  %v10196_v22 = vunpack.i.h.bf16 %v10194_v14  ;;  %v10195_v23 = vunpack.i.l.bf16 %v10194_v14 }
  0xa9   : > { %10483 = vrot.lane.b32.xlu1 %v10482_v56, %s11274_s22  ;;  %v10191_v26 = vunpack.i.h.bf16 %v10189_v19  ;;  %v10190_v27 = vunpack.i.l.bf16 %v10189_v19 }
  0xaa   : > { %10478 = vrot.lane.b32.xlu0 %v10477_v57, %s11274_s22  ;;  %v1206_v38 = vsel %vm1203_vm5, %v1181_v30, %v10195_v23  ;;  %v1207_v39 = vsel %vm1203_vm5, %v1182_v31, %v10196_v22  ;;  %s11212_s22 = scalar_lea.vmem %s11211_s21, 256 }
  0xab   : > { %v10204_v32 = vpop.permute.xlu1 %10203  ;;  %v1204_v44 = vsel %vm1203_vm5, %v1179_v33, %v10190_v27  ;;  %v1205_v45 = vsel %vm1203_vm5, %v1180_v34, %v10191_v26 }
  0xac   : > { %v10206_v35 = vunpack.i.h.bf16 %v10204_v32  ;;  %v10205_v36 = vunpack.i.l.bf16 %v10204_v32  ;;  %v10199_v37 = vpop.permute.xlu0 %10198 }
  0xad   : > { %v10201_v40 = vunpack.i.h.bf16 %v10199_v37  ;;  %v10200_v41 = vunpack.i.l.bf16 %v10199_v37  ;;  %10493 = vrot.lane.b32.xlu1 %v10492_v58, %s11275_s23  ;;  %v366_v58 = vld [vmem:[#allocation2 + $0x30] sm:$0xff] }
  0xae   : > { %v1231_v42 = vsel %vm1228_vm6, %v1206_v38, %v10205_v36  ;;  %v1232_v43 = vsel %vm1228_vm6, %v1207_v39, %v10206_v35  ;;  %10488 = vrot.lane.b32.xlu0 %v10487_v59, %s11275_s23  ;;  %v367_v59 = vld [vmem:[#allocation2 + $0x38] sm:$0xff]  ;;  %s272_s23 = sand.u32 1, %s11260_s25  }
  0xaf   : > { %v1254_v46 = vpack.c.bf16 %v1232_v43, %v1231_v42  ;;  %v10214_v47 = vpop.permute.xlu1 %10213  ;;  %v1229_v48 = vsel %vm1228_vm6, %v1204_v44, %v10200_v41  ;;  %v1230_v49 = vsel %vm1228_vm6, %v1205_v45, %v10201_v40  ;;  %s8834_s19 = scalar_lea.sflag [#allocation7], %s272_s23 }
  0xb0   : > { %v10209_v50 = vpop.permute.xlu0 %10208  ;;  %v1253_v51 = vpack.c.bf16 %v1230_v49, %v1229_v48  ;;  %v10216_v56 = vunpack.i.h.bf16 %v10214_v47  ;;  %v10215_v57 = vunpack.i.l.bf16 %v10214_v47 }
  0xb1   : > { %10503 = vrot.lane.b32.xlu1 %v10502_v63, %s11276_s29  ;;  %v10211_v60 = vunpack.i.h.bf16 %v10209_v50  ;;  %v10210_v61 = vunpack.i.l.bf16 %v10209_v50 }
  0xb2   : > { %10498 = vrot.lane.b32.xlu0 %v10497_v1, %s11276_s29  ;;  %9825 = vmatprep.mubr.msk.bf16.mxu0 %vm1280_vm7, %v1253_v51  ;;  %v1111_v5 = vsel %vm293_vm0, %v367_v59, %v10216_v56  ;;  %v1110_v6 = vsel %vm293_vm0, %v366_v58, %v10215_v57  ;;  %s8910_s29 = sshll.u32 %s272_s23, 3 }
  0xb3   : > { %9826 = vmatmul.mubr.msk.bf16.vlgmr.msra.gmra.mrb[0].mxu0 %vm1280_vm7, %v1254_v46  ;;  %v10224_v52 = vpop.permute.xlu1 %10223  ;;  %v1109_v9 = vsel %vm293_vm0, %v365_v2, %v10211_v60  ;;  %v1108_v10 = vsel %vm293_vm0, %v364_v62, %v10210_v61  ;;  %v370_v61 = vld [vmem:[#allocation2 + $0x50] sm:$0xff]  ;;  %v371_v62 = vld [vmem:[#allocation2 + $0x58] sm:$0xff]  ;;  %s274_s14 = scalar_lea.vmem [#allocation6], %s8910_s29 }
  0xb4   : > { %v10219_v53 = vpop.permute.xlu0 %10218  ;;  %v10226_v63 = vunpack.i.h.bf16 %v10224_v52  ;;  %v10225_v4 = vunpack.i.l.bf16 %v10224_v52  ;;  %s8847_s15 = sshll.u32 %s274_s14, 4  ;;  %s13224_s15 = int_to_ptr.vmem [resolvable:$true] %s8847_s15 }
  0xb5   : > { %v10221_v7 = vunpack.i.h.bf16 %v10219_v53  ;;  %v10220_v8 = vunpack.i.l.bf16 %v10219_v53  ;;  %s11206_s28 = scalar_lea.vmem %s13224_s15, 128  ;;  %p11213_p0 = scmp.lt.s32.totalorder %s13224_s15, %s11211_s21 }
  0xb6   : > { %v1135_v18 = vsel %vm1128_vm2, %v1110_v6, %v10225_v4  ;;  %v1136_v19 = vsel %vm1128_vm2, %v1111_v5, %v10226_v63  ;;  %v368_v63 = vld [vmem:[#allocation2 + $0x40] sm:$0xff]  ;;  %v369_v4 = vld [vmem:[#allocation2 + $0x48] sm:$0xff]  ;;  %p11207_p11 = scmp.ne.s32.totalorder %s13224_s15, %s11206_s28  ;;  %p11214_p1 = scmp.lt.s32.totalorder %s11212_s22, %s11206_s28 }
  0xb7   : > { %v10234_v54 = vpop.permute.xlu1 %10233  ;;  %v1133_v23 = vsel %vm1128_vm2, %v1108_v10, %v10220_v8  ;;  %v1134_v24 = vsel %vm1128_vm2, %v1109_v9, %v10221_v7 }
  0xb8   : > { %v10229_v55 = vpop.permute.xlu0 %10228  ;;  %v10236_v11 = vunpack.i.h.bf16 %v10234_v54  ;;  %v10235_v12 = vunpack.i.l.bf16 %v10234_v54  ;;  %p11208_p12 = pnand %p11207_p11, %p11359_p5  ;;  %p11215_p2 = por %p11214_p1, %p11213_p0 }
  0xb9   : > { %v10231_v13 = vunpack.i.h.bf16 %v10229_v55  ;;  %v10230_v14 = vunpack.i.l.bf16 %v10229_v55 }
  0xba   : > { %v1160_v27 = vsel %vm1153_vm3, %v1135_v18, %v10235_v12  ;;  %v1161_v28 = vsel %vm1153_vm3, %v1136_v19, %v10236_v11  ;;  %p11209_p13 = pneg %p11208_p12 }
  0xbb   : > { %v10244_v3 = vpop.permute.xlu1 %10243  ;;  %v1158_v31 = vsel %vm1153_vm3, %v1133_v23, %v10230_v14  ;;  %v1159_v32 = vsel %vm1153_vm3, %v1134_v24, %v10231_v13 }
  0xbc   : > { %v10239_v1 = vpop.permute.xlu0 %10238  ;;  %v10246_v15 = vunpack.i.h.bf16 %v10244_v3  ;;  %v10245_v16 = vunpack.i.l.bf16 %v10244_v3  ;;  %p11216_p3 = pnand %p11215_p2, %p11209_p13 }
  0xbd   : > { %v10241_v20 = vunpack.i.h.bf16 %v10239_v1  ;;  %v10240_v21 = vunpack.i.l.bf16 %v10239_v1 }
  0xbe   : > { %v1185_v33 = vsel %vm1178_vm4, %v1160_v27, %v10245_v16  ;;  %v1186_v34 = vsel %vm1178_vm4, %v1161_v28, %v10246_v15 }
  0xbf   : > { %v10254_v17 = vpop.permute.xlu1 %10253  ;;  %v1183_v36 = vsel %vm1178_vm4, %v1158_v31, %v10240_v21  ;;  %v1184_v37 = vsel %vm1178_vm4, %v1159_v32, %v10241_v20 }
  0xc0   : > { %v10249_v22 = vpop.permute.xlu0 %10248  ;;  %v10256_v25 = vunpack.i.h.bf16 %v10254_v17  ;;  %v10255_v26 = vunpack.i.l.bf16 %v10254_v17 }
  0xc1   : > { %v10251_v29 = vunpack.i.h.bf16 %v10249_v22  ;;  %v10250_v30 = vunpack.i.l.bf16 %v10249_v22 }
  0xc2   : > { %v1210_v41 = vsel %vm1203_vm5, %v1185_v33, %v10255_v26  ;;  %v1211_v42 = vsel %vm1203_vm5, %v1186_v34, %v10256_v25 }
  0xc3   : > { %v10264_v35 = vpop.permute.xlu1 %10263  ;;  %v1208_v45 = vsel %vm1203_vm5, %v1183_v36, %v10250_v30  ;;  %v1209_v46 = vsel %vm1203_vm5, %v1184_v37, %v10251_v29 }
  0xc4   : > { %v10266_v38 = vunpack.i.h.bf16 %v10264_v35  ;;  %v10265_v39 = vunpack.i.l.bf16 %v10264_v35  ;;  %v10259_v40 = vpop.permute.xlu0 %10258 }
  0xc5   : > { %v10261_v43 = vunpack.i.h.bf16 %v10259_v40  ;;  %v10260_v44 = vunpack.i.l.bf16 %v10259_v40 }
  0xc6   : > { %v1235_v47 = vsel %vm1228_vm6, %v1210_v41, %v10265_v39  ;;  %v1236_v48 = vsel %vm1228_vm6, %v1211_v42, %v10266_v38 }
  0xc7   : > { %v1256_v49 = vpack.c.bf16 %v1236_v48, %v1235_v47  ;;  %v1233_v50 = vsel %vm1228_vm6, %v1208_v45, %v10260_v44  ;;  %v1234_v51 = vsel %vm1228_vm6, %v1209_v46, %v10261_v43  ;;  %v10274_v52 = vpop.permute.xlu1 %10273 }
  0xc8   : > { %v1255_v53 = vpack.c.bf16 %v1234_v51, %v1233_v50  ;;  %v10269_v54 = vpop.permute.xlu0 %10268  ;;  %v10276_v59 = vunpack.i.h.bf16 %v10274_v52  ;;  %v10275_v60 = vunpack.i.l.bf16 %v10274_v52 }
  0xc9   : > { %v10271_v2 = vunpack.i.h.bf16 %v10269_v54  ;;  %v10270_v3 = vunpack.i.l.bf16 %v10269_v54 }
  0xca   : > { %9829 = vmatprep.mubr.msk.bf16.mxu0 %vm1280_vm7, %v1255_v53  ;;  %v1115_v8 = vsel %vm293_vm0, %v371_v62, %v10276_v59  ;;  %v1114_v9 = vsel %vm293_vm0, %v370_v61, %v10275_v60 }
  0xcb   : > { %9830 = vmatmul.mubr.msk.bf16.gmra.mrb[4].mxu0 %vm1280_vm7, %v1256_v49  ;;  %v10284_v55 = vpop.permute.xlu1 %10283  ;;  %v1113_v12 = vsel %vm293_vm0, %v369_v4, %v10271_v2  ;;  %v1112_v13 = vsel %vm293_vm0, %v368_v63, %v10270_v3  ;;  %v374_v3 = vld [vmem:[#allocation2 + $0x70] sm:$0xff]  ;;  %v375_v63 = vld [vmem:[#allocation2 + $0x78] sm:$0xff] }
  0xcc   : > { %v10279_v56 = vpop.permute.xlu0 %10278  ;;  %v10286_v5 = vunpack.i.h.bf16 %v10284_v55  ;;  %v10285_v6 = vunpack.i.l.bf16 %v10284_v55 }
  0xcd   : > { %v10281_v10 = vunpack.i.h.bf16 %v10279_v56  ;;  %v10280_v11 = vunpack.i.l.bf16 %v10279_v56 }
  0xce   : > { %v1139_v21 = vsel %vm1128_vm2, %v1114_v9, %v10285_v6  ;;  %v1140_v22 = vsel %vm1128_vm2, %v1115_v8, %v10286_v5  ;;  %v372_v5 = vld [vmem:[#allocation2 + $0x60] sm:$0xff]  ;;  %v373_v6 = vld [vmem:[#allocation2 + $0x68] sm:$0xff] }
  0xcf   : > { %v10294_v57 = vpop.permute.xlu1 %10293  ;;  %v1137_v26 = vsel %vm1128_vm2, %v1112_v13, %v10280_v11  ;;  %v1138_v27 = vsel %vm1128_vm2, %v1113_v12, %v10281_v10 }
  0xd0   : > { %v10289_v58 = vpop.permute.xlu0 %10288  ;;  %v10296_v14 = vunpack.i.h.bf16 %v10294_v57  ;;  %v10295_v15 = vunpack.i.l.bf16 %v10294_v57 }
  0xd1   : > { %v10291_v16 = vunpack.i.h.bf16 %v10289_v58  ;;  %v10290_v17 = vunpack.i.l.bf16 %v10289_v58 }
  0xd2   : > { %v1164_v30 = vsel %vm1153_vm3, %v1139_v21, %v10295_v15  ;;  %v1165_v31 = vsel %vm1153_vm3, %v1140_v22, %v10296_v14 }
  0xd3   : > { %v10304_v1 = vpop.permute.xlu1 %10303  ;;  %v1162_v34 = vsel %vm1153_vm3, %v1137_v26, %v10290_v17  ;;  %v1163_v35 = vsel %vm1153_vm3, %v1138_v27, %v10291_v16 }
  0xd4   : > { %v10299_v7 = vpop.permute.xlu0 %10298  ;;  %v10306_v18 = vunpack.i.h.bf16 %v10304_v1  ;;  %v10305_v19 = vunpack.i.l.bf16 %v10304_v1 }
  0xd5   : > { %v10301_v23 = vunpack.i.h.bf16 %v10299_v7  ;;  %v10300_v24 = vunpack.i.l.bf16 %v10299_v7 }
  0xd6   : > { %v1189_v36 = vsel %vm1178_vm4, %v1164_v30, %v10305_v19  ;;  %v1190_v37 = vsel %vm1178_vm4, %v1165_v31, %v10306_v18 }
  0xd7   : > { %v10314_v20 = vpop.permute.xlu1 %10313  ;;  %v1187_v39 = vsel %vm1178_vm4, %v1162_v34, %v10300_v24  ;;  %v1188_v40 = vsel %vm1178_vm4, %v1163_v35, %v10301_v23 }
  0xd8   : > { %v10309_v25 = vpop.permute.xlu0 %10308  ;;  %v10316_v28 = vunpack.i.h.bf16 %v10314_v20  ;;  %v10315_v29 = vunpack.i.l.bf16 %v10314_v20 }
  0xd9   : > { %v10311_v32 = vunpack.i.h.bf16 %v10309_v25  ;;  %v10310_v33 = vunpack.i.l.bf16 %v10309_v25 }
  0xda   : > { %v1214_v44 = vsel %vm1203_vm5, %v1189_v36, %v10315_v29  ;;  %v1215_v45 = vsel %vm1203_vm5, %v1190_v37, %v10316_v28 }
  0xdb   : > { %v10324_v38 = vpop.permute.xlu1 %10323  ;;  %v1212_v48 = vsel %vm1203_vm5, %v1187_v39, %v10310_v33  ;;  %v1213_v49 = vsel %vm1203_vm5, %v1188_v40, %v10311_v32 }
  0xdc   : > { %v10326_v41 = vunpack.i.h.bf16 %v10324_v38  ;;  %v10325_v42 = vunpack.i.l.bf16 %v10324_v38  ;;  %v10319_v43 = vpop.permute.xlu0 %10318 }
  0xdd   : > { %v10321_v46 = vunpack.i.h.bf16 %v10319_v43  ;;  %v10320_v47 = vunpack.i.l.bf16 %v10319_v43 }
  0xde   : > { %v1239_v50 = vsel %vm1228_vm6, %v1214_v44, %v10325_v42  ;;  %v1240_v51 = vsel %vm1228_vm6, %v1215_v45, %v10326_v41 }
  0xdf   : > { %v1258_v52 = vpack.c.bf16 %v1240_v51, %v1239_v50  ;;  %v1237_v53 = vsel %vm1228_vm6, %v1212_v48, %v10320_v47  ;;  %v1238_v54 = vsel %vm1228_vm6, %v1213_v49, %v10321_v46  ;;  %v10334_v55 = vpop.permute.xlu1 %10333 }
  0xe0   : > { %v1257_v56 = vpack.c.bf16 %v1238_v54, %v1237_v53  ;;  %v10329_v57 = vpop.permute.xlu0 %10328  ;;  %v10336_v62 = vunpack.i.h.bf16 %v10334_v55  ;;  %v10335_v2 = vunpack.i.l.bf16 %v10334_v55 }
  0xe1   : > { %v10331_v4 = vunpack.i.h.bf16 %v10329_v57  ;;  %v10330_v1 = vunpack.i.l.bf16 %v10329_v57 }
  0xe2   : > { %9833 = vmatprep.mubr.msk.bf16.mxu0 %vm1280_vm7, %v1257_v56  ;;  %v1119_v11 = vsel %vm293_vm0, %v375_v63, %v10336_v62  ;;  %v1118_v12 = vsel %vm293_vm0, %v374_v3, %v10335_v2 }
  0xe3   : > { %9834 = vmatmul.mubr.msk.bf16.gmra.mrb[8].mxu0 %vm1280_vm7, %v1258_v52  ;;  %v10344_v58 = vpop.permute.xlu1 %10343  ;;  %v1117_v15 = vsel %vm293_vm0, %v373_v6, %v10331_v4  ;;  %v1116_v16 = vsel %vm293_vm0, %v372_v5, %v10330_v1  ;;  %v378_v1 = vld [vmem:[#allocation2 + $0x90] sm:$0xff]  ;;  %v379_v5 = vld [vmem:[#allocation2 + $0x98] sm:$0xff] }
  0xe4   : > { %v10339_v59 = vpop.permute.xlu0 %10338  ;;  %v10346_v8 = vunpack.i.h.bf16 %v10344_v58  ;;  %v10345_v9 = vunpack.i.l.bf16 %v10344_v58 }
  0xe5   : > { %v10341_v13 = vunpack.i.h.bf16 %v10339_v59  ;;  %v10340_v14 = vunpack.i.l.bf16 %v10339_v59 }
  0xe6   : > { %v1143_v24 = vsel %vm1128_vm2, %v1118_v12, %v10345_v9  ;;  %v1144_v25 = vsel %vm1128_vm2, %v1119_v11, %v10346_v8  ;;  %v376_v8 = vld [vmem:[#allocation2 + $0x80] sm:$0xff]  ;;  %v377_v9 = vld [vmem:[#allocation2 + $0x88] sm:$0xff] }
  0xe7   : > { %v10354_v60 = vpop.permute.xlu1 %10353  ;;  %v1141_v29 = vsel %vm1128_vm2, %v1116_v16, %v10340_v14  ;;  %v1142_v30 = vsel %vm1128_vm2, %v1117_v15, %v10341_v13 }
  0xe8   : > { %v10349_v61 = vpop.permute.xlu0 %10348  ;;  %v10356_v17 = vunpack.i.h.bf16 %v10354_v60  ;;  %v10355_v18 = vunpack.i.l.bf16 %v10354_v60 }
  0xe9   : > { %v10351_v19 = vunpack.i.h.bf16 %v10349_v61  ;;  %v10350_v20 = vunpack.i.l.bf16 %v10349_v61 }
  0xea   : > { %v1168_v33 = vsel %vm1153_vm3, %v1143_v24, %v10355_v18  ;;  %v1169_v34 = vsel %vm1153_vm3, %v1144_v25, %v10356_v17 }
  0xeb   : > { %v10364_v7 = vpop.permute.xlu1 %10363  ;;  %v1166_v37 = vsel %vm1153_vm3, %v1141_v29, %v10350_v20  ;;  %v1167_v38 = vsel %vm1153_vm3, %v1142_v30, %v10351_v19 }
  0xec   : > { %v10359_v10 = vpop.permute.xlu0 %10358  ;;  %v10366_v21 = vunpack.i.h.bf16 %v10364_v7  ;;  %v10365_v22 = vunpack.i.l.bf16 %v10364_v7 }
  0xed   : > { %v10361_v26 = vunpack.i.h.bf16 %v10359_v10  ;;  %v10360_v27 = vunpack.i.l.bf16 %v10359_v10 }
  0xee   : > { %v1193_v39 = vsel %vm1178_vm4, %v1168_v33, %v10365_v22  ;;  %v1194_v40 = vsel %vm1178_vm4, %v1169_v34, %v10366_v21 }
  0xef   : > { %v10374_v23 = vpop.permute.xlu1 %10373  ;;  %v1191_v42 = vsel %vm1178_vm4, %v1166_v37, %v10360_v27  ;;  %v1192_v43 = vsel %vm1178_vm4, %v1167_v38, %v10361_v26 }
  0xf0   : > { %v10369_v28 = vpop.permute.xlu0 %10368  ;;  %v10376_v31 = vunpack.i.h.bf16 %v10374_v23  ;;  %v10375_v32 = vunpack.i.l.bf16 %v10374_v23 }
  0xf1   : > { %v10371_v35 = vunpack.i.h.bf16 %v10369_v28  ;;  %v10370_v36 = vunpack.i.l.bf16 %v10369_v28 }
  0xf2   : > { %v1218_v47 = vsel %vm1203_vm5, %v1193_v39, %v10375_v32  ;;  %v1219_v48 = vsel %vm1203_vm5, %v1194_v40, %v10376_v31 }
  0xf3   : > { %v10384_v41 = vpop.permute.xlu1 %10383  ;;  %v1216_v51 = vsel %vm1203_vm5, %v1191_v42, %v10370_v36  ;;  %v1217_v52 = vsel %vm1203_vm5, %v1192_v43, %v10371_v35 }
  0xf4   : > { %v10386_v44 = vunpack.i.h.bf16 %v10384_v41  ;;  %v10385_v45 = vunpack.i.l.bf16 %v10384_v41  ;;  %v10379_v46 = vpop.permute.xlu0 %10378 }
  0xf5   : > { %v10381_v49 = vunpack.i.h.bf16 %v10379_v46  ;;  %v10380_v50 = vunpack.i.l.bf16 %v10379_v46 }
  0xf6   : > { %v1243_v53 = vsel %vm1228_vm6, %v1218_v47, %v10385_v45  ;;  %v1244_v54 = vsel %vm1228_vm6, %v1219_v48, %v10386_v44 }
  0xf7   : > { %v1260_v55 = vpack.c.bf16 %v1244_v54, %v1243_v53  ;;  %v1241_v56 = vsel %vm1228_vm6, %v1216_v51, %v10380_v50  ;;  %v1242_v57 = vsel %vm1228_vm6, %v1217_v52, %v10381_v49  ;;  %v10394_v58 = vpop.permute.xlu1 %10393 }
  0xf8   : > { %v1259_v59 = vpack.c.bf16 %v1242_v57, %v1241_v56  ;;  %v10389_v60 = vpop.permute.xlu0 %10388  ;;  %v10396_v63 = vunpack.i.h.bf16 %v10394_v58  ;;  %v10395_v4 = vunpack.i.l.bf16 %v10394_v58 }
  0xf9   : > { %v10391_v6 = vunpack.i.h.bf16 %v10389_v60  ;;  %v10390_v7 = vunpack.i.l.bf16 %v10389_v60 }
  0xfa   : > { %9837 = vmatprep.mubr.msk.bf16.mxu0 %vm1280_vm7, %v1259_v59  ;;  %v1123_v14 = vsel %vm293_vm0, %v379_v5, %v10396_v63  ;;  %v1122_v15 = vsel %vm293_vm0, %v378_v1, %v10395_v4  ;;  %v10509_v63 = vld [vmem:[%s13266_s2] ss:$8 sps:$4 sm:$0xff]   ;;  %v10514_v5 = vld [vmem:[%s13266_s2 + $0x14] ss:$8 sps:$4 sm:$0xff]  }
  0xfb   : > { %9838 = vmatmul.mubr.msk.bf16.gmra.mrb[12].mxu0 %vm1280_vm7, %v1260_v55  ;;  %v10404_v61 = vpop.permute.xlu1 %10403  ;;  %v1121_v18 = vsel %vm293_vm0, %v377_v9, %v10391_v6  ;;  %v1120_v19 = vsel %vm293_vm0, %v376_v8, %v10390_v7  ;;  %v10512_v6 = vld [vmem:[%s13266_s2 + $0x10] ss:$8 sps:$4 sm:$0xff]  }
  0xfc   : > { %v10399_v62 = vpop.permute.xlu0 %10398  ;;  %v10406_v11 = vunpack.i.h.bf16 %v10404_v61  ;;  %v10405_v12 = vunpack.i.l.bf16 %v10404_v61 }
  0xfd   : > { %v10401_v16 = vunpack.i.h.bf16 %v10399_v62  ;;  %v10400_v17 = vunpack.i.l.bf16 %v10399_v62 }
  0xfe   : > { %v1147_v27 = vsel %vm1128_vm2, %v1122_v15, %v10405_v12  ;;  %v1148_v28 = vsel %vm1128_vm2, %v1123_v14, %v10406_v11  ;;  %v10517_v11 = vld [vmem:[%s13266_s2 + $0x24] ss:$8 sps:$4 sm:$0xff]   ;;  %v382_v12 = vld [vmem:[#allocation2 + $0xb0] sm:$0xff] }
  0xff   : > { %v10414_v2 = vpop.permute.xlu1 %10413  ;;  %v1145_v32 = vsel %vm1128_vm2, %v1120_v19, %v10400_v17  ;;  %v1146_v33 = vsel %vm1128_vm2, %v1121_v18, %v10401_v16  ;;  %v10515_v16 = vld [vmem:[%s13266_s2 + $0x20] ss:$8 sps:$4 sm:$0xff]  }
 0x100   : > { %v10409_v3 = vpop.permute.xlu0 %10408  ;;  %v10416_v20 = vunpack.i.h.bf16 %v10414_v2  ;;  %v10415_v21 = vunpack.i.l.bf16 %v10414_v2  ;;  %v380_v17 = vld [vmem:[#allocation2 + $0xa0] sm:$0xff]  ;;  %v381_v18 = vld [vmem:[#allocation2 + $0xa8] sm:$0xff] }
 0x101   : > { %v10411_v22 = vunpack.i.h.bf16 %v10409_v3  ;;  %v10410_v23 = vunpack.i.l.bf16 %v10409_v3  ;;  %v10511_v3 = vld [vmem:[%s13266_s2 + $0x4] ss:$8 sps:$4 sm:$0xff]  }
 0x102   : > { %v1172_v36 = vsel %vm1153_vm3, %v1147_v27, %v10415_v21  ;;  %v1173_v37 = vsel %vm1153_vm3, %v1148_v28, %v10416_v20  ;;  %2795 = vmatprep.subr.bf16.mxu0 %v10511_v3  ;;  %9889 = vmatprep.subr.bf16.mxu1 %v10511_v3  ;;  %v10520_v28 = vld [vmem:[%s13266_s2 + $0x34] ss:$8 sps:$4 sm:$0xff]  }
 0x103   : > { %v10424_v10 = vpop.permute.xlu1 %10423  ;;  %v1170_v40 = vsel %vm1153_vm3, %v1145_v32, %v10410_v23  ;;  %v1171_v41 = vsel %vm1153_vm3, %v1146_v33, %v10411_v22  ;;  %2796 = vmatpush1.bf16.msra.mxu0 %v10509_v63  ;;  %9897 = vmatpush1.bf16.msra.mxu1 %v10509_v63  ;;  %v10518_v33 = vld [vmem:[%s13266_s2 + $0x30] ss:$8 sps:$4 sm:$0xff]  }
 0x104   : > { %v10419_v13 = vpop.permute.xlu0 %10418  ;;  %v10426_v24 = vunpack.i.h.bf16 %v10424_v10  ;;  %v10425_v25 = vunpack.i.l.bf16 %v10424_v10  ;;  %2797 = vmatprep.subr.bf16.mxu0 %v10514_v5  ;;  %9890 = vmatprep.subr.bf16.mxu1 %v10514_v5 }
 0x105   : > { %v10421_v29 = vunpack.i.h.bf16 %v10419_v13  ;;  %v10420_v30 = vunpack.i.l.bf16 %v10419_v13  ;;  %v383_v13 = vld [vmem:[#allocation2 + $0xb8] sm:$0xff] }
 0x106   : > { %v1197_v42 = vsel %vm1178_vm4, %v1172_v36, %v10425_v25  ;;  %v1198_v43 = vsel %vm1178_vm4, %v1173_v37, %v10426_v24 }
 0x107   : > { %v10434_v26 = vpop.permute.xlu1 %10433  ;;  %v1195_v45 = vsel %vm1178_vm4, %v1170_v40, %v10420_v30  ;;  %v1196_v46 = vsel %vm1178_vm4, %v1171_v41, %v10421_v29  ;;  %2798 = vmatpush1.bf16.msra.mxu0 %v10512_v6  ;;  %9898 = vmatpush1.bf16.msra.mxu1 %v10512_v6 }
 0x108   : > { %v10429_v31 = vpop.permute.xlu0 %10428  ;;  %v10436_v34 = vunpack.i.h.bf16 %v10434_v26  ;;  %v10435_v35 = vunpack.i.l.bf16 %v10434_v26  ;;  %2799 = vmatprep.subr.bf16.mxu0 %v10517_v11  ;;  %9891 = vmatprep.subr.bf16.mxu1 %v10517_v11 }
 0x109   : > { %v10431_v38 = vunpack.i.h.bf16 %v10429_v31  ;;  %v10430_v39 = vunpack.i.l.bf16 %v10429_v31 }
 0x10a   : > { %v1222_v50 = vsel %vm1203_vm5, %v1197_v42, %v10435_v35  ;;  %v1223_v51 = vsel %vm1203_vm5, %v1198_v43, %v10436_v34 }
 0x10b   : > { %v10444_v44 = vpop.permute.xlu1 %10443  ;;  %v1220_v54 = vsel %vm1203_vm5, %v1195_v45, %v10430_v39  ;;  %v1221_v55 = vsel %vm1203_vm5, %v1196_v46, %v10431_v38  ;;  %2800 = vmatpush1.bf16.msra.mxu0 %v10515_v16  ;;  %9899 = vmatpush1.bf16.msra.mxu1 %v10515_v16  ;;  %v10532_v16 = vld [vmem:[%s13266_s2 + $0x74] ss:$8 sps:$4 sm:$0xff]  }
 0x10c   : > { %v10446_v47 = vunpack.i.h.bf16 %v10444_v44  ;;  %v10445_v48 = vunpack.i.l.bf16 %v10444_v44  ;;  %v10439_v49 = vpop.permute.xlu0 %10438  ;;  %2801 = vmatprep.subr.bf16.mxu0 %v10520_v28  ;;  %9892 = vmatprep.subr.bf16.mxu1 %v10520_v28 }
 0x10d   : > { %v10441_v52 = vunpack.i.h.bf16 %v10439_v49  ;;  %v10440_v53 = vunpack.i.l.bf16 %v10439_v49 }
 0x10e   : > { %v1247_v56 = vsel %vm1228_vm6, %v1222_v50, %v10445_v48  ;;  %v1248_v57 = vsel %vm1228_vm6, %v1223_v51, %v10446_v47  ;;  %v10523_v48 = vld [vmem:[%s13266_s2 + $0x44] ss:$8 sps:$4 sm:$0xff]  }
 0x10f   : > { %v1262_v58 = vpack.c.bf16 %v1248_v57, %v1247_v56  ;;  %v1245_v59 = vsel %vm1228_vm6, %v1220_v54, %v10440_v53  ;;  %v1246_v60 = vsel %vm1228_vm6, %v1221_v55, %v10441_v52  ;;  %v10454_v61 = vpop.permute.xlu1 %10453  ;;  %2802 = vmatpush1.bf16.msra.mxu0 %v10518_v33  ;;  %9900 = vmatpush1.bf16.msra.mxu1 %v10518_v33  ;;  %v10521_v53 = vld [vmem:[%s13266_s2 + $0x40] ss:$8 sps:$4 sm:$0xff]  }
 0x110   : > { %v1261_v62 = vpack.c.bf16 %v1246_v60, %v1245_v59  ;;  %v10449_v2 = vpop.permute.xlu0 %10448  ;;  %v10456_v9 = vunpack.i.h.bf16 %v10454_v61  ;;  %v10455_v10 = vunpack.i.l.bf16 %v10454_v61  ;;  %2803 = vmatprep.subr.bf16.mxu0 %v10523_v48  ;;  %9893 = vmatprep.subr.bf16.mxu1 %v10523_v48 }
 0x111   : > { %v10451_v14 = vunpack.i.h.bf16 %v10449_v2  ;;  %v10450_v15 = vunpack.i.l.bf16 %v10449_v2 }
 0x112   : > { %9841 = vmatprep.mubr.msk.bf16.mxu0 %vm1280_vm7, %v1261_v62  ;;  %v1127_v24 = vsel %vm293_vm0, %v383_v13, %v10456_v9  ;;  %v1126_v25 = vsel %vm293_vm0, %v382_v12, %v10455_v10  ;;  %v10524_v9 = vld [vmem:[%s13266_s2 + $0x50] ss:$8 sps:$4 sm:$0xff]  }
 0x113   : > { %9842 = vmatmul.mubr.msk.bf16.gmra.mrb[16].mxu0 %vm1280_vm7, %v1262_v58  ;;  %v10464_v4 = vpop.permute.xlu1 %10463  ;;  %v1125_v29 = vsel %vm293_vm0, %v381_v18, %v10451_v14  ;;  %v1124_v30 = vsel %vm293_vm0, %v380_v17, %v10450_v15  ;;  %9901 = vmatpush1.bf16.msra.mxu1 %v10521_v53  ;;  %v10529_v14 = vld [vmem:[%s13266_s2 + $0x64] ss:$8 sps:$4 sm:$0xff]   ;;  %v10527_v15 = vld [vmem:[%s13266_s2 + $0x60] ss:$8 sps:$4 sm:$0xff]   ;;  %v10530_v17 = vld [vmem:[%s13266_s2 + $0x70] ss:$8 sps:$4 sm:$0xff]  }
 0x114   : > { %v10459_v1 = vpop.permute.xlu0 %10458  ;;  %v10465_v19 = vunpack.i.l.bf16 %v10464_v4  ;;  %v10466_v21 = vunpack.i.h.bf16 %v10464_v4  ;;  %2804 = vmatpush1.bf16.msra.mxu0 %v10521_v53  ;;  %v11277_v18 = vmov 0  }
 0x115   : > { %v10460_v22 = vunpack.i.l.bf16 %v10459_v1  ;;  %v10461_v26 = vunpack.i.h.bf16 %v10459_v1  ;;  %v10526_v1 = vld [vmem:[%s13266_s2 + $0x54] ss:$8 sps:$4 sm:$0xff]   ;;  %358 = vst [vmem:[#allocation3 + $0x60] sm:$0xf] %v11277_v18  ;;  %359 = vst [vmem:[#allocation4 + $0xc0] sm:$0xff] %v11277_v18  ;;  %2887 = vmatprep.mubr.bf16.mxu1 %v11277_v18 }
 0x116   : > { %v1151_v34 = vsel %vm1128_vm2, %v1126_v25, %v10465_v19  ;;  %v1152_v39 = vsel %vm1128_vm2, %v1127_v24, %v10466_v21  ;;  %2805 = vmatprep.subr.bf16.mxu0 %v10526_v1  ;;  %9894 = vmatprep.subr.bf16.mxu1 %v10526_v1  ;;  %v11792_v19 = vld [vmem:[%s13270_s6] ss:$0 sm:$0xff] }
 0x117   : > { %v10474_v7 = vpop.permute.xlu1 %10473  ;;  %v1149_v40 = vsel %vm1128_vm2, %v1124_v30, %v10460_v22  ;;  %v1150_v44 = vsel %vm1128_vm2, %v1125_v29, %v10461_v26  ;;  %9902 = vmatpush1.bf16.msra.mxu1 %v10524_v9 }
 0x118   : > { %v10469_v8 = vpop.permute.xlu0 %10468  ;;  %v10475_v27 = vunpack.i.l.bf16 %v10474_v7  ;;  %v10476_v31 = vunpack.i.h.bf16 %v10474_v7  ;;  %2806 = vmatpush1.bf16.msra.mxu0 %v10524_v9  ;;  %9895 = vmatprep.subr.bf16.mxu1 %v10529_v14 }
 0x119   : > { %v10470_v32 = vunpack.i.l.bf16 %v10469_v8  ;;  %v10471_v35 = vunpack.i.h.bf16 %v10469_v8  ;;  %2807 = vmatprep.subr.bf16.mxu0 %v10529_v14 }
 0x11a   : > { %v1176_v45 = vsel %vm1153_vm3, %v1151_v34, %v10475_v27  ;;  %v1177_v49 = vsel %vm1153_vm3, %v1152_v39, %v10476_v31 }
 0x11b   : > { %v10484_v20 = vpop.permute.xlu1 %10483  ;;  %v1174_v50 = vsel %vm1153_vm3, %v1149_v40, %v10470_v32  ;;  %v1175_v54 = vsel %vm1153_vm3, %v1150_v44, %v10471_v35  ;;  %9903 = vmatpush1.bf16.msra.mxu1 %v10527_v15 }
 0x11c   : > { %v10479_v23 = vpop.permute.xlu0 %10478  ;;  %v10486_v36 = vunpack.i.h.bf16 %v10484_v20  ;;  %v10485_v37 = vunpack.i.l.bf16 %v10484_v20  ;;  %2808 = vmatpush1.bf16.msra.mxu0 %v10527_v15  ;;  %9896 = vmatprep.subr.bf16.mxu1 %v10532_v16  ;;  %v11797_v20 = vld [vmem:[%s13270_s6 + $0x1] ss:$0 sm:$0xff] }
 0x11d   : > { %v10481_v41 = vunpack.i.h.bf16 %v10479_v23  ;;  %v10480_v42 = vunpack.i.l.bf16 %v10479_v23  ;;  %2809 = vmatprep.subr.bf16.mxu0 %v10532_v16 }
 0x11e   : > { %v1201_v55 = vsel %vm1178_vm4, %v1176_v45, %v10485_v37  ;;  %v1202_v56 = vsel %vm1178_vm4, %v1177_v49, %v10486_v36  ;;  %v1642_v37 = vlaneseq }
 0x11f   : > { %v10494_v38 = vpop.permute.xlu1 %10493  ;;  %v1199_v58 = vsel %vm1178_vm4, %v1174_v50, %v10480_v42  ;;  %v1200_v59 = vsel %vm1178_vm4, %v1175_v54, %v10481_v41  ;;  %9904 = vmatpush1.bf16.msra.mxu1 %v10530_v17 }
 0x120   : > { %v10489_v43 = vpop.permute.xlu0 %10488  ;;  %v10496_v46 = vunpack.i.h.bf16 %v10494_v38  ;;  %v10495_v47 = vunpack.i.l.bf16 %v10494_v38  ;;  %2810 = vmatpush1.bf16.msra.mxu0 %v10530_v17  ;;  %v11808_v42 = vshrl.u32 %v1642_v37, 7 }
 0x121   : > { %v10491_v51 = vunpack.i.h.bf16 %v10489_v43  ;;  %v10490_v52 = vunpack.i.l.bf16 %v10489_v43 }
 0x122   : > { %v1226_v2 = vsel %vm1203_vm5, %v1201_v55, %v10495_v47  ;;  %v1227_v3 = vsel %vm1203_vm5, %v1202_v56, %v10496_v46  ;;  %v10543_v47 = vld [vmem:[%s13266_s2 + $0x84] ss:$8 sps:$4 sm:$0xff]   ;;  %v1645_v48 = vadd.s32 16, %v11808_v42  ;;  %v11815_v49 = vadd.s32 24, %v11808_v42 }
 0x123   : > { %v10504_v57 = vpop.permute.xlu1 %10503  ;;  %v1224_v5 = vsel %vm1203_vm5, %v1199_v58, %v10490_v52  ;;  %v1225_v6 = vsel %vm1203_vm5, %v1200_v59, %v10491_v51  ;;  %3341 = vmatprep.subr.bf16.mxu1 %v10543_v47  ;;  %vm1667_vm8 = vcmp.ge.s32.totalorder %v11808_v42, 4 }
 0x124   : > { %v10506_v60 = vunpack.i.h.bf16 %v10504_v57  ;;  %v10505_v61 = vunpack.i.l.bf16 %v10504_v57  ;;  %v10499_v62 = vpop.permute.xlu0 %10498  ;;  %vm1693_vm9 = vcmp.lt.s32.totalorder %v1645_v48, 18  ;;  %vm1742_vm10 = vcmp.ge.s32.totalorder %v11815_v49, 28 }
 0x125   : > { %v10501_v63 = vunpack.i.h.bf16 %v10499_v62  ;;  %v10500_v4 = vunpack.i.l.bf16 %v10499_v62 }
 0x126   : > { %v1251_v7 = vsel %vm1228_vm6, %v1226_v2, %v10505_v61  ;;  %v1252_v8 = vsel %vm1228_vm6, %v1227_v3, %v10506_v60  ;;  %v8968_v60 = vsel %vm1667_vm8, 1.0, %v11270_v0  ;;  %v8969_v3 = vsel %vm1693_vm9, 1.0, %v11270_v0 }
 0x127   : > { %v1264_v10 = vpack.c.bf16 %v1252_v8, %v1251_v7  ;;  %v1249_v11 = vsel %vm1228_vm6, %v1224_v5, %v10500_v4  ;;  %v1250_v12 = vsel %vm1228_vm6, %v1225_v6, %v10501_v63  ;;  %v8970_v63 = vsel %vm1742_vm10, 1.0, %v11270_v0 }
 0x128   : > { %v1263_v13 = vpack.c.bf16 %v1250_v12, %v1249_v11  ;;  %vm3148_vm9 = vsmask.f32 7424  ;;  %vm3742_vm10 = vcmask 1046528  }
 0x12a   : > { %9845 = vmatprep.mubr.msk.bf16.mxu0 %vm1280_vm7, %v1263_v13 }
 0x12b   : > { %9846 = vmatmul.mubr.msk.bf16.gmra.mrb[20].mxu0 %vm1280_vm7, %v1264_v10 }
 0x12c   : > { %2827 = vmatprep.mubr.bf16.mxu0 %v11277_v18 }
 0x186   : > { %v9827_v21 = vpop.f32.mrb[0].mxu0 }
 0x187   : > { %v1452_v22 = vmul.f32 %v9827_v21, %v11792_v19  ;;  %v1355_v23 = vpop.f32.mrb[1].mxu0 }
 0x188   : > { %v1450_v24 = vmul.f32 %v1355_v23, %v11792_v19  ;;  %v9828_v25 = vpop.f32.mrb[2].mxu0 }
 0x189   : > { %v1476_v26 = vadd.f32 %v1452_v22, %v11797_v20  ;;  %v1453_v27 = vmul.f32 %v9828_v25, %v11792_v19  ;;  %v1358_v28 = vpop.f32.mrb[3].mxu0  ;;  %v11831_v25 = vadd.s32 48, %v11808_v42 }
 0x18a   : > { %v1474_v29 = vadd.f32 %v1450_v24, %v11797_v20  ;;  %v1451_v30 = vmul.f32 %v1358_v28, %v11792_v19  ;;  %v1648_v28 = vadd.s32 40, %v11808_v42 }
 0x18b   : > { %v8946_v31 = vmul.f32 -1.442695, %v1476_v26  ;;  %v1477_v32 = vadd.f32 %v1453_v27, %v11797_v20  ;;  %vm1841_vm11 = vcmp.ge.s32.totalorder %v11831_v25, 52 }
 0x18c   : > { %v8944_v33 = vmul.f32 -1.442695, %v1474_v29  ;;  %v1475_v34 = vadd.f32 %v1451_v30, %v11797_v20  ;;  %vm1768_vm12 = vcmp.lt.s32.totalorder %v1648_v28, 42 }
 0x18d   : > { %10795 = vpow2.f32 %v8946_v31  ;;  %v8947_v35 = vmul.f32 -1.442695, %v1477_v32 }
 0x18e   : > { %10797 = vpow2.f32 %v8944_v33  ;;  %v8945_v36 = vmul.f32 -1.442695, %v1475_v34 }
 0x18f   : > { %10799 = vpow2.f32 %v8947_v35 }
 0x190   : > { %10801 = vpow2.f32 %v8945_v36 }
 0x197   : > { %v10796_v38 = vpop.eup %10795 }
 0x198   : > { %v10798_v39 = vpop.eup %10797  ;;  %v1572_v40 = vadd.f32 1.0, %v10796_v38 }
 0x199   : > { %v10800_v41 = vpop.eup %10799  ;;  %v1570_v43 = vadd.f32 1.0, %v10798_v39  ;;  %v8972_v39 = vsel %vm1841_vm11, 1.0, %v11270_v0  ;;  %vm4261_vm11 = vsmask.f32 6400 }
 0x19a   : > { %v10802_v44 = vpop.eup %10801  ;;  %10803 = vrcp.f32 %v1572_v40  ;;  %v1573_v45 = vadd.f32 1.0, %v10800_v41 }
 0x19b   : > { %10805 = vrcp.f32 %v1570_v43  ;;  %v1571_v46 = vadd.f32 1.0, %v10802_v44 }
 0x19c   : > { %10807 = vrcp.f32 %v1573_v45 }
 0x19d   : > { %10809 = vrcp.f32 %v1571_v46 }
 0x19e   : > { %v9831_v50 = vpop.f32.mrb[4].mxu0 }
 0x19f   : > { %v1456_v51 = vmul.f32 %v9831_v50, %v11792_v19  ;;  %v1371_v52 = vpop.f32.mrb[5].mxu0  ;;  %v8971_v50 = vsel %vm1768_vm12, 1.0, %v11270_v0  ;;  %vm5767_vm12 = vcmp.ge.s32.totalorder %v11815_v49, 26 }
 0x1a0   : > { %v1454_v53 = vmul.f32 %v1371_v52, %v11792_v19  ;;  %v9832_v54 = vpop.f32.mrb[6].mxu0  ;;  %v12364_v49 = vsel %vm5767_vm12, 1.0, %v11270_v0 }
 0x1a1   : > { %v1480_v55 = vadd.f32 %v1456_v51, %v11797_v20  ;;  %v1457_v56 = vmul.f32 %v9832_v54, %v11792_v19  ;;  %v1374_v57 = vpop.f32.mrb[7].mxu0 }
 0x1a2   : > { %v1478_v58 = vadd.f32 %v1454_v53, %v11797_v20  ;;  %v1455_v59 = vmul.f32 %v1374_v57, %v11792_v19 }
 0x1a3   : > { %v8950_v61 = vmul.f32 -1.442695, %v1480_v55  ;;  %v1481_v62 = vadd.f32 %v1457_v56, %v11797_v20 }
 0x1a4   : > { %v10804_v2 = vpop.eup %10803  ;;  %v8948_v4 = vmul.f32 -1.442695, %v1478_v58  ;;  %v1479_v1 = vadd.f32 %v1455_v59, %v11797_v20 }
 0x1a5   : > { %v10806_v5 = vpop.eup %10805  ;;  %10811 = vpow2.f32 %v8950_v61  ;;  %v8951_v6 = vmul.f32 -1.442695, %v1481_v62  ;;  %v2461_v11 = vmul.f32 %v10804_v2, %v8969_v3 }
 0x1a6   : > { %v10808_v7 = vpop.eup %10807  ;;  %v2459_v8 = vmul.f32 %v10806_v5, %v8968_v60  ;;  %10813 = vpow2.f32 %v8948_v4  ;;  %v8949_v9 = vmul.f32 -1.442695, %v1479_v1  ;;  %v1654_v5 = vadd.s32 88, %v11808_v42 }
 0x1a7   : > { %v10810_v10 = vpop.eup %10809  ;;  %v2462_v12 = vmul.f32 %v10808_v7, %v8970_v63  ;;  %10815 = vpow2.f32 %v8951_v6  ;;  %v1651_v6 = vadd.s32 64, %v11808_v42  ;;  %v11850_v7 = vadd.s32 72, %v11808_v42 }
 0x1a8   : > { %v9457_v13 = vpack.c.bf16 %v10810_v10, %v2459_v8  ;;  %10817 = vpow2.f32 %v8949_v9  ;;  %vm1966_vm13 = vcmp.lt.s32.totalorder %v1654_v5, 90 }
 0x1a9   : > { %v9462_v14 = vpack.c.bf16 %v2462_v12, %v2461_v11  ;;  %vm1867_vm14 = vcmp.lt.s32.totalorder %v1651_v6, 66  ;;  %vm1940_vm15 = vcmp.ge.s32.totalorder %v11850_v7, 76 }
 0x1aa   : > { %9458 = vst [vmem:[#allocation3] sm:$0xff] %v9457_v13  }
 0x1ab   : > { %9514 = vst [vmem:[#allocation3 + $0x8] sm:$0xff] %v9462_v14  }
 0x1af   : > { %v10812_v15 = vpop.eup %10811 }
 0x1b0   : > { %v10814_v16 = vpop.eup %10813  ;;  %v1576_v17 = vadd.f32 1.0, %v10812_v15 }
 0x1b1   : > { %v10816_v21 = vpop.eup %10815  ;;  %v10533_v22 = vld [vmem:[#allocation3] sm:$0xff]   ;;  %v1574_v26 = vadd.f32 1.0, %v10814_v16 }
 0x1b2   : > { %v10818_v23 = vpop.eup %10817  ;;  %10819 = vrcp.f32 %v1576_v17  ;;  %v1577_v24 = vadd.f32 1.0, %v10816_v21  ;;  %2828 = vmatmul.mubr.bf16.vlgmr.msra.gmra.mrb[24].mxu0 %v10533_v22  ;;  %v10534_v38 = vld [vmem:[#allocation3 + $0x8] sm:$0xff]  }
 0x1b3   : > { %v1575_v27 = vadd.f32 1.0, %v10818_v23  ;;  %2837 = vmatprep.mubr.bf16.mxu0 %v11277_v18 }
 0x1b4   : > { %10821 = vrcp.f32 %v1577_v24  ;;  %v8975_v24 = vsel %vm1966_vm13, 1.0, %v11270_v0  ;;  %vm5866_vm13 = vcmp.ge.s32.totalorder %v11831_v25, 50 }
 0x1b5   : > { %10823 = vrcp.f32 %v1575_v27 }
 0x1b6   : > { %v9835_v29 = vpop.f32.mrb[8].mxu0  ;;  %10825 = vrcp.f32 %v1574_v26 }
 0x1b7   : > { %v1460_v30 = vmul.f32 %v9835_v29, %v11792_v19  ;;  %v1387_v31 = vpop.f32.mrb[9].mxu0  ;;  %v8973_v29 = vsel %vm1867_vm14, 1.0, %v11270_v0  ;;  %vm5965_vm14 = vcmp.ge.s32.totalorder %v11850_v7, 74  ;;  %v10717_v7 = vld [vmem:[%s13267_s3 + $0xe0] sm:$0xff]  }
 0x1b8   : > { %v1458_v32 = vmul.f32 %v1387_v31, %v11792_v19  ;;  %v9836_v33 = vpop.f32.mrb[10].mxu0 }
 0x1b9   : > { %v1484_v34 = vadd.f32 %v1460_v30, %v11797_v20  ;;  %v1461_v35 = vmul.f32 %v9836_v33, %v11792_v19  ;;  %v1390_v36 = vpop.f32.mrb[11].mxu0  ;;  %v8974_v30 = vsel %vm1940_vm15, 1.0, %v11270_v0 }
 0x1ba   : > { %v1482_v40 = vadd.f32 %v1458_v32, %v11797_v20  ;;  %v1459_v41 = vmul.f32 %v1390_v36, %v11792_v19  ;;  %2838 = vmatmul.mubr.bf16.gmra.mrb[28].mxu0 %v10534_v38 }
 0x1bb   : > { %v8954_v43 = vmul.f32 -1.442695, %v1484_v34  ;;  %v1485_v44 = vadd.f32 %v1461_v35, %v11797_v20  ;;  %2847 = vmatprep.mubr.bf16.mxu0 %v11277_v18 }
 0x1bc   : > { %v10820_v45 = vpop.eup %10819  ;;  %v8952_v46 = vmul.f32 -1.442695, %v1482_v40  ;;  %v1483_v47 = vadd.f32 %v1459_v41, %v11797_v20 }
 0x1bd   : > { %v2465_v48 = vmul.f32 %v10820_v45, %v8972_v39  ;;  %10827 = vpow2.f32 %v8954_v43  ;;  %v8955_v51 = vmul.f32 -1.442695, %v1485_v44 }
 0x1be   : > { %v10822_v52 = vpop.eup %10821  ;;  %10829 = vpow2.f32 %v8952_v46  ;;  %v8953_v53 = vmul.f32 -1.442695, %v1483_v47 }
 0x1bf   : > { %v10824_v54 = vpop.eup %10823  ;;  %v9472_v55 = vpack.c.bf16 %v10822_v52, %v2465_v48  ;;  %10831 = vpow2.f32 %v8955_v51 }
 0x1c0   : > { %v2464_v56 = vmul.f32 %v10824_v54, %v8971_v50  ;;  %10833 = vpow2.f32 %v8953_v53  ;;  %v10826_v57 = vpop.eup %10825  ;;  %v11867_v50 = vadd.s32 96, %v11808_v42  ;;  %v1657_v54 = vadd.s32 112, %v11808_v42 }
 0x1c1   : > { %9516 = vst [vmem:[#allocation3 + $0x18] sm:$0xff] %v9472_v55   ;;  %v11871_v55 = vadd.s32 120, %v11808_v42 }
 0x1c2   : > { %v9467_v58 = vpack.c.bf16 %v2464_v56, %v10826_v57  ;;  %vm2039_vm0 = vcmp.ge.s32.totalorder %v11867_v50, 100  ;;  %vm2065_vm2 = vcmp.lt.s32.totalorder %v1657_v54, 114  ;;  %vm6064_vm15 = vcmp.ge.s32.totalorder %v11867_v50, 98  ;;  %v10732_v50 = vld [vmem:[%s13267_s3 + $0x140] sm:$0xff]  }
 0x1c3   : > { %vm2138_vm3 = vcmp.ge.s32.totalorder %v11871_v55, 124 }
 0x1c4   : > { %9515 = vst [vmem:[#allocation3 + $0x10] sm:$0xff] %v9467_v58  }
 0x1c7   : > { %v10828_v59 = vpop.eup %10827 }
 0x1c8   : > { %v10830_v60 = vpop.eup %10829  ;;  %v1580_v3 = vadd.f32 1.0, %v10828_v59  ;;  %v10536_v23 = vld [vmem:[#allocation3 + $0x18] sm:$0xff]  }
 0x1c9   : > { %v10832_v61 = vpop.eup %10831  ;;  %v1578_v62 = vadd.f32 1.0, %v10830_v60 }
 0x1ca   : > { %v10834_v2 = vpop.eup %10833  ;;  %v1581_v63 = vadd.f32 1.0, %v10832_v61  ;;  %v8976_v61 = vsel %vm2039_vm0, 1.0, %v11270_v0  ;;  %vm6163_vm0 = vcmp.ge.s32.totalorder %v11871_v55, 122 }
 0x1cb   : > { %10835 = vrcp.f32 %v1578_v62  ;;  %v1579_v4 = vadd.f32 1.0, %v10834_v2  ;;  %v10535_v1 = vld [vmem:[#allocation3 + $0x10] sm:$0xff]  }
 0x1cc   : > { %10837 = vrcp.f32 %v1581_v63  ;;  %2848 = vmatmul.mubr.bf16.gmra.mrb[32].mxu0 %v10535_v1 }
 0x1cd   : > { %10839 = vrcp.f32 %v1579_v4  ;;  %2857 = vmatprep.mubr.bf16.mxu0 %v11277_v18 }
 0x1ce   : > { %10841 = vrcp.f32 %v1580_v3  ;;  %v9839_v8 = vpop.f32.mrb[12].mxu0 }
 0x1cf   : > { %v1464_v9 = vmul.f32 %v9839_v8, %v11792_v19  ;;  %v1403_v10 = vpop.f32.mrb[13].mxu0 }
 0x1d0   : > { %v1462_v11 = vmul.f32 %v1403_v10, %v11792_v19  ;;  %v9840_v12 = vpop.f32.mrb[14].mxu0  ;;  %v8978_v10 = vsel %vm2138_vm3, 1.0, %v11270_v0 }
 0x1d1   : > { %v1488_v13 = vadd.f32 %v1464_v9, %v11797_v20  ;;  %v1465_v14 = vmul.f32 %v9840_v12, %v11792_v19  ;;  %v1406_v15 = vpop.f32.mrb[15].mxu0  ;;  %v8977_v9 = vsel %vm2065_vm2, 1.0, %v11270_v0 }
 0x1d2   : > { %v1486_v16 = vadd.f32 %v1462_v11, %v11797_v20  ;;  %v1463_v17 = vmul.f32 %v1406_v15, %v11792_v19 }
 0x1d3   : > { %v8958_v21 = vmul.f32 -1.442695, %v1488_v13  ;;  %v1489_v22 = vadd.f32 %v1465_v14, %v11797_v20 }
 0x1d4   : > { %v8956_v26 = vmul.f32 -1.442695, %v1486_v16  ;;  %v1487_v27 = vadd.f32 %v1463_v17, %v11797_v20  ;;  %2858 = vmatmul.mubr.bf16.gmra.mrb[36].mxu0 %v10536_v23 }
 0x1d5   : > { %v10836_v28 = vpop.eup %10835  ;;  %10843 = vpow2.f32 %v8958_v21  ;;  %v8959_v31 = vmul.f32 -1.442695, %v1489_v22  ;;  %2867 = vmatprep.mubr.bf16.mxu0 %v11277_v18 }
 0x1d6   : > { %v10838_v32 = vpop.eup %10837  ;;  %10845 = vpow2.f32 %v8956_v26  ;;  %v8957_v33 = vmul.f32 -1.442695, %v1487_v27  ;;  %v2467_v38 = vmul.f32 %v10836_v28, %v8973_v29 }
 0x1d7   : > { %v10840_v34 = vpop.eup %10839  ;;  %v2470_v35 = vmul.f32 %v10838_v32, %v8975_v24  ;;  %10847 = vpow2.f32 %v8959_v31  ;;  %v10547_v31 = vld [vmem:[%s13266_s2 + $0x94] ss:$8 sps:$4 sm:$0xff]  }
 0x1d8   : > { %v10842_v36 = vpop.eup %10841  ;;  %v2468_v39 = vmul.f32 %v10840_v34, %v8974_v30  ;;  %10849 = vpow2.f32 %v8957_v33  ;;  %v10541_v30 = vld [vmem:[%s13266_s2 + $0x80] ss:$8 sps:$4 sm:$0xff]   ;;  %v11894_v33 = vadd.s32 144, %v11808_v42 }
 0x1d9   : > { %v9482_v40 = vpack.c.bf16 %v2470_v35, %v10842_v36 }
 0x1da   : > { %v9477_v41 = vpack.c.bf16 %v2468_v39, %v2467_v38  ;;  %v1660_v38 = vadd.s32 136, %v11808_v42  ;;  %vm2237_vm4 = vcmp.ge.s32.totalorder %v11894_v33, 148  ;;  %vm6262_vm2 = vcmp.ge.s32.totalorder %v11894_v33, 146 }
 0x1db   : > { %9518 = vst [vmem:[#allocation3 + $0x28] sm:$0xff] %v9482_v40  }
 0x1dc   : > { %9517 = vst [vmem:[#allocation3 + $0x20] sm:$0xff] %v9477_v41   ;;  %v10545_v41 = vld [vmem:[%s13266_s2 + $0x90] ss:$8 sps:$4 sm:$0xff]   ;;  %vm2164_vm5 = vcmp.lt.s32.totalorder %v1660_v38, 138  ;;  %v1663_v38 = vadd.s32 160, %v11808_v42 }
 0x1de   : > { %vm2263_vm7 = vcmp.lt.s32.totalorder %v1663_v38, 162 }
 0x1df   : > { %v10844_v43 = vpop.eup %10843 }
 0x1e0   : > { %v10846_v44 = vpop.eup %10845  ;;  %v1584_v45 = vadd.f32 1.0, %v10844_v43  ;;  %v10551_v43 = vld [vmem:[%s13266_s2 + $0xa4] ss:$8 sps:$4 sm:$0xff]  }
 0x1e1   : > { %v10848_v46 = vpop.eup %10847  ;;  %v1582_v47 = vadd.f32 1.0, %v10846_v44 }
 0x1e2   : > { %v10850_v48 = vpop.eup %10849  ;;  %10851 = vrcp.f32 %v1584_v45  ;;  %v1585_v51 = vadd.f32 1.0, %v10848_v46  ;;  %v10538_v63 = vld [vmem:[#allocation3 + $0x28] sm:$0xff]   ;;  %v10549_v45 = vld [vmem:[%s13266_s2 + $0xa0] ss:$8 sps:$4 sm:$0xff]  }
 0x1e3   : > { %10853 = vrcp.f32 %v1582_v47  ;;  %v1583_v52 = vadd.f32 1.0, %v10850_v48  ;;  %v10537_v53 = vld [vmem:[#allocation3 + $0x20] sm:$0xff]  }
 0x1e4   : > { %10855 = vrcp.f32 %v1585_v51  ;;  %2868 = vmatmul.mubr.bf16.gmra.mrb[40].mxu0 %v10537_v53 }
 0x1e5   : > { %10857 = vrcp.f32 %v1583_v52  ;;  %2877 = vmatprep.mubr.bf16.mxu0 %v11277_v18  ;;  %v10554_v52 = vld [vmem:[%s13266_s2 + $0xb4] ss:$8 sps:$4 sm:$0xff]  }
 0x1e6   : > { %v9843_v56 = vpop.f32.mrb[16].mxu0 }
 0x1e7   : > { %v1468_v57 = vmul.f32 %v9843_v56, %v11792_v19  ;;  %v1419_v58 = vpop.f32.mrb[17].mxu0 }
 0x1e8   : > { %v1466_v59 = vmul.f32 %v1419_v58, %v11792_v19  ;;  %v9844_v60 = vpop.f32.mrb[18].mxu0  ;;  %v8980_v58 = vsel %vm2237_vm4, 1.0, %v11270_v0 }
 0x1e9   : > { %v1492_v62 = vadd.f32 %v1468_v57, %v11797_v20  ;;  %v1469_v2 = vmul.f32 %v9844_v60, %v11792_v19  ;;  %v1422_v3 = vpop.f32.mrb[19].mxu0 }
 0x1ea   : > { %v1490_v4 = vadd.f32 %v1466_v59, %v11797_v20  ;;  %v1467_v1 = vmul.f32 %v1422_v3, %v11792_v19  ;;  %v8979_v59 = vsel %vm2164_vm5, 1.0, %v11270_v0  ;;  %v10552_v3 = vld [vmem:[%s13266_s2 + $0xb0] ss:$8 sps:$4 sm:$0xff]  }
 0x1eb   : > { %v8962_v5 = vmul.f32 -1.442695, %v1492_v62  ;;  %v1493_v6 = vadd.f32 %v1469_v2, %v11797_v20 }
 0x1ec   : > { %v10852_v8 = vpop.eup %10851  ;;  %v8960_v11 = vmul.f32 -1.442695, %v1490_v4  ;;  %v1491_v12 = vadd.f32 %v1467_v1, %v11797_v20  ;;  %2878 = vmatmul.mubr.bf16.gmra.mrb[44].mxu0 %v10538_v63 }
 0x1ed   : > { %v10854_v13 = vpop.eup %10853  ;;  %10859 = vpow2.f32 %v8962_v5  ;;  %v8963_v14 = vmul.f32 -1.442695, %v1493_v6  ;;  %v2473_v22 = vmul.f32 %v10852_v8, %v8977_v9  ;;  %v10557_v5 = vld [vmem:[%s13266_s2 + $0xc4] ss:$8 sps:$4 sm:$0xff]  }
 0x1ee   : > { %v10856_v15 = vpop.eup %10855  ;;  %v2471_v16 = vmul.f32 %v10854_v13, %v8976_v61  ;;  %10861 = vpow2.f32 %v8960_v11  ;;  %v8961_v17 = vmul.f32 -1.442695, %v1491_v12 }
 0x1ef   : > { %v10858_v21 = vpop.eup %10857  ;;  %v2474_v23 = vmul.f32 %v10856_v15, %v8978_v10  ;;  %10863 = vpow2.f32 %v8963_v14  ;;  %v10561_v14 = vld [vmem:[%s13266_s2 + $0xd4] ss:$8 sps:$4 sm:$0xff]  }
 0x1f0   : > { %v9487_v24 = vpack.c.bf16 %v10858_v21, %v2471_v16  ;;  %10865 = vpow2.f32 %v8961_v17  ;;  %v10559_v16 = vld [vmem:[%s13266_s2 + $0xd0] ss:$8 sps:$4 sm:$0xff]   ;;  %v10565_v17 = vld [vmem:[%s13266_s2 + $0xe4] ss:$8 sps:$4 sm:$0xff]  }
 0x1f1   : > { %v9492_v26 = vpack.c.bf16 %v2474_v23, %v2473_v22  ;;  %v10563_v22 = vld [vmem:[%s13266_s2 + $0xe0] ss:$8 sps:$4 sm:$0xff]  }
 0x1f2   : > { %9519 = vst [vmem:[#allocation3 + $0x30] sm:$0xff] %v9487_v24   ;;  %v10568_v24 = vld [vmem:[%s13266_s2 + $0xf4] ss:$8 sps:$4 sm:$0xff]  }
 0x1f3   : > { %9520 = vst [vmem:[#allocation3 + $0x38] sm:$0xff] %v9492_v26  }
 0x1f7   : > { %v10860_v27 = vpop.eup %10859 }
 0x1f8   : > { %v10862_v28 = vpop.eup %10861  ;;  %v1588_v29 = vadd.f32 1.0, %v10860_v27 }
 0x1f9   : > { %v10864_v32 = vpop.eup %10863  ;;  %v10539_v34 = vld [vmem:[#allocation3 + $0x30] sm:$0xff]   ;;  %v1586_v39 = vadd.f32 1.0, %v10862_v28 }
 0x1fa   : > { %v10866_v35 = vpop.eup %10865  ;;  %10867 = vrcp.f32 %v1588_v29  ;;  %v1589_v36 = vadd.f32 1.0, %v10864_v32  ;;  %2888 = vmatmul.mubr.bf16.vlgmr.msra.gmra.mrb[0].mxu1 %v10539_v34  ;;  %v10540_v57 = vld [vmem:[#allocation3 + $0x38] sm:$0xff]   ;;  %v10566_v34 = vld [vmem:[%s13266_s2 + $0xf0] ss:$8 sps:$4 sm:$0xff]  }
 0x1fb   : > { %v1587_v40 = vadd.f32 1.0, %v10866_v35  ;;  %2897 = vmatprep.mubr.bf16.mxu1 %v11277_v18  ;;  %3342 = vmatpush1.bf16.msra.mxu1 %v10541_v30  ;;  %v1666_v35 = vadd.s32 184, %v11808_v42 }
 0x1fc   : > { %10869 = vrcp.f32 %v1589_v36  ;;  %3343 = vmatprep.subr.bf16.mxu1 %v10547_v31  ;;  %v10573_v36 = vld [vmem:[%s13266_s2 + $0x104] ss:$8 sps:$4 sm:$0xff]  }
 0x1fd   : > { %10871 = vrcp.f32 %v1587_v40  ;;  %vm2362_vm6 = vcmp.lt.s32.totalorder %v1666_v35, 186 }
 0x1fe   : > { %v9847_v44 = vpop.f32.mrb[20].mxu0  ;;  %10873 = vrcp.f32 %v1586_v39  ;;  %v11957_v39 = vadd.s32 168, %v11808_v42 }
 0x1ff   : > { %v1472_v46 = vmul.f32 %v9847_v44, %v11792_v19  ;;  %v1435_v47 = vpop.f32.mrb[21].mxu0  ;;  %3344 = vmatpush1.bf16.msra.mxu1 %v10545_v41  ;;  %v8983_v41 = vsel %vm2362_vm6, 1.0, %v11270_v0  ;;  %v8981_v44 = vsel %vm2263_vm7, 1.0, %v11270_v0 }
 0x200   : > { %v1470_v48 = vmul.f32 %v1435_v47, %v11792_v19  ;;  %v9848_v51 = vpop.f32.mrb[22].mxu0  ;;  %3345 = vmatprep.subr.bf16.mxu1 %v10551_v43  ;;  %vm2336_vm8 = vcmp.ge.s32.totalorder %v11957_v39, 172  ;;  %vm6361_vm3 = vcmp.ge.s32.totalorder %v11957_v39, 170 }
 0x201   : > { %v1496_v53 = vadd.f32 %v1472_v46, %v11797_v20  ;;  %v1473_v54 = vmul.f32 %v9848_v51, %v11792_v19  ;;  %v1438_v56 = vpop.f32.mrb[23].mxu0 }
 0x202   : > { %v1494_v60 = vadd.f32 %v1470_v48, %v11797_v20  ;;  %v1471_v61 = vmul.f32 %v1438_v56, %v11792_v19  ;;  %2898 = vmatmul.mubr.bf16.gmra.mrb[4].mxu1 %v10540_v57 }
 0x203   : > { %v8966_v62 = vmul.f32 -1.442695, %v1496_v53  ;;  %v1497_v2 = vadd.f32 %v1473_v54, %v11797_v20  ;;  %2907 = vmatprep.mubr.bf16.mxu1 %v11277_v18  ;;  %3346 = vmatpush1.bf16.msra.mxu1 %v10549_v45  ;;  %v8982_v45 = vsel %vm2336_vm8, 1.0, %v11270_v0 }
 0x204   : > { %v10868_v63 = vpop.eup %10867  ;;  %v8964_v4 = vmul.f32 -1.442695, %v1494_v60  ;;  %v1495_v1 = vadd.f32 %v1471_v61, %v11797_v20  ;;  %3347 = vmatprep.subr.bf16.mxu1 %v10554_v52  ;;  %v10555_v20 = vld [vmem:[%s13266_s2 + $0xc0] ss:$8 sps:$4 sm:$0xff]  }
 0x205   : > { %v2477_v19 = vmul.f32 %v10868_v63, %v8980_v58  ;;  %10875 = vpow2.f32 %v8966_v62  ;;  %v8967_v6 = vmul.f32 -1.442695, %v1497_v2  ;;  %v10569_v58 = vld [vmem:[#allocation3] sm:$0xff]  }
 0x206   : > { %v10870_v8 = vpop.eup %10869  ;;  %10877 = vpow2.f32 %v8964_v4  ;;  %v8965_v9 = vmul.f32 -1.442695, %v1495_v1  ;;  %v3152_v60 = vshll.u32 %v10569_v58, 16  ;;  %v10574_v1 = vld [vmem:[#allocation3 + $0x10] sm:$0xff]  }
 0x207   : > { %v10872_v10 = vpop.eup %10871  ;;  %v9502_v11 = vpack.c.bf16 %v10870_v8, %v2477_v19  ;;  %10879 = vpow2.f32 %v8967_v6  ;;  %3348 = vmatpush1.bf16.msra.mxu1 %v10552_v3  ;;  %v3150_v3 = vshrl.u32 %v10569_v58, 16  ;;  %v10578_v19 = vld [vmem:[%s13266_s2 + $0x114] ss:$8 sps:$4 sm:$0xff]   ;;  %v3165_v8 = vshll.u32 %v10574_v1, 16 }
 0x208   : > { %v2476_v12 = vmul.f32 %v10872_v10, %v8979_v59  ;;  %10881 = vpow2.f32 %v8965_v9  ;;  %v10874_v13 = vpop.eup %10873  ;;  %3349 = vmatprep.subr.bf16.mxu1 %v10557_v5  ;;  %v10570_v59 = vld [vmem:[#allocation3 + $0x8] sm:$0xff]   ;;  %v3154_v62 = vrot.slane %v3152_v60, 1  ;;  %v10571_v5 = vld [vmem:[%s13266_s2 + $0x100] ss:$8 sps:$4 sm:$0xff]   ;;  %v10582_v10 = vld [vmem:[%s13266_s2 + $0x124] ss:$8 sps:$4 sm:$0xff]  }
 0x209   : > { %9522 = vst [vmem:[#allocation3 + $0x48] sm:$0xff] %v9502_v11   ;;  %v3157_v2 = vshll.u32 %v10570_v59, 16  ;;  %v11974_v9 = vld [vmem:[#allocation4 + $0xc0] sm:$0xff]  ;;  %v3161_v11 = vshrl.u32 %v10570_v59, 16  ;;  %v10588_v59 = vld [vmem:[#allocation3 + $0x38] sm:$0xff]  }
 0x20a   : > { %v9497_v15 = vpack.c.bf16 %v2476_v12, %v10874_v13  ;;  %v3155_v63 = vor.u32 %v3154_v62, %v3150_v3  ;;  %v3167_v12 = vrot.slane %v3165_v8, 1  ;;  %v10575_v13 = vld [vmem:[#allocation3 + $0x18] sm:$0xff]   ;;  %v3205_v62 = vshll.u32 %v10588_v59, 16 }
 0x20b   : > { %3350 = vmatpush1.bf16.msra.mxu1 %v10555_v20  ;;  %v3159_v4 = vrot.slane %v3157_v2, 1  ;;  %v3177_v35 = vshrl.u32 %v10575_v13, 16 }
 0x20c   : > { %9521 = vst [vmem:[#allocation3 + $0x40] sm:$0xff] %v9497_v15   ;;  %3351 = vmatprep.subr.bf16.mxu1 %v10561_v14  ;;  %v10580_v14 = vld [vmem:[%s13266_s2 + $0x120] ss:$8 sps:$4 sm:$0xff]   ;;  %v10587_v15 = vld [vmem:[%s13266_s2 + $0x134] ss:$8 sps:$4 sm:$0xff]  }
 0x20d   : > { %v3160_v6 = vsel %vm3148_vm9, %v3155_v63, %v3159_v4  ;;  %v3163_v20 = vor.u32 %v3161_v11, %v3159_v4  ;;  %v3207_v63 = vrot.slane %v3205_v62, 1 }
 0x20f   : > { %v10876_v21 = vpop.eup %10875  ;;  %3352 = vmatpush1.bf16.msra.mxu1 %v10559_v16  ;;  %v3168_v16 = vsel %vm3148_vm9, %v3163_v20, %v3167_v12 }
 0x210   : > { %v10878_v23 = vpop.eup %10877  ;;  %3353 = vmatprep.subr.bf16.mxu1 %v10565_v17  ;;  %v1592_v29 = vadd.f32 1.0, %v10876_v21  ;;  %v10548_v40 = vld [vmem:[#allocation3 + $0x48] sm:$0xff]   ;;  %v3169_v17 = vshrl.u32 %v10574_v1, 16  ;;  %v3173_v21 = vshll.u32 %v10575_v13, 16 }
 0x211   : > { %v10880_v26 = vpop.eup %10879  ;;  %v1590_v27 = vadd.f32 1.0, %v10878_v23  ;;  %v10591_v23 = vld [vmem:[%s13266_s2 + $0x144] ss:$8 sps:$4 sm:$0xff]  }
 0x212   : > { %v10882_v28 = vpop.eup %10881  ;;  %v1593_v30 = vadd.f32 1.0, %v10880_v26  ;;  %v10579_v26 = vld [vmem:[#allocation3 + $0x20] sm:$0xff]  }
 0x213   : > { %10883 = vrcp.f32 %v1590_v27  ;;  %v1591_v31 = vadd.f32 1.0, %v10882_v28  ;;  %v10544_v32 = vld [vmem:[#allocation3 + $0x40] sm:$0xff]   ;;  %3354 = vmatpush1.bf16.msra.mxu1 %v10563_v22  ;;  %v10585_v22 = vld [vmem:[%s13266_s2 + $0x130] ss:$8 sps:$4 sm:$0xff]   ;;  %v3175_v27 = vrot.slane %v3173_v21, 1 }
 0x214   : > { %10885 = vrcp.f32 %v1593_v30  ;;  %2908 = vmatmul.mubr.bf16.gmra.mrb[8].mxu1 %v10544_v32  ;;  %3355 = vmatprep.subr.bf16.mxu1 %v10568_v24  ;;  %v3171_v24 = vor.u32 %v3169_v17, %v3167_v12  ;;  %v10589_v28 = vld [vmem:[%s13266_s2 + $0x140] ss:$8 sps:$4 sm:$0xff]   ;;  %v10594_v32 = vld [vmem:[%s13266_s2 + $0x150] ss:$8 sps:$4 sm:$0xff]  }
 0x215   : > { %10887 = vrcp.f32 %v1591_v31  ;;  %2917 = vmatprep.mubr.bf16.mxu1 %v11277_v18  ;;  %v3181_v31 = vshll.u32 %v10579_v26, 16  ;;  %v3179_v38 = vor.u32 %v3177_v35, %v3175_v27  ;;  %v10592_v4 = vld [vmem:[#allocation3 + $0x40] sm:$0xff]  }
 0x216   : > { %10889 = vrcp.f32 %v1592_v29  ;;  %v10596_v29 = vld [vmem:[%s13266_s2 + $0x154] ss:$8 sps:$4 sm:$0xff]   ;;  %v3176_v30 = vsel %vm3148_vm9, %v3171_v24, %v3175_v27  ;;  %v3217_v11 = vshrl.u32 %v10592_v4, 16 }
 0x217   : > { %3356 = vmatpush1.bf16.msra.mxu1 %v10566_v34  ;;  %v10600_v34 = vld [vmem:[%s13266_s2 + $0x164] ss:$8 sps:$4 sm:$0xff]  }
 0x218   : > { %3860 = vmatprep.subr.bf16.mxu1 %v10573_v36  ;;  %v3183_v36 = vrot.slane %v3181_v31, 1 }
 0x21c   : > { %2918 = vmatmul.mubr.bf16.gmra.mrb[12].mxu1 %v10548_v40  ;;  %v10583_v40 = vld [vmem:[#allocation3 + $0x28] sm:$0xff]  }
 0x21d   : > { %v10884_v43 = vpop.eup %10883  ;;  %2927 = vmatprep.mubr.bf16.mxu1 %v11277_v18 }
 0x21e   : > { %v10886_v46 = vpop.eup %10885  ;;  %v2479_v52 = vmul.f32 %v10884_v43, %v8981_v44  ;;  %v10605_v43 = vld [vmem:[%s13266_s2 + $0x174] ss:$8 sps:$4 sm:$0xff]   ;;  %v3184_v44 = vsel %vm3148_vm9, %v3179_v38, %v3183_v36 }
 0x21f   : > { %v10888_v47 = vpop.eup %10887  ;;  %v2482_v48 = vmul.f32 %v10886_v46, %v8983_v41  ;;  %v10598_v41 = vld [vmem:[%s13266_s2 + $0x160] ss:$8 sps:$4 sm:$0xff]   ;;  %v3189_v46 = vshll.u32 %v10583_v40, 16 }
 0x220   : > { %v10890_v51 = vpop.eup %10889  ;;  %v2480_v53 = vmul.f32 %v10888_v47, %v8982_v45  ;;  %v3185_v45 = vshrl.u32 %v10579_v26, 16  ;;  %v10603_v47 = vld [vmem:[%s13266_s2 + $0x170] ss:$8 sps:$4 sm:$0xff]  }
 0x221   : > { %v9512_v54 = vpack.c.bf16 %v2482_v48, %v10890_v51  ;;  %v10610_v48 = vld [vmem:[%s13266_s2 + $0x184] ss:$8 sps:$4 sm:$0xff]  }
 0x222   : > { %v9507_v56 = vpack.c.bf16 %v2480_v53, %v2479_v52  ;;  %v3187_v51 = vor.u32 %v3185_v45, %v3183_v36  ;;  %v10584_v52 = vld [vmem:[#allocation3 + $0x30] sm:$0xff]   ;;  %v3191_v53 = vrot.slane %v3189_v46, 1 }
 0x223   : > { %9524 = vst [vmem:[#allocation3 + $0x58] sm:$0xff] %v9512_v54   ;;  %v3201_v2 = vshrl.u32 %v10584_v52, 16 }
 0x224   : > { %9523 = vst [vmem:[#allocation3 + $0x50] sm:$0xff] %v9507_v56   ;;  %v3192_v54 = vsel %vm3148_vm9, %v3187_v51, %v3191_v53  ;;  %v3197_v56 = vshll.u32 %v10584_v52, 16  ;;  %v10606_v51 = vld [vmem:[#allocation3] sm:$0xfe]   ;;  %v10607_v52 = vld [vmem:[#allocation3 + $0x8] sm:$0xff]  }
 0x226   : > { %v3199_v58 = vrot.slane %v3197_v56, 1  ;;  %v10608_v56 = vld [vmem:[%s13266_s2 + $0x180] ss:$8 sps:$4 sm:$0xff]  }
 0x228   : > { %v3203_v3 = vor.u32 %v3201_v2, %v3199_v58 }
 0x22a   : > { %v10562_v61 = vld [vmem:[#allocation3 + $0x58] sm:$0xff]   ;;  %v3208_v1 = vsel %vm3148_vm9, %v3203_v3, %v3207_v63 }
 0x22b   : > { %v10558_v57 = vld [vmem:[#allocation3 + $0x50] sm:$0xff]  }
 0x22c   : > { %2928 = vmatmul.mubr.bf16.gmra.mrb[16].mxu1 %v10558_v57  ;;  %v3193_v57 = vshrl.u32 %v10583_v40, 16  ;;  %v10597_v13 = vld [vmem:[#allocation3 + $0x50] sm:$0xff]  }
 0x22d   : > { %2937 = vmatprep.mubr.bf16.mxu1 %v11277_v18  ;;  %v3233_v27 = vshrl.u32 %v10597_v13, 16 }
 0x22e   : > { %v3195_v60 = vor.u32 %v3193_v57, %v3191_v53  ;;  %v3743_v53 = vrot.slane %v10606_v51, 1  ;;  %v10615_v57 = vld [vmem:[%s13266_s2 + $0x194] ss:$8 sps:$4 sm:$0xff]  }
 0x22f   : > { %v10621_v51 = vld [vmem:[#allocation3 + $0x30] sm:$0xff]  }
 0x234   : > { %2938 = vmatmul.mubr.bf16.gmra.mrb[20].mxu1 %v10562_v61  ;;  %v3200_v61 = vsel %vm3148_vm9, %v3195_v60, %v3199_v58  ;;  %v10613_v60 = vld [vmem:[%s13266_s2 + $0x190] ss:$8 sps:$4 sm:$0xff]  }
 0x235   : > { %3373 = vmatprep.mubr.bf16.mxu1 %v11277_v18  ;;  %v10576_v18 = vld [vmem:[%s13266_s2 + $0x110] ss:$8 sps:$4 sm:$0xff]  }
 0x23c   : > { %3374 = vmatmul.mubr.bf16.vlgmr.msra.gmra.mrb[24].mxu1 %v3160_v6 }
 0x23d   : > { %3861 = vmatpush1.bf16.msra.mxu1 %v10571_v5  ;;  %3383 = vmatprep.mubr.bf16.mxu1 %v11974_v9  ;;  %v3213_v5 = vshll.u32 %v10592_v4, 16  ;;  %v10617_v4 = vld [vmem:[%s13266_s2 + $0x1a0] ss:$8 sps:$4 sm:$0xff]  }
 0x23e   : > { %3862 = vmatprep.subr.bf16.mxu1 %v10578_v19  ;;  %v3209_v19 = vshrl.u32 %v10588_v59, 16  ;;  %v10611_v59 = vld [vmem:[#allocation3 + $0x10] sm:$0xff]  }
 0x23f   : > { %v3215_v6 = vrot.slane %v3213_v5, 1  ;;  %v3746_v2 = vrot.slane %v10611_v59, 1  ;;  %v10624_v5 = vld [vmem:[%s13266_s2 + $0x1b4] ss:$8 sps:$4 sm:$0xff]   ;;  %v10625_v59 = vld [vmem:[#allocation3 + $0x38] sm:$0xff]  }
 0x240   : > { %v3211_v8 = vor.u32 %v3209_v19, %v3207_v63 }
 0x241   : > { %3863 = vmatpush1.bf16.msra.mxu1 %v10576_v18  ;;  %v10593_v18 = vld [vmem:[#allocation3 + $0x48] sm:$0xff]   ;;  %v3219_v20 = vor.u32 %v3217_v11, %v3215_v6 }
 0x242   : > { %3864 = vmatprep.subr.bf16.mxu1 %v10582_v10  ;;  %v3216_v10 = vsel %vm3148_vm9, %v3211_v8, %v3215_v6  ;;  %v3221_v12 = vshll.u32 %v10593_v18, 16  ;;  %v3225_v17 = vshrl.u32 %v10593_v18, 16  ;;  %v10612_v6 = vld [vmem:[#allocation3 + $0x18] sm:$0xff]   ;;  %v10622_v8 = vld [vmem:[%s13266_s2 + $0x1b0] ss:$8 sps:$4 sm:$0xff]  }
 0x243   : > { %v10628_v18 = vld [vmem:[%s13266_s2 + $0x1c4] ss:$8 sps:$4 sm:$0xff]  }
 0x244   : > { %3384 = vmatmul.mubr.bf16.gmra.mrb[28].mxu1 %v3168_v16  ;;  %v3229_v16 = vshll.u32 %v10597_v13, 16  ;;  %v10626_v13 = vld [vmem:[%s13266_s2 + $0x1c0] ss:$8 sps:$4 sm:$0xff]  }
 0x245   : > { %3393 = vmatprep.mubr.bf16.mxu1 %v11974_v9  ;;  %3865 = vmatpush1.bf16.msra.mxu1 %v10580_v14  ;;  %v3223_v14 = vrot.slane %v3221_v12, 1 }
 0x246   : > { %3866 = vmatprep.subr.bf16.mxu1 %v10587_v15  ;;  %v3231_v21 = vrot.slane %v3229_v16, 1 }
 0x247   : > { %v3224_v15 = vsel %vm3148_vm9, %v3219_v20, %v3223_v14  ;;  %v3748_v20 = vrot.slane %v10612_v6, 1 }
 0x248   : > { %v3235_v31 = vor.u32 %v3233_v27, %v3231_v21  ;;  %v10642_v27 = vld [vmem:[%s13266_s2 + $0x1f4] ss:$8 sps:$4 sm:$0xff]  }
 0x249   : > { %3867 = vmatpush1.bf16.msra.mxu1 %v10585_v22  ;;  %v3227_v22 = vor.u32 %v3225_v17, %v3223_v14  ;;  %v3749_v16 = vsel %vm3742_vm10, %v3746_v2, %v3748_v20  ;;  %v10616_v17 = vld [vmem:[#allocation3 + $0x20] sm:$0xff]  }
 0x24a   : > { %3868 = vmatprep.subr.bf16.mxu1 %v10591_v23  ;;  %v10601_v23 = vld [vmem:[#allocation3 + $0x58] sm:$0xff]  }
 0x24b   : > { %v3232_v24 = vsel %vm3148_vm9, %v3227_v22, %v3231_v21  ;;  %v10631_v21 = vld [vmem:[%s13266_s2 + $0x1d0] ss:$8 sps:$4 sm:$0xff]   ;;  %v10637_v22 = vld [vmem:[%s13266_s2 + $0x1e4] ss:$8 sps:$4 sm:$0xff]  }
 0x24c   : > { %3394 = vmatmul.mubr.bf16.gmra.mrb[32].mxu1 %v3176_v30 }
 0x24d   : > { %3403 = vmatprep.mubr.bf16.mxu1 %v11974_v9  ;;  %3869 = vmatpush1.bf16.msra.mxu1 %v10589_v28  ;;  %v3237_v28 = vshll.u32 %v10601_v23, 16 }
 0x24e   : > { %3870 = vmatprep.subr.bf16.mxu1 %v10596_v29 }
 0x24f   : > { %v3239_v35 = vrot.slane %v3237_v28, 1 }
 0x251   : > { %3871 = vmatpush1.bf16.msra.mxu1 %v10594_v32  ;;  %v10602_v32 = vld [vmem:[#allocation3 + $0x60] ss:$0 sps:$4 sm:$0x11]   ;;  %v3240_v36 = vsel %vm3148_vm9, %v3235_v31, %v3239_v35  ;;  %v10620_v31 = vld [vmem:[#allocation3 + $0x28] sm:$0xff]  }
 0x252   : > { %3872 = vmatprep.subr.bf16.mxu1 %v10600_v34  ;;  %v3245_v38 = vshll.u32 %v10602_v32, 16  ;;  %v10640_v32 = vld [vmem:[%s13266_s2 + $0x1f0] ss:$8 sps:$4 sm:$0xff]  }
 0x254   : > { %3404 = vmatmul.mubr.bf16.gmra.mrb[36].mxu1 %v3184_v44  ;;  %v3247_v46 = vrot.slane %v3245_v38, 1  ;;  %v3752_v38 = vrot.slane %v10620_v31, 1 }
 0x255   : > { %3413 = vmatprep.mubr.bf16.mxu1 %v11974_v9  ;;  %3873 = vmatpush1.bf16.msra.mxu1 %v10598_v41  ;;  %v3241_v41 = vshrl.u32 %v10601_v23, 16  ;;  %v3750_v23 = vrot.slane %v10616_v17, 1  ;;  %v10644_v17 = vld [vmem:[#allocation3 + $0x8] sm:$0xff]  }
 0x256   : > { %3874 = vmatprep.subr.bf16.mxu1 %v10605_v43 }
 0x257   : > { %v3243_v45 = vor.u32 %v3241_v41, %v3239_v35  ;;  %v3751_v28 = vsel %vm3742_vm10, %v3748_v20, %v3750_v23  ;;  %v10647_v35 = vld [vmem:[%s13266_s2 + $0x204] ss:$8 sps:$4 sm:$0xff]  }
 0x259   : > { %3875 = vmatpush1.bf16.msra.mxu1 %v10603_v47 }
 0x25a   : > { %4470 = vmatprep.subr.bf16.mxu1 %v10610_v48  ;;  %v3248_v48 = vsel %vm3148_vm9, %v3243_v45, %v3247_v46 }
 0x25c   : > { %3414 = vmatmul.mubr.bf16.gmra.mrb[40].mxu1 %v3192_v54  ;;  %v3744_v54 = vrot.slane %v10607_v52, 1 }
 0x25d   : > { %3423 = vmatprep.mubr.bf16.mxu1 %v11974_v9 }
 0x25e   : > { %v3745_v58 = vsel %vm3742_vm10, %v3743_v53, %v3744_v54  ;;  %v3747_v19 = vsel %vm3742_vm10, %v3744_v54, %v3746_v2  ;;  %v3754_v53 = vrot.slane %v10621_v51, 1  ;;  %v10629_v2 = vld [vmem:[#allocation3 + $0x40] sm:$0xff]  }
 0x264   : > { %3424 = vmatmul.mubr.bf16.gmra.mrb[44].mxu1 %v3200_v61  ;;  %v10619_v61 = vld [vmem:[%s13266_s2 + $0x1a4] ss:$8 sps:$4 sm:$0xff]  }
 0x265   : > { %3433 = vmatprep.mubr.bf16.mxu1 %v11974_v9 }
 0x26c   : > { %3434 = vmatmul.mubr.bf16.gmra.mrb[0].mxu1 %v3208_v1 }
 0x26d   : > { %3443 = vmatprep.mubr.bf16.mxu1 %v11974_v9 }
 0x274   : > { %3444 = vmatmul.mubr.bf16.gmra.mrb[4].mxu1 %v3216_v10 }
 0x275   : > { %3453 = vmatprep.mubr.bf16.mxu1 %v11974_v9 }
 0x27c   : > { %3454 = vmatmul.mubr.bf16.gmra.mrb[8].mxu1 %v3224_v15  ;;  %v10633_v15 = vld [vmem:[%s13266_s2 + $0x1d4] ss:$8 sps:$4 sm:$0xff]  }
 0x27d   : > { %3463 = vmatprep.mubr.bf16.mxu1 %v11974_v9 }
 0x284   : > { %3464 = vmatmul.mubr.bf16.gmra.mrb[12].mxu1 %v3232_v24  ;;  %v10635_v24 = vld [vmem:[%s13266_s2 + $0x1e0] ss:$8 sps:$4 sm:$0xff]  }
 0x285   : > { %v12036_v26 = vpop.f32.mrb[24].mxu0  ;;  %3473 = vmatprep.mubr.bf16.mxu1 %v11974_v9 }
 0x286   : > { %v12039_v29 = vpop.f32.mrb[25].mxu0 }
 0x287   : > { %v12041_v30 = vpop.f32.mrb[26].mxu0 }
 0x288   : > { %v12043_v34 = vpop.f32.mrb[27].mxu0 }
 0x28c   : > { %3474 = vmatmul.mubr.bf16.gmra.mrb[16].mxu1 %v3240_v36 }
 0x28d   : > { %v12046_v40 = vpop.f32.mrb[28].mxu0  ;;  %3483 = vmatprep.mubr.bf16.mxu1 %v11974_v9 }
 0x28e   : > { %v12049_v43 = vpop.f32.mrb[29].mxu0 }
 0x28f   : > { %v12051_v44 = vpop.f32.mrb[30].mxu0 }
 0x290   : > { %v12053_v47 = vpop.f32.mrb[31].mxu0 }
 0x294   : > { %3484 = vmatmul.mubr.bf16.gmra.mrb[20].mxu1 %v3248_v48  ;;  %v3753_v48 = vsel %vm3742_vm10, %v3750_v23, %v3752_v38  ;;  %v10643_v23 = vld [vmem:[#allocation3] sm:$0xfe]  }
 0x295   : > { %3892 = vmatprep.mubr.bf16.mxu1 %v11974_v9  ;;  %v4266_v31 = vshll.u32 %v10643_v23, 16 }
 0x297   : > { %v4268_v51 = vrot.slane %v4266_v31, 2  ;;  %v10659_v31 = vld [vmem:[%s13266_s2 + $0x230] ss:$8 sps:$4 sm:$0xff]  }
 0x29c   : > { %3893 = vmatmul.mubr.bf16.vlgmr.msra.gmra.mrb[24].mxu1 %v3745_v58  ;;  %v3755_v58 = vsel %vm3742_vm10, %v3752_v38, %v3754_v53 }
 0x29d   : > { %4471 = vmatpush1.bf16.msra.mxu1 %v10608_v56  ;;  %3902 = vmatprep.mubr.bf16.mxu1 %v11974_v9 }
 0x29e   : > { %4472 = vmatprep.subr.bf16.mxu1 %v10615_v57 }
 0x29f   : > { %v12071_v62 = vpop.f32.mrb[32].mxu0 }
 0x2a0   : > { %v12073_v3 = vpop.f32.mrb[33].mxu0 }
 0x2a1   : > { %v12075_v63 = vpop.f32.mrb[34].mxu0  ;;  %4473 = vmatpush1.bf16.msra.mxu1 %v10613_v60  ;;  %v3756_v60 = vrot.slane %v10625_v59, 1 }
 0x2a2   : > { %v12080_v1 = vpop.f32.mrb[35].mxu0  ;;  %4474 = vmatprep.subr.bf16.mxu1 %v10619_v61 }
 0x2a3   : > { %v3757_v61 = vsel %vm3742_vm10, %v3754_v53, %v3756_v60 }
 0x2a4   : > { %3903 = vmatmul.mubr.bf16.gmra.mrb[28].mxu1 %v3747_v19  ;;  %v10630_v19 = vld [vmem:[#allocation3 + $0x48] sm:$0xff]  }
 0x2a5   : > { %3912 = vmatprep.mubr.bf16.mxu1 %v11974_v9  ;;  %4475 = vmatpush1.bf16.msra.mxu1 %v10617_v4  ;;  %v3758_v4 = vrot.slane %v10629_v2, 1  ;;  %v3760_v6 = vrot.slane %v10630_v19, 1 }
 0x2a6   : > { %4476 = vmatprep.subr.bf16.mxu1 %v10624_v5 }
 0x2a7   : > { %v12093_v10 = vpop.f32.mrb[36].mxu0  ;;  %v3759_v5 = vsel %vm3742_vm10, %v3756_v60, %v3758_v4 }
 0x2a8   : > { %v12095_v11 = vpop.f32.mrb[37].mxu0 }
 0x2a9   : > { %v12097_v12 = vpop.f32.mrb[38].mxu0  ;;  %4477 = vmatpush1.bf16.msra.mxu1 %v10622_v8  ;;  %v3761_v8 = vsel %vm3742_vm10, %v3758_v4, %v3760_v6  ;;  %v10645_v4 = vld [vmem:[%s13266_s2 + $0x200] ss:$8 sps:$4 sm:$0xff]  }
 0x2aa   : > { %v12102_v14 = vpop.f32.mrb[39].mxu0  ;;  %4478 = vmatprep.subr.bf16.mxu1 %v10628_v18  ;;  %v10634_v18 = vld [vmem:[#allocation3 + $0x50] sm:$0xff]  }
 0x2ab   : > { %v3762_v20 = vrot.slane %v10634_v18, 1  ;;  %v10649_v18 = vld [vmem:[#allocation3 + $0x18] sm:$0xff]  }
 0x2ac   : > { %3913 = vmatmul.mubr.bf16.gmra.mrb[32].mxu1 %v3749_v16 }
 0x2ad   : > { %3922 = vmatprep.mubr.bf16.mxu1 %v11974_v9  ;;  %4479 = vmatpush1.bf16.msra.mxu1 %v10626_v13  ;;  %v3763_v13 = vsel %vm3742_vm10, %v3760_v6, %v3762_v20 }
 0x2ae   : > { %4480 = vmatprep.subr.bf16.mxu1 %v10633_v15  ;;  %v10638_v15 = vld [vmem:[#allocation3 + $0x58] sm:$0xff]  }
 0x2af   : > { %v3764_v16 = vrot.slane %v10638_v15, 1 }
 0x2b1   : > { %4481 = vmatpush1.bf16.msra.mxu1 %v10631_v21  ;;  %v3765_v21 = vsel %vm3742_vm10, %v3762_v20, %v3764_v16  ;;  %v10650_v20 = vld [vmem:[%s13266_s2 + $0x210] ss:$8 sps:$4 sm:$0xff]  }
 0x2b2   : > { %4482 = vmatprep.subr.bf16.mxu1 %v10637_v22  ;;  %v10639_v22 = vld [vmem:[#allocation3 + $0x60] ss:$0 sps:$4 sm:$0x11]  }
 0x2b4   : > { %3923 = vmatmul.mubr.bf16.gmra.mrb[36].mxu1 %v3751_v28  ;;  %v4263_v28 = vshrl.u32 %v10643_v23, 16 }
 0x2b5   : > { %3932 = vmatprep.mubr.bf16.mxu1 %v11974_v9  ;;  %4483 = vmatpush1.bf16.msra.mxu1 %v10635_v24  ;;  %v4271_v24 = vshrl.u32 %v10644_v17, 16 }
 0x2b6   : > { %4484 = vmatprep.subr.bf16.mxu1 %v10642_v27  ;;  %v3766_v27 = vrot.slane %v10639_v22, 1  ;;  %v10661_v22 = vld [vmem:[%s13266_s2 + $0x234] ss:$8 sps:$4 sm:$0xff]  }
 0x2b7   : > { %v12129_v36 = vpop.f32.mrb[40].mxu0 }
 0x2b8   : > { %v12131_v41 = vpop.f32.mrb[41].mxu0  ;;  %v3767_v38 = vsel %vm3742_vm10, %v3764_v16, %v3766_v27  ;;  %v4289_v16 = vshrl.u32 %v10649_v18, 16 }
 0x2b9   : > { %v12133_v45 = vpop.f32.mrb[42].mxu0  ;;  %4485 = vmatpush1.bf16.msra.mxu1 %v10640_v32  ;;  %v4274_v32 = vshll.u32 %v10644_v17, 16  ;;  %v4292_v17 = vshll.u32 %v10649_v18, 16  ;;  %v10679_v18 = vld [vmem:[%s13266_s2 + $0x274] ss:$8 sps:$4 sm:$0xff]  }
 0x2ba   : > { %v12135_v46 = vpop.f32.mrb[43].mxu0  ;;  %4989 = vmatprep.subr.bf16.mxu1 %v10647_v35  ;;  %v4273_v35 = vrot.slane %v4271_v24, 1  ;;  %v10653_v24 = vld [vmem:[#allocation3 + $0x20] sm:$0xff]   ;;  %v4291_v27 = vrot.slane %v4289_v16, 1  ;;  %v10658_v16 = vld [vmem:[#allocation3 + $0x30] sm:$0xff]  }
 0x2bb   : > { %v4276_v53 = vrot.slane %v4274_v32, 2  ;;  %v10665_v32 = vld [vmem:[%s13266_s2 + $0x244] ss:$8 sps:$4 sm:$0xff]  }
 0x2bc   : > { %3933 = vmatmul.mubr.bf16.gmra.mrb[40].mxu1 %v3753_v48  ;;  %v4265_v48 = vrot.slane %v4263_v28, 1  ;;  %v4294_v28 = vrot.slane %v4292_v17, 2  ;;  %v10677_v17 = vld [vmem:[%s13266_s2 + $0x270] ss:$8 sps:$4 sm:$0xff]  }
 0x2bd   : > { %3942 = vmatprep.mubr.bf16.mxu1 %v11974_v9  ;;  %v4277_v60 = vor.u32 %v4276_v53, %v4273_v35  ;;  %v4298_v35 = vshrl.u32 %v10653_v24, 16  ;;  %v10670_v53 = vld [vmem:[%s13266_s2 + $0x254] ss:$8 sps:$4 sm:$0xff]  }
 0x2be   : > { %v4269_v59 = vor.u32 %v4268_v51, %v4265_v48  ;;  %v4295_v48 = vor.u32 %v4294_v28, %v4291_v27  ;;  %v10663_v51 = vld [vmem:[%s13266_s2 + $0x240] ss:$8 sps:$4 sm:$0xff]  }
 0x2bf   : > { %v12139_v52 = vpop.f32.mrb[44].mxu0 }
 0x2c0   : > { %v12141_v54 = vpop.f32.mrb[45].mxu0  ;;  %v4278_v19 = vsel %vm4261_vm11, %v4269_v59, %v4277_v60  ;;  %v4300_v59 = vrot.slane %v4298_v35, 1 }
 0x2c1   : > { %v12143_v56 = vpop.f32.mrb[46].mxu0 }
 0x2c2   : > { %v12145_v57 = vpop.f32.mrb[47].mxu0 }
 0x2c4   : > { %3943 = vmatmul.mubr.bf16.gmra.mrb[44].mxu1 %v3755_v58  ;;  %v10648_v58 = vld [vmem:[#allocation3 + $0x10] sm:$0xff]  }
 0x2c5   : > { %3952 = vmatprep.mubr.bf16.mxu1 %v11974_v9  ;;  %v4283_v2 = vshll.u32 %v10648_v58, 16 }
 0x2cc   : > { %3953 = vmatmul.mubr.bf16.gmra.mrb[0].mxu1 %v3757_v61  ;;  %v4280_v61 = vshrl.u32 %v10648_v58, 16 }
 0x2cd   : > { %3962 = vmatprep.mubr.bf16.mxu1 %v11974_v9 }
 0x2ce   : > { %v4282_v6 = vrot.slane %v4280_v61, 1  ;;  %v10657_v61 = vld [vmem:[#allocation3 + $0x28] sm:$0xff]  }
 0x2d4   : > { %3963 = vmatmul.mubr.bf16.gmra.mrb[4].mxu1 %v3759_v5  ;;  %v10652_v5 = vld [vmem:[%s13266_s2 + $0x214] ss:$8 sps:$4 sm:$0xff]  }
 0x2d5   : > { %3972 = vmatprep.mubr.bf16.mxu1 %v11974_v9 }
 0x2dc   : > { %3973 = vmatmul.mubr.bf16.gmra.mrb[8].mxu1 %v3761_v8  ;;  %v4285_v8 = vrot.slane %v4283_v2, 2  ;;  %v10668_v2 = vld [vmem:[%s13266_s2 + $0x250] ss:$8 sps:$4 sm:$0xff]  }
 0x2dd   : > { %3982 = vmatprep.mubr.bf16.mxu1 %v11974_v9 }
 0x2de   : > { %v4286_v15 = vor.u32 %v4285_v8, %v4282_v6  ;;  %v4310_v6 = vshll.u32 %v10657_v61, 16  ;;  %v10672_v8 = vld [vmem:[%s13266_s2 + $0x260] ss:$8 sps:$4 sm:$0xff]  }
 0x2e0   : > { %v4287_v23 = vsel %vm4261_vm11, %v4277_v60, %v4286_v15  ;;  %v4296_v58 = vsel %vm4261_vm11, %v4286_v15, %v4295_v48  ;;  %v4312_v15 = vrot.slane %v4310_v6, 2 }
 0x2e4   : > { %3983 = vmatmul.mubr.bf16.gmra.mrb[12].mxu1 %v3763_v13  ;;  %v10656_v13 = vld [vmem:[%s13266_s2 + $0x224] ss:$8 sps:$4 sm:$0xff]  }
 0x2e5   : > { %3992 = vmatprep.mubr.bf16.mxu1 %v11974_v9 }
 0x2ec   : > { %3993 = vmatmul.mubr.bf16.gmra.mrb[16].mxu1 %v3765_v21  ;;  %v10654_v21 = vld [vmem:[%s13266_s2 + $0x220] ss:$8 sps:$4 sm:$0xff]  }
 0x2ed   : > { %4002 = vmatprep.mubr.bf16.mxu1 %v11974_v9 }
 0x2f4   : > { %4003 = vmatmul.mubr.bf16.gmra.mrb[20].mxu1 %v3767_v38  ;;  %v4301_v38 = vshll.u32 %v10653_v24, 16 }
 0x2f5   : > { %4502 = vmatprep.mubr.bf16.mxu1 %v11974_v9 }
 0x2f6   : > { %v4303_v60 = vrot.slane %v4301_v38, 2 }
 0x2fc   : > { %4503 = vmatmul.mubr.bf16.vlgmr.msra.gmra.mrb[24].mxu1 %v4278_v19  ;;  %v4307_v19 = vshrl.u32 %v10657_v61, 16 }
 0x2fd   : > { %4990 = vmatpush1.bf16.msra.mxu1 %v10645_v4  ;;  %4512 = vmatprep.mubr.bf16.mxu1 %v11974_v9  ;;  %v10674_v4 = vld [vmem:[%s13266_s2 + $0x264] ss:$8 sps:$4 sm:$0xff]  }
 0x2fe   : > { %4991 = vmatprep.subr.bf16.mxu1 %v10652_v5  ;;  %v4304_v5 = vor.u32 %v4303_v60, %v4300_v59 }
 0x301   : > { %4992 = vmatpush1.bf16.msra.mxu1 %v10650_v20  ;;  %v4305_v20 = vsel %vm4261_vm11, %v4295_v48, %v4304_v5 }
 0x302   : > { %4993 = vmatprep.subr.bf16.mxu1 %v10656_v13  ;;  %v4309_v13 = vrot.slane %v4307_v19, 1  ;;  %v10667_v19 = vld [vmem:[#allocation3 + $0x48] sm:$0xff]  }
 0x304   : > { %4513 = vmatmul.mubr.bf16.gmra.mrb[28].mxu1 %v4287_v23  ;;  %v4319_v23 = vshll.u32 %v10658_v16, 16 }
 0x305   : > { %4522 = vmatprep.mubr.bf16.mxu1 %v11974_v9  ;;  %4994 = vmatpush1.bf16.msra.mxu1 %v10654_v21  ;;  %v4313_v21 = vor.u32 %v4312_v15, %v4309_v13  ;;  %v10671_v13 = vld [vmem:[#allocation3 + $0x50] sm:$0xff]  }
 0x306   : > { %4995 = vmatprep.subr.bf16.mxu1 %v10661_v22  ;;  %v4316_v22 = vshrl.u32 %v10658_v16, 16  ;;  %v4321_v28 = vrot.slane %v4319_v23, 2 }
 0x307   : > { %v4314_v24 = vsel %vm4261_vm11, %v4304_v5, %v4313_v21 }
 0x308   : > { %v4318_v27 = vrot.slane %v4316_v22, 1 }
 0x309   : > { %4996 = vmatpush1.bf16.msra.mxu1 %v10659_v31  ;;  %v10662_v31 = vld [vmem:[#allocation3 + $0x38] sm:$0xff]  }
 0x30a   : > { %4997 = vmatprep.subr.bf16.mxu1 %v10665_v32  ;;  %v4322_v32 = vor.u32 %v4321_v28, %v4318_v27  ;;  %v4325_v35 = vshrl.u32 %v10662_v31, 16  ;;  %v4328_v38 = vshll.u32 %v10662_v31, 16  ;;  %v10675_v28 = vld [vmem:[#allocation3 + $0x58] sm:$0xff]  }
 0x30c   : > { %4523 = vmatmul.mubr.bf16.gmra.mrb[32].mxu1 %v4296_v58  ;;  %v4323_v48 = vsel %vm4261_vm11, %v4313_v21, %v4322_v32  ;;  %v10666_v58 = vld [vmem:[#allocation3 + $0x40] sm:$0xff]   ;;  %v4355_v21 = vshll.u32 %v10671_v13, 16 }
 0x30d   : > { %4532 = vmatprep.mubr.bf16.mxu1 %v11974_v9  ;;  %4998 = vmatpush1.bf16.msra.mxu1 %v10663_v51  ;;  %v4327_v51 = vrot.slane %v4325_v35, 1  ;;  %v4334_v60 = vshrl.u32 %v10666_v58, 16  ;;  %v4337_v61 = vshll.u32 %v10666_v58, 16  ;;  %v4364_v35 = vshll.u32 %v10675_v28, 16 }
 0x30e   : > { %4999 = vmatprep.subr.bf16.mxu1 %v10670_v53  ;;  %v4330_v53 = vrot.slane %v4328_v38, 2  ;;  %v4357_v27 = vrot.slane %v4355_v21, 2  ;;  %v10683_v21 = vld [vmem:[#allocation3 + $0x18] sm:$0xff]  }
 0x30f   : > { %v4339_v5 = vrot.slane %v4337_v61, 2 }
 0x310   : > { %v4331_v59 = vor.u32 %v4330_v53, %v4327_v51  ;;  %v4366_v51 = vrot.slane %v4364_v35, 2  ;;  %v10676_v53 = vld [vmem:[#allocation3 + $0x60] ss:$0 sps:$4 sm:$0x33]  }
 0x311   : > { %5000 = vmatpush1.bf16.msra.mxu1 %v10668_v2 }
 0x312   : > { %5001 = vmatprep.subr.bf16.mxu1 %v10674_v4  ;;  %v4332_v2 = vsel %vm4261_vm11, %v4322_v32, %v4331_v59  ;;  %v4336_v4 = vrot.slane %v4334_v60, 1  ;;  %v4361_v32 = vshrl.u32 %v10675_v28, 16  ;;  %v4373_v60 = vshll.u32 %v10676_v53, 16 }
 0x314   : > { %4533 = vmatmul.mubr.bf16.gmra.mrb[36].mxu1 %v4305_v20  ;;  %v4340_v6 = vor.u32 %v4339_v5, %v4336_v4  ;;  %v4375_v4 = vrot.slane %v4373_v60, 2  ;;  %v10688_v60 = vld [vmem:[#allocation3 + $0x40] sm:$0xff]  }
 0x315   : > { %4542 = vmatprep.mubr.bf16.mxu1 %v11974_v9  ;;  %5002 = vmatpush1.bf16.msra.mxu1 %v10672_v8  ;;  %v4343_v8 = vshrl.u32 %v10667_v19, 16 }
 0x316   : > { %5003 = vmatprep.subr.bf16.mxu1 %v10679_v18  ;;  %v4346_v18 = vshll.u32 %v10667_v19, 16  ;;  %v4341_v20 = vsel %vm4261_vm11, %v4331_v59, %v4340_v6  ;;  %v4370_v59 = vshrl.u32 %v10676_v53, 16  ;;  %v10687_v53 = vld [vmem:[#allocation3 + $0x38] sm:$0xff]  }
 0x317   : > { %v4345_v15 = vrot.slane %v4343_v8, 1  ;;  %v10681_v8 = vld [vmem:[#allocation3 + $0x8] sm:$0xff]  }
 0x318   : > { %v4348_v16 = vrot.slane %v4346_v18, 2 }
 0x319   : > { %5004 = vmatpush1.bf16.msra.mxu1 %v10677_v17  ;;  %v4352_v17 = vshrl.u32 %v10671_v13, 16 }
 0x31a   : > { %v4349_v22 = vor.u32 %v4348_v16, %v4345_v15  ;;  %v10682_v15 = vld [vmem:[#allocation3 + $0x10] sm:$0xff]  }
 0x31b   : > { %v4875_v16 = vrot.slane %v10682_v15, 2 }
 0x31c   : > { %4543 = vmatmul.mubr.bf16.gmra.mrb[40].mxu1 %v4314_v24  ;;  %v4350_v23 = vsel %vm4261_vm11, %v4340_v6, %v4349_v22  ;;  %v4354_v24 = vrot.slane %v4352_v17, 1  ;;  %v10680_v6 = vld [vmem:[#allocation3] sm:$0xfc]  }
 0x31d   : > { %4552 = vmatprep.mubr.bf16.mxu1 %v11974_v9  ;;  %v4872_v18 = vrot.slane %v10680_v6, 2  ;;  %v10690_v6 = vld [vmem:[#allocation3 + $0x50] sm:$0xff]  }
 0x31e   : > { %v4358_v31 = vor.u32 %v4357_v27, %v4354_v24  ;;  %v10684_v24 = vld [vmem:[#allocation3 + $0x20] sm:$0xff]  }
 0x31f   : > { %v4879_v27 = vrot.slane %v10684_v24, 2  ;;  %v10695_v24 = vld [vmem:[%s13267_s3 + $0x48] sm:$0xff]  }
 0x320   : > { %v4359_v38 = vsel %vm4261_vm11, %v4349_v22, %v4358_v31  ;;  %v4877_v22 = vrot.slane %v10683_v21, 2 }
 0x322   : > { %v4880_v28 = vsel %vm1317_vm1, %v4877_v22, %v4879_v27 }
 0x324   : > { %4553 = vmatmul.mubr.bf16.gmra.mrb[44].mxu1 %v4323_v48  ;;  %v4363_v48 = vrot.slane %v4361_v32, 1 }
 0x325   : > { %4562 = vmatprep.mubr.bf16.mxu1 %v11974_v9 }
 0x326   : > { %v4367_v58 = vor.u32 %v4366_v51, %v4363_v48 }
 0x328   : > { %v4368_v61 = vsel %vm4261_vm11, %v4358_v31, %v4367_v58  ;;  %v10685_v31 = vld [vmem:[#allocation3 + $0x28] sm:$0xff]  }
 0x329   : > { %v4881_v32 = vrot.slane %v10685_v31, 2  ;;  %v10699_v31 = vld [vmem:[%s13267_s3 + $0x58] sm:$0xff]  }
 0x32b   : > { %v4882_v35 = vsel %vm1317_vm1, %v4879_v27, %v4881_v32  ;;  %v10697_v27 = vld [vmem:[%s13267_s3 + $0x50] sm:$0xff]  }
 0x32c   : > { %4563 = vmatmul.mubr.bf16.gmra.mrb[0].mxu1 %v4332_v2  ;;  %v4372_v2 = vrot.slane %v4370_v59, 1 }
 0x32d   : > { %4572 = vmatprep.mubr.bf16.mxu1 %v11974_v9 }
 0x32e   : > { %v4376_v5 = vor.u32 %v4375_v4, %v4372_v2  ;;  %v10689_v4 = vld [vmem:[#allocation3 + $0x48] sm:$0xff]  }
 0x330   : > { %v4377_v19 = vsel %vm4261_vm11, %v4367_v58, %v4376_v5  ;;  %v4885_v58 = vrot.slane %v10687_v53, 2  ;;  %v4889_v5 = vrot.slane %v10689_v4, 2  ;;  %v10705_v53 = vld [vmem:[%s13267_s3 + $0x70] sm:$0xff]   ;;  %v8914_v4 = vld [vmem:[%s13270_s6 + $0x2] ss:$8 sm:$0x3] }
 0x334   : > { %4573 = vmatmul.mubr.bf16.gmra.mrb[4].mxu1 %v4341_v20  ;;  %v4873_v20 = vrot.slane %v10681_v8, 2  ;;  %v4891_v8 = vrot.slane %v10690_v6, 2 }
 0x335   : > { %4582 = vmatprep.mubr.bf16.mxu1 %v11974_v9 }
 0x336   : > { %v4874_v13 = vsel %vm1317_vm1, %v4872_v18, %v4873_v20  ;;  %v4876_v17 = vsel %vm1317_vm1, %v4873_v20, %v4875_v16  ;;  %v4892_v18 = vsel %vm1317_vm1, %v4889_v5, %v4891_v8  ;;  %v10691_v20 = vld [vmem:[#allocation3 + $0x58] sm:$0xff]  }
 0x33c   : > { %4583 = vmatmul.mubr.bf16.gmra.mrb[8].mxu1 %v4350_v23  ;;  %v4878_v23 = vsel %vm1317_vm1, %v4875_v16, %v4877_v22  ;;  %v10692_v16 = vld [vmem:[#allocation3 + $0x60] ss:$0 sps:$4 sm:$0x33]   ;;  %v10693_v22 = vld [vmem:[%s13267_s3 + $0x40] sm:$0xff]  }
 0x33d   : > { %4592 = vmatprep.mubr.bf16.mxu1 %v11974_v9  ;;  %9539 = vmatprep.subr.bf16.mxu0 %v10693_v22 }
 0x344   : > { %4593 = vmatmul.mubr.bf16.gmra.mrb[12].mxu1 %v4359_v38  ;;  %v10686_v38 = vld [vmem:[#allocation3 + $0x30] sm:$0xff]  }
 0x345   : > { %4602 = vmatprep.mubr.bf16.mxu1 %v11974_v9  ;;  %v4883_v48 = vrot.slane %v10686_v38, 2  ;;  %v10702_v38 = vld [vmem:[%s13267_s3 + $0x20] sm:$0xff]  }
 0x347   : > { %v4884_v51 = vsel %vm1317_vm1, %v4881_v32, %v4883_v48  ;;  %v4886_v59 = vsel %vm1317_vm1, %v4883_v48, %v4885_v58  ;;  %v10700_v32 = vld [vmem:[%s13267_s3 + $0x18] sm:$0xff]   ;;  %v10703_v48 = vld [vmem:[%s13267_s3 + $0x68] sm:$0xff]  }
 0x34c   : > { %4603 = vmatmul.mubr.bf16.gmra.mrb[16].mxu1 %v4368_v61  ;;  %v4887_v61 = vrot.slane %v10688_v60, 2  ;;  %v10708_v60 = vld [vmem:[%s13267_s3 + $0x38] sm:$0xff]  }
 0x34d   : > { %4612 = vmatprep.mubr.bf16.mxu1 %v11974_v9 }
 0x34e   : > { %v4888_v2 = vsel %vm1317_vm1, %v4885_v58, %v4887_v61  ;;  %v10706_v58 = vld [vmem:[%s13267_s3 + $0x30] sm:$0xff]  }
 0x354   : > { %4613 = vmatmul.mubr.bf16.gmra.mrb[20].mxu1 %v4377_v19  ;;  %v4890_v19 = vsel %vm1317_vm1, %v4887_v61, %v4889_v5  ;;  %v10709_v61 = vld [vmem:[%s13267_s3 + $0xc0] sm:$0xff]   ;;  %v5293_v5 = vsub.s32 1, %v11808_v42 }
 0x355   : > { %5021 = vmatprep.mubr.bf16.mxu1 %v11974_v9 }
 0x35c   : > { %5022 = vmatmul.mubr.bf16.vlgmr.msra.gmra.mrb[24].mxu1 %v4874_v13  ;;  %v4893_v13 = vrot.slane %v10691_v20, 2 }
 0x35d   : > { %5031 = vmatprep.mubr.bf16.mxu1 %v11974_v9 }
 0x35e   : > { %v4894_v15 = vsel %vm1317_vm1, %v4891_v8, %v4893_v13 }
 0x364   : > { %5032 = vmatmul.mubr.bf16.gmra.mrb[28].mxu1 %v4876_v17  ;;  %v4895_v17 = vrot.slane %v10692_v16, 2 }
 0x365   : > { %5041 = vmatprep.mubr.bf16.mxu1 %v11974_v9 }
 0x366   : > { %v4896_v21 = vsel %vm1317_vm1, %v4893_v13, %v4895_v17  ;;  %vm5692_vm1 = vcmp.ge.s32.totalorder %v11808_v42, 2 }
 0x36c   : > { %5042 = vmatmul.mubr.bf16.gmra.mrb[32].mxu1 %v4878_v23  ;;  %v10694_v23 = vld [vmem:[%s13267_s3] sm:$0xff]  }
 0x36d   : > { %5051 = vmatprep.mubr.bf16.mxu1 %v11974_v9  ;;  %9540 = vmatpush3.bf16.msra.mxu0 %v10694_v23 }
 0x36e   : > { %9541 = vmatprep.subr.bf16.mxu0 %v10695_v24 }
 0x374   : > { %5052 = vmatmul.mubr.bf16.gmra.mrb[36].mxu1 %v4880_v28  ;;  %v10698_v28 = vld [vmem:[%s13267_s3 + $0x10] sm:$0xff]  }
 0x375   : > { %5061 = vmatprep.mubr.bf16.mxu1 %v11974_v9 }
 0x37c   : > { %5062 = vmatmul.mubr.bf16.gmra.mrb[40].mxu1 %v4882_v35  ;;  %v10701_v35 = vld [vmem:[%s13267_s3 + $0x60] sm:$0xff]  }
 0x37d   : > { %5071 = vmatprep.mubr.bf16.mxu1 %v11974_v9 }
 0x384   : > { %5072 = vmatmul.mubr.bf16.gmra.mrb[44].mxu1 %v4884_v51  ;;  %v10704_v51 = vld [vmem:[%s13267_s3 + $0x28] sm:$0xff]  }
 0x385   : > { %5081 = vmatprep.mubr.bf16.mxu1 %v11974_v9 }
 0x38c   : > { %5082 = vmatmul.mubr.bf16.gmra.mrb[0].mxu1 %v4886_v59  ;;  %v10707_v59 = vld [vmem:[%s13267_s3 + $0x78] sm:$0xff]  }
 0x38d   : > { %5091 = vmatprep.mubr.bf16.mxu1 %v11974_v9 }
 0x394   : > { %5092 = vmatmul.mubr.bf16.gmra.mrb[4].mxu1 %v4888_v2  ;;  %v5289_v2 = vsub.s32 0, %v11808_v42 }
 0x395   : > { %5101 = vmatprep.mubr.bf16.mxu1 %v11974_v9 }
 0x396   : > { %v12312_v6 = vrot.slane %v8914_v4, %v5289_v2 }
 0x39c   : > { %5102 = vmatmul.mubr.bf16.gmra.mrb[8].mxu1 %v4890_v19  ;;  %v8915_v19 = vld [vmem:[%s13270_s6 + $0x3] ss:$8 sm:$0x3] }
 0x39d   : > { %5111 = vmatprep.mubr.bf16.mxu1 %v11974_v9  ;;  %v12317_v13 = vrot.slane %v8915_v19, %v5289_v2  ;;  %v12320_v17 = vrot.slane %v8915_v19, %v5293_v5 }
 0x3a4   : > { %5112 = vmatmul.mubr.bf16.gmra.mrb[12].mxu1 %v4892_v18  ;;  %v12314_v18 = vrot.slane %v8914_v4, %v5293_v5 }
 0x3a5   : > { %5121 = vmatprep.mubr.bf16.mxu1 %v11974_v9 }
 0x3ac   : > { %5122 = vmatmul.mubr.bf16.gmra.mrb[16].mxu1 %v4894_v15 }
 0x3ad   : > { %5131 = vmatprep.mubr.bf16.mxu1 %v11974_v9  ;;  %v10696_v9 = vld [vmem:[%s13267_s3 + $0x8] sm:$0xff]  }
 0x3ae   : > { %9542 = vmatpush3.bf16.msra.mxu0 %v10696_v9 }
 0x3af   : > { %9543 = vmatprep.subr.bf16.mxu0 %v10697_v27 }
 0x3b2   : > { %9544 = vmatpush3.bf16.msra.mxu0 %v10698_v28 }
 0x3b3   : > { %9545 = vmatprep.subr.bf16.mxu0 %v10699_v31 }
 0x3b4   : > { %5132 = vmatmul.mubr.bf16.gmra.mrb[20].mxu1 %v4896_v21 }
 0x3b6   : > { %9546 = vmatpush3.bf16.msra.mxu0 %v10700_v32 }
 0x3b7   : > { %9547 = vmatprep.subr.bf16.mxu0 %v10701_v35 }
 0x3ba   : > { %9548 = vmatpush3.bf16.msra.mxu0 %v10702_v38 }
 0x3bb   : > { %9549 = vmatprep.subr.bf16.mxu0 %v10703_v48 }
 0x3be   : > { %9550 = vmatpush3.bf16.msra.mxu0 %v10704_v51 }
 0x3bf   : > { %9551 = vmatprep.subr.bf16.mxu0 %v10705_v53 }
 0x3c2   : > { %9552 = vmatpush3.bf16.msra.mxu0 %v10706_v58 }
 0x3c3   : > { %9553 = vmatprep.subr.bf16.mxu0 %v10707_v59 }
 0x3c6   : > { %9554 = vmatpush3.bf16.msra.mxu0 %v10708_v60 }
 0x3c7   : > { %9627 = vmatprep.subr.bf16.mxu0 %v10709_v61 }
 0x42f   : > { %v5023_v8 = vpop.f32.mrb[24].mxu1 }
 0x430   : > { %v9905_v20 = vadd.f32 %v5023_v8, %v12036_v26  ;;  %v5025_v15 = vpop.f32.mrb[25].mxu1 }
 0x431   : > { %v9906_v16 = vadd.f32 %v5025_v15, %v12039_v29  ;;  %v5027_v21 = vpop.f32.mrb[26].mxu1 }
 0x432   : > { %v5297_v22 = vmul.f32 %v9905_v20, %v12312_v6  ;;  %v9907_v23 = vadd.f32 %v5027_v21, %v12041_v30  ;;  %v5029_v24 = vpop.f32.mrb[27].mxu1 }
 0x433   : > { %v5298_v9 = vmul.f32 %v9906_v16, %v12314_v18  ;;  %v9908_v27 = vadd.f32 %v5029_v24, %v12043_v34 }
 0x434   : > { %v5356_v28 = vadd.f32 %v12317_v13, %v5297_v22  ;;  %v5299_v26 = vmul.f32 %v9907_v23, %v12312_v6 }
 0x435   : > { %v5357_v31 = vadd.f32 %v12320_v17, %v5298_v9  ;;  %v5300_v29 = vmul.f32 %v9908_v27, %v12314_v18 }
 0x436   : > { %v9152_v32 = vmul.f32 -1.442695, %v5356_v28  ;;  %v5358_v35 = vadd.f32 %v12317_v13, %v5299_v26 }
 0x437   : > { %v9153_v38 = vmul.f32 -1.442695, %v5357_v31  ;;  %v5359_v48 = vadd.f32 %v12320_v17, %v5300_v29  ;;  %v5033_v30 = vpop.f32.mrb[28].mxu1 }
 0x438   : > { %10891 = vpow2.f32 %v9152_v32  ;;  %v9154_v51 = vmul.f32 -1.442695, %v5358_v35  ;;  %v9909_v53 = vadd.f32 %v5033_v30, %v12046_v40  ;;  %v5035_v34 = vpop.f32.mrb[29].mxu1 }
 0x439   : > { %10893 = vpow2.f32 %v9153_v38  ;;  %v9155_v58 = vmul.f32 -1.442695, %v5359_v48  ;;  %v9910_v59 = vadd.f32 %v5035_v34, %v12049_v43  ;;  %v5037_v60 = vpop.f32.mrb[30].mxu1 }
 0x43a   : > { %10895 = vpow2.f32 %v9154_v51  ;;  %v5301_v61 = vmul.f32 %v9909_v53, %v12312_v6  ;;  %v9911_v2 = vadd.f32 %v5037_v60, %v12051_v44  ;;  %v5039_v4 = vpop.f32.mrb[31].mxu1 }
 0x43b   : > { %10897 = vpow2.f32 %v9155_v58  ;;  %v5302_v5 = vmul.f32 %v9910_v59, %v12314_v18  ;;  %v9912_v19 = vadd.f32 %v5039_v4, %v12053_v47 }
 0x43c   : > { %v5360_v8 = vadd.f32 %v12317_v13, %v5301_v61  ;;  %v5303_v40 = vmul.f32 %v9911_v2, %v12312_v6 }
 0x43d   : > { %v5361_v20 = vadd.f32 %v12320_v17, %v5302_v5  ;;  %v5304_v43 = vmul.f32 %v9912_v19, %v12314_v18 }
 0x43e   : > { %v9156_v15 = vmul.f32 -1.442695, %v5360_v8  ;;  %v5362_v16 = vadd.f32 %v12317_v13, %v5303_v40 }
 0x43f   : > { %v9157_v21 = vmul.f32 -1.442695, %v5361_v20  ;;  %v5363_v44 = vadd.f32 %v12320_v17, %v5304_v43  ;;  %v5043_v22 = vpop.f32.mrb[32].mxu1  ;;  %v9200_v20 = vsel %vm5692_vm1, 1.0, %v11270_v0  ;;  %vm11279_vm1 = vmmov 0  }
 0x440   : > { %10899 = vpow2.f32 %v9156_v15  ;;  %v9158_v23 = vmul.f32 -1.442695, %v5362_v16  ;;  %v9913_v24 = vadd.f32 %v5043_v22, %v12071_v62  ;;  %v5045_v47 = vpop.f32.mrb[33].mxu1 }
 0x441   : > { %10901 = vpow2.f32 %v9157_v21  ;;  %v9159_v9 = vmul.f32 -1.442695, %v5363_v44  ;;  %v9914_v27 = vadd.f32 %v5045_v47, %v12073_v3  ;;  %v5047_v28 = vpop.f32.mrb[34].mxu1 }
 0x442   : > { %v10892_v26 = vpop.eup %10891  ;;  %10903 = vpow2.f32 %v9158_v23  ;;  %v5305_v31 = vmul.f32 %v9913_v24, %v12312_v6  ;;  %v9915_v29 = vadd.f32 %v5047_v28, %v12075_v63  ;;  %v5049_v32 = vpop.f32.mrb[35].mxu1 }
 0x443   : > { %v10894_v35 = vpop.eup %10893  ;;  %v5548_v38 = vadd.f32 1.0, %v10892_v26  ;;  %10905 = vpow2.f32 %v9159_v9  ;;  %v5306_v48 = vmul.f32 %v9914_v27, %v12314_v18  ;;  %v9916_v62 = vadd.f32 %v5049_v32, %v12080_v1 }
 0x444   : > { %v10896_v30 = vpop.eup %10895  ;;  %v5549_v51 = vadd.f32 1.0, %v10894_v35  ;;  %v5364_v3 = vadd.f32 %v12317_v13, %v5305_v31  ;;  %v5307_v53 = vmul.f32 %v9915_v29, %v12312_v6 }
 0x445   : > { %v10898_v34 = vpop.eup %10897  ;;  %10907 = vrcp.f32 %v5548_v38  ;;  %v5550_v58 = vadd.f32 1.0, %v10896_v30  ;;  %v5365_v63 = vadd.f32 %v12320_v17, %v5306_v48  ;;  %v5308_v59 = vmul.f32 %v9916_v62, %v12314_v18 }
 0x446   : > { %10909 = vrcp.f32 %v5549_v51  ;;  %v5551_v60 = vadd.f32 1.0, %v10898_v34  ;;  %v9160_v61 = vmul.f32 -1.442695, %v5364_v3  ;;  %v5366_v1 = vadd.f32 %v12317_v13, %v5307_v53 }
 0x447   : > { %10911 = vrcp.f32 %v5550_v58  ;;  %v9161_v2 = vmul.f32 -1.442695, %v5365_v63  ;;  %v5367_v4 = vadd.f32 %v12320_v17, %v5308_v59  ;;  %v5053_v5 = vpop.f32.mrb[36].mxu1 }
 0x448   : > { %10913 = vrcp.f32 %v5551_v60  ;;  %v9162_v19 = vmul.f32 -1.442695, %v5366_v1  ;;  %v9917_v8 = vadd.f32 %v5053_v5, %v12093_v10  ;;  %v5055_v40 = vpop.f32.mrb[37].mxu1  ;;  %v12390_v5 = vsel %vm5866_vm13, 1.0, %v11270_v0 }
 0x449   : > { %10915 = vpow2.f32 %v9160_v61  ;;  %v9163_v43 = vmul.f32 -1.442695, %v5367_v4  ;;  %v9918_v15 = vadd.f32 %v5055_v40, %v12095_v11  ;;  %v5057_v16 = vpop.f32.mrb[38].mxu1 }
 0x44a   : > { %v10900_v21 = vpop.eup %10899  ;;  %10917 = vpow2.f32 %v9161_v2  ;;  %v5309_v44 = vmul.f32 %v9917_v8, %v12312_v6  ;;  %v9919_v22 = vadd.f32 %v5057_v16, %v12097_v12  ;;  %v5059_v10 = vpop.f32.mrb[39].mxu1 }
 0x44b   : > { %v10902_v23 = vpop.eup %10901  ;;  %v5552_v24 = vadd.f32 1.0, %v10900_v21  ;;  %10919 = vpow2.f32 %v9162_v19  ;;  %v5310_v47 = vmul.f32 %v9918_v15, %v12314_v18  ;;  %v9920_v9 = vadd.f32 %v5059_v10, %v12102_v14 }
 0x44c   : > { %v10904_v27 = vpop.eup %10903  ;;  %v5553_v11 = vadd.f32 1.0, %v10902_v23  ;;  %10921 = vpow2.f32 %v9163_v43  ;;  %v5368_v28 = vadd.f32 %v12317_v13, %v5309_v44  ;;  %v5311_v26 = vmul.f32 %v9919_v22, %v12312_v6 }
 0x44d   : > { %v10906_v31 = vpop.eup %10905  ;;  %10923 = vrcp.f32 %v5552_v24  ;;  %v5554_v29 = vadd.f32 1.0, %v10904_v27  ;;  %v5369_v12 = vadd.f32 %v12320_v17, %v5310_v47  ;;  %v5312_v32 = vmul.f32 %v9920_v9, %v12314_v18 }
 0x44e   : > { %10925 = vrcp.f32 %v5553_v11  ;;  %v5555_v35 = vadd.f32 1.0, %v10906_v31  ;;  %v9164_v38 = vmul.f32 -1.442695, %v5368_v28  ;;  %v5370_v48 = vadd.f32 %v12317_v13, %v5311_v26 }
 0x44f   : > { %v10908_v14 = vpop.eup %10907  ;;  %10927 = vrcp.f32 %v5554_v29  ;;  %v9165_v62 = vmul.f32 -1.442695, %v5369_v12  ;;  %v5371_v30 = vadd.f32 %v12320_v17, %v5312_v32  ;;  %v5063_v51 = vpop.f32.mrb[40].mxu1 }
 0x450   : > { %v10910_v3 = vpop.eup %10909  ;;  %v12377_v53 = vmul.f32 %v10908_v14, %v9200_v20  ;;  %10929 = vrcp.f32 %v5555_v35  ;;  %v9166_v34 = vmul.f32 -1.442695, %v5370_v48  ;;  %v9921_v58 = vadd.f32 %v5063_v51, %v12129_v36  ;;  %v5065_v63 = vpop.f32.mrb[41].mxu1 }
 0x451   : > { %v12380_v59 = vpop.eup %10911  ;;  %v12382_v60 = vmul.f32 %v10910_v3, %v9200_v20  ;;  %10931 = vpow2.f32 %v9164_v38  ;;  %v9167_v61 = vmul.f32 -1.442695, %v5371_v30  ;;  %v9922_v1 = vadd.f32 %v5065_v63, %v12131_v41  ;;  %v5067_v2 = vpop.f32.mrb[42].mxu1 }
 0x452   : > { %v12385_v4 = vpop.eup %10913  ;;  %10933 = vpow2.f32 %v9165_v62  ;;  %v5313_v36 = vmul.f32 %v9921_v58, %v12312_v6  ;;  %v9923_v19 = vadd.f32 %v5067_v2, %v12133_v45  ;;  %v5069_v8 = vpop.f32.mrb[43].mxu1  ;;  %v11182_v23 = vpack.c.bf16 %v12380_v59, %v12377_v53 }
 0x453   : > { %v10916_v40 = vpop.eup %10915  ;;  %v9430_v20 = vpack.c.bf16 %v12382_v60, %v12377_v53  ;;  %v9431_v41 = vpack.c.bf16 %v12385_v4, %v12380_v59  ;;  %10935 = vpow2.f32 %v9166_v34  ;;  %v5314_v43 = vmul.f32 %v9922_v1, %v12314_v18  ;;  %v10713_v59 = vld [vmem:[%s13267_s3 + $0xd0] sm:$0xff]  }
 0x454   : > { %v10918_v15 = vpop.eup %10917  ;;  %v5556_v25 = vadd.f32 1.0, %v10916_v40  ;;  %10937 = vpow2.f32 %v9167_v61  ;;  %v5372_v16 = vadd.f32 %v12317_v13, %v5313_v36  ;;  %v5315_v21 = vmul.f32 %v9923_v19, %v12312_v6 }
 0x455   : > { %v10920_v44 = vpop.eup %10919  ;;  %6676 = vst [vmem:[#allocation4] sm:$0xff] %v9430_v20  ;;  %6677 = vst [vmem:[#allocation4 + $0x8] sm:$0xff] %v9431_v41  ;;  %v5557_v45 = vadd.f32 1.0, %v10918_v15  ;;  %v5373_v22 = vadd.f32 %v12320_v17, %v5314_v43  ;;  %v9924_v10 = vadd.f32 %v5069_v8, %v12135_v46 }
 0x456   : > { %v10922_v24 = vpop.eup %10921  ;;  %10939 = vrcp.f32 %v5556_v25  ;;  %v5558_v47 = vadd.f32 1.0, %v10920_v44  ;;  %v9168_v9 = vmul.f32 -1.442695, %v5372_v16  ;;  %v5374_v27 = vadd.f32 %v12317_v13, %v5315_v21 }
 0x457   : > { %v10924_v11 = vpop.eup %10923  ;;  %10941 = vrcp.f32 %v5557_v45  ;;  %v5559_v28 = vadd.f32 1.0, %v10922_v24  ;;  %v9169_v26 = vmul.f32 -1.442695, %v5373_v22  ;;  %v5316_v31 = vmul.f32 %v9924_v10, %v12314_v18  ;;  %v5073_v29 = vpop.f32.mrb[44].mxu1 }
 0x458   : > { %v10926_v12 = vpop.eup %10925  ;;  %v12407_v32 = vmul.f32 0.0, %v10924_v11  ;;  %10943 = vrcp.f32 %v5558_v47  ;;  %v9170_v46 = vmul.f32 -1.442695, %v5374_v27  ;;  %v9925_v35 = vadd.f32 %v5073_v29, %v12139_v52  ;;  %v5075_v38 = vpop.f32.mrb[45].mxu1  ;;  %v10710_v11 = vld [vmem:[%s13267_s3 + $0x80] sm:$0xff]  }
 0x459   : > { %v10928_v48 = vpop.eup %10927  ;;  %v12410_v14 = vmul.f32 0.0, %v10926_v12  ;;  %10945 = vrcp.f32 %v5559_v28  ;;  %v5375_v62 = vadd.f32 %v12320_v17, %v5316_v31  ;;  %v9926_v30 = vadd.f32 %v5075_v38, %v12141_v54  ;;  %v5077_v51 = vpop.f32.mrb[46].mxu1 }
 0x45a   : > { %v10930_v3 = vpop.eup %10929  ;;  %v12415_v34 = vmul.f32 %v10928_v48, %v12364_v49  ;;  %10947 = vpow2.f32 %v9168_v9  ;;  %v5317_v58 = vmul.f32 %v9925_v35, %v12312_v6  ;;  %v9927_v63 = vadd.f32 %v5077_v51, %v12143_v56  ;;  %v5079_v52 = vpop.f32.mrb[47].mxu1 }
 0x45b   : > { %v10932_v61 = vpop.eup %10931  ;;  %v9432_v1 = vpack.c.bf16 %v12410_v14, %v12407_v32  ;;  %v12422_v2 = vmul.f32 %v10930_v3, %v12364_v49  ;;  %10949 = vpow2.f32 %v9169_v26  ;;  %v9171_v54 = vmul.f32 -1.442695, %v5375_v62 }
 0x45c   : > { %v10934_v36 = vpop.eup %10933  ;;  %v5560_v19 = vadd.f32 1.0, %v10932_v61  ;;  %10951 = vpow2.f32 %v9170_v46  ;;  %v5376_v8 = vadd.f32 %v12317_v13, %v5317_v58  ;;  %v5318_v40 = vmul.f32 %v9926_v30, %v12314_v18  ;;  %v10712_v61 = vld [vmem:[%s13267_s3 + $0x88] sm:$0xff]  }
 0x45d   : > { %v10936_v20 = vpop.eup %10935  ;;  %6678 = vst [vmem:[#allocation4 + $0x10] sm:$0xff] %v9432_v1  ;;  %v9433_v56 = vpack.c.bf16 %v12422_v2, %v12415_v34  ;;  %v5561_v41 = vadd.f32 1.0, %v10934_v36  ;;  %10953 = vpow2.f32 %v9171_v54  ;;  %v5319_v43 = vmul.f32 %v9927_v63, %v12312_v6 }
 0x45e   : > { %v10938_v49 = vpop.eup %10937  ;;  %10955 = vrcp.f32 %v5560_v19  ;;  %v5562_v15 = vadd.f32 1.0, %v10936_v20  ;;  %v9172_v25 = vmul.f32 -1.442695, %v5376_v8  ;;  %v5377_v16 = vadd.f32 %v12320_v17, %v5318_v40 }
 0x45f   : > { %6679 = vst [vmem:[#allocation4 + $0x18] sm:$0xff] %v9433_v56  ;;  %10957 = vrcp.f32 %v5561_v41  ;;  %v5563_v21 = vadd.f32 1.0, %v10938_v49  ;;  %v5378_v44 = vadd.f32 %v12317_v13, %v5319_v43  ;;  %v9928_v45 = vadd.f32 %v5079_v52, %v12145_v57  ;;  %v5083_v22 = vpop.f32.mrb[0].mxu1 }
 0x460   : > { %v12432_v10 = vpop.eup %10939  ;;  %10959 = vrcp.f32 %v5562_v15  ;;  %v9173_v24 = vmul.f32 -1.442695, %v5377_v16  ;;  %v5321_v47 = vmul.f32 %v12312_v6, %v5083_v22  ;;  %v11183_v9 = vpack.c.bf16 %v12385_v4, %v12382_v60  ;;  %v5085_v27 = vpop.f32.mrb[1].mxu1  ;;  %v10711_v60 = vld [vmem:[%s13267_s3 + $0xc8] sm:$0xff]   ;;  %v10714_v22 = vld [vmem:[%s13267_s3 + $0x90] sm:$0xff]  }
 0x461   : > { %v12440_v28 = vpop.eup %10941  ;;  %10961 = vrcp.f32 %v5563_v21  ;;  %v9174_v57 = vmul.f32 -1.442695, %v5378_v44  ;;  %v5320_v26 = vmul.f32 %v9928_v45, %v12314_v18  ;;  %v5322_v31 = vmul.f32 %v12314_v18, %v5085_v27  ;;  %v5087_v29 = vpop.f32.mrb[2].mxu1 }
 0x462   : > { %v10944_v4 = vpop.eup %10943  ;;  %v9434_v12 = vpack.c.bf16 %v12440_v28, %v12432_v10  ;;  %10963 = vpow2.f32 %v9172_v25  ;;  %v5380_v46 = vadd.f32 %v12317_v13, %v5321_v47  ;;  %7004 = vmatprep.mubr.bf16.mxu0 %v11183_v9  ;;  %v5323_v35 = vmul.f32 %v12312_v6, %v5087_v29  ;;  %v5089_v38 = vpop.f32.mrb[3].mxu1 }
 0x463   : > { %v10946_v48 = vpop.eup %10945  ;;  %v12452_v62 = vmul.f32 0.0, %v10944_v4  ;;  %10965 = vpow2.f32 %v9173_v24  ;;  %v5379_v30 = vadd.f32 %v12320_v17, %v5320_v26  ;;  %v5381_v51 = vadd.f32 %v12320_v17, %v5322_v31  ;;  %7005 = vmatmul.mubr.bf16.vlgmr.msra.gmra.mrb[48].mxu0 %v11182_v23 }
 0x464   : > { %v10948_v3 = vpop.eup %10947  ;;  %6680 = vst [vmem:[#allocation4 + $0x20] sm:$0xff] %v9434_v12  ;;  %v12459_v58 = vmul.f32 0.0, %v10946_v48  ;;  %10967 = vpow2.f32 %v9174_v57  ;;  %v9176_v63 = vmul.f32 -1.442695, %v5380_v46  ;;  %v5382_v52 = vadd.f32 %v12317_v13, %v5323_v35  ;;  %9628 = vmatpush3.bf16.msra.mxu0 %v10710_v11 }
 0x465   : > { %v10950_v1 = vpop.eup %10949  ;;  %v5564_v54 = vadd.f32 1.0, %v10948_v3  ;;  %v9175_v36 = vmul.f32 -1.442695, %v5379_v30  ;;  %v9177_v19 = vmul.f32 -1.442695, %v5381_v51  ;;  %v5324_v53 = vmul.f32 %v12314_v18, %v5089_v38  ;;  %9629 = vmatprep.subr.bf16.mxu0 %v10711_v60  ;;  %v10716_v38 = vld [vmem:[%s13267_s3 + $0x98] sm:$0xff]  }
 0x466   : > { %v10952_v23 = vpop.eup %10951  ;;  %v9435_v8 = vpack.c.bf16 %v12459_v58, %v12452_v62  ;;  %v5565_v40 = vadd.f32 1.0, %v10950_v1  ;;  %10969 = vpow2.f32 %v9176_v63  ;;  %v9178_v20 = vmul.f32 -1.442695, %v5382_v52 }
 0x467   : > { %v10954_v56 = vpop.eup %10953  ;;  %10971 = vrcp.f32 %v5564_v54  ;;  %v5566_v41 = vadd.f32 1.0, %v10952_v23  ;;  %v5383_v43 = vadd.f32 %v12320_v17, %v5324_v53  ;;  %v5093_v49 = vpop.f32.mrb[4].mxu1  ;;  %v11184_v15 = vpack.c.bf16 %v12422_v2, %v12410_v14 }
 0x468   : > { %v10956_v25 = vpop.eup %10955  ;;  %6681 = vst [vmem:[#allocation4 + $0x28] sm:$0xff] %v9435_v8  ;;  %10973 = vrcp.f32 %v5565_v40  ;;  %v5567_v16 = vadd.f32 1.0, %v10954_v56  ;;  %v5325_v21 = vmul.f32 %v12312_v6, %v5093_v49  ;;  %v5095_v44 = vpop.f32.mrb[5].mxu1  ;;  %v11185_v45 = vpack.c.bf16 %v12415_v34, %v12407_v32  ;;  %9630 = vmatpush3.bf16.msra.mxu0 %v10712_v61  ;;  %v10715_v32 = vld [vmem:[%s13267_s3 + $0xd8] sm:$0xff]  }
 0x469   : > { %v10958_v24 = vpop.eup %10957  ;;  %v12481_v47 = vmul.f32 %v10956_v25, %v12390_v5  ;;  %10975 = vrcp.f32 %v5566_v41  ;;  %v9179_v14 = vmul.f32 -1.442695, %v5383_v43  ;;  %v5326_v2 = vmul.f32 %v12314_v18, %v5095_v44  ;;  %v5097_v9 = vpop.f32.mrb[6].mxu1  ;;  %7012 = vmatprep.mubr.bf16.mxu0 %v11184_v15  ;;  %9631 = vmatprep.subr.bf16.mxu0 %v10713_v59  ;;  %v10719_v43 = vld [vmem:[%s13267_s3 + $0xe8] sm:$0xff]  }
 0x46a   : > { %v12487_v34 = vpop.eup %10959  ;;  %v12490_v27 = vmul.f32 %v10958_v24, %v12390_v5  ;;  %10977 = vrcp.f32 %v5567_v16  ;;  %v5384_v11 = vadd.f32 %v12317_v13, %v5325_v21  ;;  %v5327_v57 = vmul.f32 %v12312_v6, %v5097_v9  ;;  %v5099_v26 = vpop.f32.mrb[7].mxu1 }
 0x46b   : > { %v12494_v31 = vpop.eup %10961  ;;  %10979 = vpow2.f32 %v9175_v36  ;;  %v5385_v29 = vadd.f32 %v12320_v17, %v5326_v2  ;;  %v5328_v60 = vmul.f32 %v12314_v18, %v5099_v26  ;;  %7013 = vmatmul.mubr.bf16.gmra.mrb[52].mxu0 %v11185_v45  ;;  %v11186_v4 = vpack.c.bf16 %v12459_v58, %v12440_v28 }
 0x46c   : > { %v10964_v12 = vpop.eup %10963  ;;  %v9436_v5 = vpack.c.bf16 %v12490_v27, %v12481_v47  ;;  %v9437_v46 = vpack.c.bf16 %v12494_v31, %v12487_v34  ;;  %v12507_v35 = vsel %vm5965_vm14, 1.0, %v11270_v0  ;;  %10981 = vpow2.f32 %v9177_v19  ;;  %9632 = vmatpush3.bf16.msra.mxu0 %v10714_v22 }
 0x46d   : > { %v10966_v48 = vpop.eup %10965  ;;  %v5568_v28 = vadd.f32 1.0, %v10964_v12  ;;  %10983 = vpow2.f32 %v9178_v20  ;;  %v9180_v30 = vmul.f32 -1.442695, %v5384_v11  ;;  %v5386_v51 = vadd.f32 %v12317_v13, %v5327_v57  ;;  %7020 = vmatprep.mubr.bf16.mxu0 %v11186_v4  ;;  %9633 = vmatprep.subr.bf16.mxu0 %v10715_v32 }
 0x46e   : > { %v10968_v3 = vpop.eup %10967  ;;  %6682 = vst [vmem:[#allocation4 + $0x30] sm:$0xff] %v9436_v5  ;;  %6683 = vst [vmem:[#allocation4 + $0x38] sm:$0xff] %v9437_v46  ;;  %v5569_v58 = vadd.f32 1.0, %v10966_v48  ;;  %10985 = vpow2.f32 %v9179_v14  ;;  %v5387_v63 = vadd.f32 %v12320_v17, %v5328_v60  ;;  %v11187_v52 = vpack.c.bf16 %v12452_v62, %v12432_v10  ;;  %v10718_v10 = vld [vmem:[%s13267_s3 + $0xa0] sm:$0xff]  }
 0x46f   : > { %10987 = vrcp.f32 %v5568_v28  ;;  %v5570_v61 = vadd.f32 1.0, %v10968_v3  ;;  %v9181_v1 = vmul.f32 -1.442695, %v5385_v29  ;;  %v5103_v54 = vpop.f32.mrb[8].mxu1  ;;  %v11188_v36 = vpack.c.bf16 %v12494_v31, %v12490_v27  ;;  %v10720_v27 = vld [vmem:[%s13267_s3 + $0xa8] sm:$0xff]   ;;  %v10721_v31 = vld [vmem:[%s13267_s3 + $0xf0] sm:$0xff]  }
 0x470   : > { %v10970_v19 = vpop.eup %10969  ;;  %10989 = vrcp.f32 %v5569_v58  ;;  %v9182_v53 = vmul.f32 -1.442695, %v5386_v51  ;;  %v5329_v59 = vmul.f32 %v12312_v6, %v5103_v54  ;;  %v5105_v23 = vpop.f32.mrb[9].mxu1  ;;  %v11189_v8 = vpack.c.bf16 %v12487_v34, %v12481_v47  ;;  %9634 = vmatpush3.bf16.msra.mxu0 %v10716_v38  ;;  %v10722_v58 = vld [vmem:[%s13267_s3 + $0xb0] sm:$0xff]  }
 0x471   : > { %v10972_v62 = vpop.eup %10971  ;;  %10991 = vrcp.f32 %v5570_v61  ;;  %v5572_v40 = vadd.f32 1.0, %v10970_v19  ;;  %v9183_v20 = vmul.f32 -1.442695, %v5387_v63  ;;  %v5330_v56 = vmul.f32 %v12314_v18, %v5105_v23  ;;  %v5107_v41 = vpop.f32.mrb[10].mxu1  ;;  %9635 = vmatprep.subr.bf16.mxu0 %v10717_v7 }
 0x472   : > { %v10974_v49 = vpop.eup %10973  ;;  %v6500_v15 = vmul.f32 0.0, %v10972_v62  ;;  %10993 = vpow2.f32 %v9180_v30  ;;  %v5388_v25 = vadd.f32 %v12317_v13, %v5329_v59  ;;  %v5331_v16 = vmul.f32 %v12312_v6, %v5107_v41  ;;  %v5109_v21 = vpop.f32.mrb[11].mxu1 }
 0x473   : > { %v10976_v44 = vpop.eup %10975  ;;  %v6501_v45 = vmul.f32 0.0, %v10974_v49  ;;  %10995 = vrcp.f32 %v5572_v40  ;;  %v5389_v22 = vadd.f32 %v12320_v17, %v5330_v56  ;;  %v5332_v24 = vmul.f32 %v12314_v18, %v5109_v21  ;;  %7021 = vmatmul.mubr.bf16.gmra.mrb[56].mxu0 %v11187_v52 }
 0x474   : > { %v10978_v14 = vpop.eup %10977  ;;  %v6502_v2 = vmul.f32 %v10976_v44, %v12507_v35  ;;  %10997 = vpow2.f32 %v9181_v1  ;;  %v9184_v9 = vmul.f32 -1.442695, %v5388_v25  ;;  %v5390_v32 = vadd.f32 %v12317_v13, %v5331_v16  ;;  %7028 = vmatprep.mubr.bf16.mxu0 %v11188_v36  ;;  %9636 = vmatpush3.bf16.msra.mxu0 %v10718_v10  ;;  %v10723_v36 = vld [vmem:[%s13267_s3 + $0xf8] sm:$0xff]  }
 0x475   : > { %v10980_v11 = vpop.eup %10979  ;;  %v9438_v57 = vpack.c.bf16 %v6501_v45, %v6500_v15  ;;  %v6503_v26 = vmul.f32 %v10978_v14, %v12507_v35  ;;  %10999 = vpow2.f32 %v9182_v53  ;;  %9637 = vmatprep.subr.bf16.mxu0 %v10719_v43  ;;  %v9185_v4 = vmul.f32 -1.442695, %v5389_v22  ;;  %v10724_v25 = vld [vmem:[%s13267_s3 + $0xb8] sm:$0xff]  }
 0x476   : > { %v10982_v29 = vpop.eup %10981  ;;  %v5571_v60 = vadd.f32 1.0, %v10980_v11  ;;  %11001 = vpow2.f32 %v9183_v20  ;;  %v5391_v12 = vadd.f32 %v12320_v17, %v5332_v24  ;;  %v9186_v35 = vmul.f32 -1.442695, %v5390_v32 }
 0x477   : > { %v10984_v5 = vpop.eup %10983  ;;  %6684 = vst [vmem:[#allocation4 + $0x40] sm:$0xff] %v9438_v57  ;;  %v9439_v46 = vpack.c.bf16 %v6503_v26, %v6502_v2  ;;  %v5573_v38 = vadd.f32 1.0, %v10982_v29  ;;  %11003 = vpow2.f32 %v9184_v9  ;;  %v5113_v48 = vpop.f32.mrb[12].mxu1  ;;  %v12554_v54 = vpack.c.bf16 %v6503_v26, %v6501_v45 }
 0x478   : > { %v10986_v28 = vpop.eup %10985  ;;  %11005 = vrcp.f32 %v5571_v60  ;;  %v5574_v30 = vadd.f32 1.0, %v10984_v5  ;;  %v9187_v51 = vmul.f32 -1.442695, %v5391_v12  ;;  %v5333_v7 = vmul.f32 %v12312_v6, %v5113_v48  ;;  %v5115_v3 = vpop.f32.mrb[13].mxu1  ;;  %9638 = vmatpush3.bf16.msra.mxu0 %v10720_v27 }
 0x479   : > { %v12551_v63 = vpop.eup %10987  ;;  %6685 = vst [vmem:[#allocation4 + $0x48] sm:$0xff] %v9439_v46  ;;  %11007 = vrcp.f32 %v5573_v38  ;;  %v5575_v52 = vadd.f32 1.0, %v10986_v28  ;;  %v5334_v61 = vmul.f32 %v12314_v18, %v5115_v3  ;;  %v5117_v1 = vpop.f32.mrb[14].mxu1  ;;  %9639 = vmatprep.subr.bf16.mxu0 %v10721_v31  ;;  %v12563_v10 = vpack.c.bf16 %v6502_v2, %v6500_v15 }
 0x47a   : > { %v12559_v19 = vpop.eup %10989  ;;  %11009 = vrcp.f32 %v5574_v30  ;;  %v5392_v53 = vadd.f32 %v12317_v13, %v5333_v7  ;;  %v5335_v59 = vmul.f32 %v12312_v6, %v5117_v1  ;;  %v5119_v23 = vpop.f32.mrb[15].mxu1  ;;  %v9204_v43 = vsel %vm6064_vm15, 1.0, %v11270_v0 }
 0x47b   : > { %v10992_v62 = vpop.eup %10991  ;;  %v9440_v40 = vpack.c.bf16 %v12559_v19, %v12551_v63  ;;  %11011 = vrcp.f32 %v5575_v52  ;;  %v5393_v20 = vadd.f32 %v12320_v17, %v5334_v61  ;;  %v5336_v56 = vmul.f32 %v12314_v18, %v5119_v23  ;;  %7029 = vmatmul.mubr.bf16.gmra.mrb[60].mxu0 %v11189_v8 }
 0x47c   : > { %v10994_v41 = vpop.eup %10993  ;;  %11013 = vpow2.f32 %v9185_v4  ;;  %v9188_v49 = vmul.f32 -1.442695, %v5392_v53  ;;  %v5394_v15 = vadd.f32 %v12317_v13, %v5335_v59  ;;  %7036 = vmatprep.mubr.bf16.mxu0 %v12554_v54  ;;  %9640 = vmatpush3.bf16.msra.mxu0 %v10722_v58  ;;  %v12584_v21 = vmul.f32 0.0, %v10992_v62 }
 0x47d   : > { %v10996_v16 = vpop.eup %10995  ;;  %6686 = vst [vmem:[#allocation4 + $0x50] sm:$0xff] %v9440_v40  ;;  %v5576_v47 = vadd.f32 1.0, %v10994_v41  ;;  %11015 = vpow2.f32 %v9186_v35  ;;  %v5395_v34 = vadd.f32 %v12320_v17, %v5336_v56  ;;  %9641 = vmatprep.subr.bf16.mxu0 %v10723_v36  ;;  %v12589_v44 = vsel %vm6163_vm0, 1.0, %v11270_v0 }
 0x47e   : > { %v10998_v8 = vpop.eup %10997  ;;  %11017 = vpow2.f32 %v9187_v51  ;;  %v12591_v22 = vmul.f32 %v10996_v16, %v9204_v43  ;;  %v9189_v14 = vmul.f32 -1.442695, %v5393_v20  ;;  %v9190_v27 = vmul.f32 -1.442695, %v5394_v15 }
 0x47f   : > { %v11000_v45 = vpop.eup %10999  ;;  %11019 = vrcp.f32 %v5576_v47  ;;  %v5577_v24 = vadd.f32 1.0, %v10998_v8  ;;  %v5123_v2 = vpop.f32.mrb[16].mxu1  ;;  %v9191_v31 = vmul.f32 -1.442695, %v5395_v34  ;;  %v12613_v47 = vpack.c.bf16 %v12584_v21, %v12551_v63 }
 0x480   : > { %v11002_v9 = vpop.eup %11001  ;;  %v5578_v32 = vadd.f32 1.0, %v11000_v45  ;;  %11021 = vpow2.f32 %v9188_v49  ;;  %v5337_v11 = vmul.f32 %v12312_v6, %v5123_v2  ;;  %v5125_v57 = vpop.f32.mrb[17].mxu1  ;;  %9642 = vmatpush3.bf16.msra.mxu0 %v10724_v25 }
 0x481   : > { %v11004_v26 = vpop.eup %11003  ;;  %11023 = vrcp.f32 %v5577_v24  ;;  %v5579_v55 = vadd.f32 1.0, %v11002_v9  ;;  %v5338_v29 = vmul.f32 %v12314_v18, %v5125_v57  ;;  %v5127_v60 = vpop.f32.mrb[18].mxu1  ;;  %9715 = vmatprep.subr.bf16.mxu0 %v10732_v50 }
 0x482   : > { %v11006_v4 = vpop.eup %11005  ;;  %11025 = vrcp.f32 %v5578_v32  ;;  %v5580_v12 = vadd.f32 1.0, %v11004_v26  ;;  %v5396_v5 = vadd.f32 %v12317_v13, %v5337_v11  ;;  %v5339_v46 = vmul.f32 %v12312_v6, %v5127_v60  ;;  %v5129_v38 = vpop.f32.mrb[19].mxu1 }
 0x483   : > { %v11008_v35 = vpop.eup %11007  ;;  %v6507_v48 = vmul.f32 0.0, %v11006_v4  ;;  %11027 = vrcp.f32 %v5579_v55  ;;  %v5397_v28 = vadd.f32 %v12320_v17, %v5338_v29  ;;  %v5340_v30 = vmul.f32 %v12314_v18, %v5129_v38  ;;  %7037 = vmatmul.mubr.bf16.gmra.mrb[64].mxu0 %v12563_v10 }
 0x484   : > { %v12600_v51 = vpop.eup %11009  ;;  %v6509_v7 = vmul.f32 %v11008_v35, %v9204_v43  ;;  %11029 = vrcp.f32 %v5580_v12  ;;  %v9192_v3 = vmul.f32 -1.442695, %v5396_v5  ;;  %v5398_v58 = vadd.f32 %v12317_v13, %v5339_v46 }
 0x485   : > { %v11012_v52 = vpop.eup %11011  ;;  %v9441_v61 = vpack.c.bf16 %v6507_v48, %v12584_v21  ;;  %11031 = vpow2.f32 %v9189_v14  ;;  %v9193_v1 = vmul.f32 -1.442695, %v5397_v28  ;;  %v5399_v36 = vadd.f32 %v12320_v17, %v5340_v30 }
 0x486   : > { %v11014_v53 = vpop.eup %11013  ;;  %v9442_v59 = vpack.c.bf16 %v6509_v7, %v12591_v22  ;;  %v9443_v23 = vpack.c.bf16 %v11012_v52, %v12600_v51  ;;  %11033 = vpow2.f32 %v9190_v27  ;;  %v9194_v62 = vmul.f32 -1.442695, %v5398_v58 }
 0x487   : > { %v11016_v40 = vpop.eup %11015  ;;  %6687 = vst [vmem:[#allocation4 + $0x58] sm:$0xff] %v9441_v61  ;;  %v5581_v20 = vadd.f32 1.0, %v11014_v53  ;;  %11035 = vpow2.f32 %v9191_v31  ;;  %v9195_v56 = vmul.f32 -1.442695, %v5399_v36  ;;  %v5133_v41 = vpop.f32.mrb[20].mxu1  ;;  %v12608_v43 = vpack.c.bf16 %v6507_v48, %v12559_v19 }
 0x488   : > { %v11018_v49 = vpop.eup %11017  ;;  %6688 = vst [vmem:[#allocation4 + $0x60] sm:$0xff] %v9442_v59  ;;  %6689 = vst [vmem:[#allocation4 + $0x68] sm:$0xff] %v9443_v23  ;;  %v5582_v15 = vadd.f32 1.0, %v11016_v40  ;;  %11037 = vpow2.f32 %v9192_v3  ;;  %v5341_v25 = vmul.f32 %v12312_v6, %v5133_v41  ;;  %v5135_v16 = vpop.f32.mrb[21].mxu1  ;;  %v12617_v19 = vpack.c.bf16 %v11012_v52, %v6509_v7 }
 0x489   : > { %v11020_v34 = vpop.eup %11019  ;;  %11039 = vrcp.f32 %v5581_v20  ;;  %v5583_v50 = vadd.f32 1.0, %v11018_v49  ;;  %v5342_v8 = vmul.f32 %v12314_v18, %v5135_v16  ;;  %v5137_v45 = vpop.f32.mrb[22].mxu1  ;;  %7044 = vmatprep.mubr.bf16.mxu0 %v12608_v43  ;;  %v12631_v38 = vpack.c.bf16 %v12600_v51, %v12591_v22  ;;  %v12641_v16 = vld [vmem:[#allocation4 + $0x8] sm:$0xff] }
 0x48a   : > { %v11022_v24 = vpop.eup %11021  ;;  %v6512_v14 = vmul.f32 0.0, %v11020_v34  ;;  %11041 = vrcp.f32 %v5582_v15  ;;  %v5400_v2 = vadd.f32 %v12317_v13, %v5341_v25  ;;  %v5343_v9 = vmul.f32 %v12312_v6, %v5137_v45  ;;  %v5139_v32 = vpop.f32.mrb[23].mxu1  ;;  %v7149_v25 = vld [vmem:[#allocation4] sm:$0xff] }
 0x48b   : > { %v11024_v63 = vpop.eup %11023  ;;  %11043 = vrcp.f32 %v5583_v50  ;;  %v5584_v21 = vadd.f32 1.0, %v11022_v24  ;;  %v5401_v27 = vadd.f32 %v12320_v17, %v5342_v8  ;;  %v5344_v11 = vmul.f32 %v12314_v18, %v5139_v32  ;;  %7045 = vmatmul.mubr.bf16.gmra.mrb[68].mxu0 %v12613_v47 }
 0x48c   : > { %v11026_v57 = vpop.eup %11025  ;;  %v6513_v26 = vmul.f32 0.0, %v11024_v63  ;;  %11045 = vpow2.f32 %v9193_v1  ;;  %v9196_v55 = vmul.f32 -1.442695, %v5400_v2  ;;  %7052 = vmatprep.mubr.bf16.mxu0 %v12617_v19  ;;  %v5402_v60 = vadd.f32 %v12317_v13, %v5343_v9 }
 0x48d   : > { %v11028_v31 = vpop.eup %11027  ;;  %v6514_v29 = vmul.f32 %v11026_v57, %v12589_v44  ;;  %11047 = vrcp.f32 %v5584_v21  ;;  %v9197_v6 = vmul.f32 -1.442695, %v5401_v27  ;;  %v5403_v46 = vadd.f32 %v12320_v17, %v5344_v11 }
 0x48e   : > { %v11030_v4 = vpop.eup %11029  ;;  %v9444_v12 = vpack.c.bf16 %v6513_v26, %v6512_v14  ;;  %v6515_v5 = vmul.f32 %v11028_v31, %v12589_v44  ;;  %11049 = vpow2.f32 %v9194_v62  ;;  %v9198_v7 = vmul.f32 -1.442695, %v5402_v60 }
 0x48f   : > { %v11032_v18 = vpop.eup %11031  ;;  %11051 = vpow2.f32 %v9195_v56  ;;  %v12635_v17 = vpack.c.bf16 %v6514_v29, %v6512_v14  ;;  %v9199_v51 = vmul.f32 -1.442695, %v5403_v46  ;;  %v9206_v41 = vsel %vm6262_vm2, 1.0, %v11270_v0 }
 0x490   : > { %v11034_v35 = vpop.eup %11033  ;;  %6690 = vst [vmem:[#allocation4 + $0x70] sm:$0xff] %v9444_v12  ;;  %v9445_v48 = vpack.c.bf16 %v6515_v5, %v6514_v29  ;;  %v5585_v28 = vadd.f32 1.0, %v11032_v18  ;;  %11053 = vpow2.f32 %v9196_v55  ;;  %v12633_v58 = vpack.c.bf16 %v6515_v5, %v6513_v26  ;;  %v12653_v55 = vld [vmem:[#allocation4 + $0x14] ss:$8 sps:$4 sm:$0xff]  }
 0x491   : > { %v11036_v30 = vpop.eup %11035  ;;  %v5586_v13 = vadd.f32 1.0, %v11034_v35  ;;  %11055 = vpow2.f32 %v9197_v6  ;;  %v12650_v32 = vcombine.high %v7149_v25, %v12641_v16  ;;  %v7375_v31 = vshll.u32 %v12554_v54, 16 }
 0x492   : > { %v11038_v3 = vpop.eup %11037  ;;  %6691 = vst [vmem:[#allocation4 + $0x78] sm:$0xff] %v9445_v48  ;;  %11057 = vrcp.f32 %v5585_v28  ;;  %v5587_v44 = vadd.f32 1.0, %v11036_v30  ;;  %v9207_v6 = vsel %vm6361_vm3, 1.0, %v11270_v0  ;;  %v12658_v60 = vcombine.low %v7149_v25, %v12641_v16 }
 0x493   : > { %v11040_v52 = vpop.eup %11039  ;;  %11059 = vrcp.f32 %v5586_v13  ;;  %v5588_v22 = vadd.f32 1.0, %v11038_v3  ;;  %7053 = vmatmul.mubr.bf16.gmra.mrb[72].mxu0 %v12631_v38  ;;  %v12665_v46 = vrot.slane %v7375_v31, 1  ;;  %v7322_v28 = vshll.u32 %v12650_v32, 16 }
 0x494   : > { %v11042_v61 = vpop.eup %11041  ;;  %v9446_v1 = vpack.c.bf16 %v11040_v52, %v11030_v4  ;;  %11061 = vrcp.f32 %v5587_v44  ;;  %7060 = vmatprep.mubr.bf16.mxu0 %v12633_v58  ;;  %v7367_v30 = vshll.u32 %v12563_v10, 16  ;;  %v7387_v3 = vshrl.u32 %v12554_v54, 16 }
 0x495   : > { %v11044_v36 = vpop.eup %11043  ;;  %v6518_v53 = vmul.f32 0.0, %v11042_v61  ;;  %11063 = vrcp.f32 %v5588_v22  ;;  %v7391_v44 = vshll.u32 %v12608_v43, 16 }
 0x496   : > { %v11046_v59 = vpop.eup %11045  ;;  %6692 = vst [vmem:[#allocation4 + $0x80] sm:$0xff] %v9446_v1  ;;  %v6519_v23 = vmul.f32 0.0, %v11044_v36  ;;  %11065 = vpow2.f32 %v9198_v7  ;;  %v7327_v7 = vshll.u32 %v12653_v55, 16  ;;  %v12674_v22 = vrot.slane %v7367_v30, 1 }
 0x497   : > { %v11048_v62 = vpop.eup %11047  ;;  %v5589_v40 = vadd.f32 1.0, %v11046_v59  ;;  %11067 = vpow2.f32 %v9199_v51  ;;  %v12645_v8 = vpack.c.bf16 %v6518_v53, %v11030_v4  ;;  %v7320_v4 = vshrl.u32 %v12650_v32, 16 }
 0x498   : > { %v11050_v20 = vpop.eup %11049  ;;  %v9447_v56 = vpack.c.bf16 %v6519_v23, %v6518_v53  ;;  %v12643_v50 = vpack.c.bf16 %v6519_v23, %v11040_v52  ;;  %v6520_v24 = vmul.f32 %v11048_v62, %v9206_v41  ;;  %v7379_v51 = vshrl.u32 %v12563_v10, 16 }
 0x499   : > { %v11052_v49 = vpop.eup %11051  ;;  %11069 = vrcp.f32 %v5589_v40  ;;  %v5590_v15 = vadd.f32 1.0, %v11050_v20  ;;  %v7389_v1 = vor.u32 %v7387_v3, %v12665_v46  ;;  %v7393_v36 = vrot.slane %v7391_v44, 1 }
 0x49a   : > { %v11054_v34 = vpop.eup %11053  ;;  %6693 = vst [vmem:[#allocation4 + $0x88] sm:$0xff] %v9447_v56  ;;  %v5591_v33 = vadd.f32 1.0, %v11052_v49  ;;  %v7383_v53 = vshll.u32 %v12613_v47, 16  ;;  %v7403_v59 = vshrl.u32 %v12608_v43, 16  ;;  %v12680_v40 = vrot.slane %v7322_v28, 1 }
 0x49b   : > { %v11056_v45 = vpop.eup %11055  ;;  %11071 = vrcp.f32 %v5590_v15  ;;  %v5592_v14 = vadd.f32 1.0, %v11054_v34  ;;  %7061 = vmatmul.mubr.bf16.gmra.mrb[76].mxu0 %v12635_v17  ;;  %v7381_v20 = vor.u32 %v7379_v51, %v12674_v22  ;;  %v12684_v49 = vsel %vm3148_vm9, %v7389_v1, %v7393_v36 }
 0x49c   : > { %v11058_v2 = vpop.eup %11057  ;;  %11073 = vrcp.f32 %v5591_v33  ;;  %v5593_v9 = vadd.f32 1.0, %v11056_v45  ;;  %7068 = vmatprep.mubr.bf16.mxu0 %v12643_v50  ;;  %v7385_v10 = vrot.slane %v7383_v53, 1  ;;  %v7405_v15 = vor.u32 %v7403_v59, %v7393_v36 }
 0x49d   : > { %v11060_v63 = vpop.eup %11059  ;;  %v6521_v21 = vmul.f32 %v11058_v2, %v9206_v41  ;;  %11075 = vrcp.f32 %v5592_v14  ;;  %v7407_v34 = vshll.u32 %v12617_v19, 16  ;;  %v7395_v43 = vshrl.u32 %v12613_v47, 16 }
 0x49e   : > { %v11062_v27 = vpop.eup %11061  ;;  %11077 = vrcp.f32 %v5593_v9  ;;  %v12663_v18 = vpack.c.bf16 %v11060_v63, %v6520_v24  ;;  %v7399_v33 = vshll.u32 %v12631_v38, 16  ;;  %v7419_v45 = vshrl.u32 %v12617_v19, 16 }
 0x49f   : > { %v11064_v11 = vpop.eup %11063  ;;  %v9448_v57 = vpack.c.bf16 %v6521_v21, %v6520_v24  ;;  %v9449_v26 = vpack.c.bf16 %v11062_v27, %v11060_v63  ;;  %v12661_v5 = vpack.c.bf16 %v11062_v27, %v6521_v21  ;;  %v12691_v14 = vsel %vm3148_vm9, %v7381_v20, %v7385_v10 }
 0x4a0   : > { %v11066_v29 = vpop.eup %11065  ;;  %v6524_v35 = vmul.f32 0.0, %v11064_v11  ;;  %v7423_v2 = vshll.u32 %v12633_v58, 16  ;;  %v7409_v9 = vrot.slane %v7407_v34, 1  ;;  %v7397_v63 = vor.u32 %v7395_v43, %v7385_v10 }
 0x4a1   : > { %v11068_v12 = vpop.eup %11067  ;;  %6694 = vst [vmem:[#allocation4 + $0x90] sm:$0xff] %v9448_v57  ;;  %6695 = vst [vmem:[#allocation4 + $0x98] sm:$0xff] %v9449_v26  ;;  %v5594_v39 = vadd.f32 1.0, %v11066_v29  ;;  %v7401_v21 = vrot.slane %v7399_v33, 1  ;;  %v7411_v27 = vshrl.u32 %v12631_v38, 16  ;;  %v7415_v26 = vshll.u32 %v12635_v17, 16 }
 0x4a2   : > { %v5595_v48 = vadd.f32 1.0, %v11068_v12  ;;  %v7425_v57 = vrot.slane %v7423_v2, 1  ;;  %v12698_v19 = vsel %vm3148_vm9, %v7405_v15, %v7409_v9  ;;  %v7421_v29 = vor.u32 %v7419_v45, %v7409_v9 }
 0x4a3   : > { %v11070_v13 = vpop.eup %11069  ;;  %11079 = vrcp.f32 %v5594_v39  ;;  %7069 = vmatmul.mubr.bf16.gmra.mrb[80].mxu0 %v12645_v8  ;;  %v12701_v31 = vsel %vm3148_vm9, %v7397_v63, %v7401_v21  ;;  %v7417_v39 = vrot.slane %v7415_v26, 1  ;;  %v7435_v38 = vshrl.u32 %v12633_v58, 16  ;;  %v10730_v26 = vld [vmem:[#allocation4 + $0x24] ss:$8 sps:$4 sm:$0xff]  }
 0x4a4   : > { %v6525_v52 = vmul.f32 0.0, %v11070_v13  ;;  %11081 = vrcp.f32 %v5595_v48  ;;  %7076 = vmatprep.mubr.bf16.mxu0 %v12661_v5  ;;  %v7439_v48 = vshll.u32 %v12643_v50, 16  ;;  %v12707_v13 = vsel %vm3148_vm9, %v7421_v29, %v7425_v57 }
 0x4a5   : > { %v11072_v61 = vpop.eup %11071  ;;  %v7431_v3 = vshll.u32 %v12645_v8, 16  ;;  %v7451_v44 = vshrl.u32 %v12643_v50, 16  ;;  %v7455_v53 = vshll.u32 %v12661_v5, 16  ;;  %v7459_v45 = vshrl.u32 %v12663_v18, 16 }
 0x4a6   : > { %v11074_v23 = vpop.eup %11073  ;;  %v9450_v54 = vpack.c.bf16 %v6525_v52, %v6524_v35  ;;  %v6526_v62 = vmul.f32 %v11072_v61, %v9207_v6  ;;  %v7437_v61 = vor.u32 %v7435_v38, %v7425_v57  ;;  %v7441_v1 = vrot.slane %v7439_v48, 1 }
 0x4a7   : > { %v11076_v56 = vpop.eup %11075  ;;  %v6527_v41 = vmul.f32 %v11074_v23, %v9207_v6  ;;  %v7413_v6 = vor.u32 %v7411_v27, %v7401_v21  ;;  %v7433_v36 = vrot.slane %v7431_v3, 1  ;;  %v12765_v3 = vld [vmem:[#allocation4 + $0x30] ss:$8 sps:$4 sm:$0xff]  }
 0x4a8   : > { %v11078_v25 = vpop.eup %11077  ;;  %6696 = vst [vmem:[#allocation4 + $0xa0] sm:$0xff] %v9450_v54  ;;  %v11203_v47 = vpack.c.bf16 %v6526_v62, %v6524_v35  ;;  %v7427_v35 = vshrl.u32 %v12635_v17, 16  ;;  %v7443_v17 = vshrl.u32 %v12645_v8, 16  ;;  %v12717_v59 = vsel %vm3148_vm9, %v7437_v61, %v7441_v1 }
 0x4a9   : > { %v9451_v24 = vpack.c.bf16 %v6527_v41, %v6526_v62  ;;  %v11202_v11 = vpack.c.bf16 %v6527_v41, %v6525_v52  ;;  %v12712_v51 = vsel %vm3148_vm9, %v7413_v6, %v7417_v39  ;;  %v7453_v23 = vor.u32 %v7451_v44, %v7441_v1 }
 0x4aa   : > { %v7429_v58 = vor.u32 %v7427_v35, %v7417_v39  ;;  %v7447_v54 = vshll.u32 %v12663_v18, 16  ;;  %v7457_v62 = vrot.slane %v7455_v53, 1  ;;  %v7445_v20 = vor.u32 %v7443_v17, %v7433_v36  ;;  %v12758_v35 = vld [vmem:[#allocation4 + $0x34] ss:$8 sps:$4 sm:$0xff]  }
 0x4ab   : > { %6697 = vst [vmem:[#allocation4 + $0xa8] sm:$0xff] %v9451_v24  ;;  %7077 = vmatmul.mubr.bf16.gmra.mrb[84].mxu0 %v12663_v18  ;;  %v7467_v41 = vshrl.u32 %v12661_v5, 16  ;;  %v7471_v8 = vshll.u32 %v11202_v11, 16  ;;  %v7463_v24 = vshll.u32 %v11203_v47, 16  ;;  %v7483_v9 = vshrl.u32 %v11202_v11, 16 }
 0x4ac   : > { %7084 = vmatprep.mubr.bf16.mxu0 %v11202_v11  ;;  %v12721_v50 = vsel %vm3148_vm9, %v7429_v58, %v7433_v36  ;;  %v7449_v34 = vrot.slane %v7447_v54, 1  ;;  %v12729_v43 = vsel %vm3148_vm9, %v7453_v23, %v7457_v62  ;;  %v7475_v27 = vshrl.u32 %v11203_v47, 16 }
 0x4ad   : > { %v11080_v12 = vpop.eup %11079  ;;  %v7469_v33 = vor.u32 %v7467_v41, %v7457_v62  ;;  %v7473_v5 = vrot.slane %v7471_v8, 1  ;;  %v7465_v21 = vrot.slane %v7463_v24, 1  ;;  %v7329_v18 = vrot.slane %v7327_v7, 1  ;;  %v12756_v7 = vld [vmem:[#allocation4 + $0x20] ss:$8 sps:$4 sm:$0xff]   ;;  %v10733_v8 = vld [vmem:[%s13267_s3 + $0x100] sm:$0xff]  }
 0x4ae   : > { %v11082_v28 = vpop.eup %11081  ;;  %v6530_v30 = vmul.f32 0.0, %v11080_v12  ;;  %v12734_v2 = vsel %vm3148_vm9, %v7445_v20, %v7449_v34  ;;  %v7461_v63 = vor.u32 %v7459_v45, %v7449_v34  ;;  %v7310_v11 = vshll.u32 %v12658_v60, 16  ;;  %v10738_v24 = vld [vmem:[%s13267_s3 + $0x148] sm:$0xff]  }
 0x4af   : > { %v6531_v52 = vmul.f32 0.0, %v11082_v28  ;;  %v12743_v29 = vsel %vm3148_vm9, %v7469_v33, %v7473_v5  ;;  %v7485_v6 = vor.u32 %v7483_v9, %v7473_v5  ;;  %v7477_v38 = vor.u32 %v7475_v27, %v7465_v21  ;;  %v10740_v27 = vld [vmem:[%s13267_s3 + $0x150] sm:$0xff]  }
 0x4b0   : > { %v12726_v15 = vpack.c.bf16 %v6530_v30, %v11076_v56  ;;  %v12737_v56 = vld [vmem:[#allocation4 + $0x10] ss:$8 sps:$4 sm:$0xff]   ;;  %v12749_v39 = vsel %vm3148_vm9, %v7461_v63, %v7465_v21  ;;  %v7994_v61 = vrot.slane %v10730_v26, 1  ;;  %v7992_v58 = vrot.slane %v12756_v7, 1  ;;  %v10739_v21 = vld [vmem:[%s13267_s3 + $0x108] sm:$0xff]  }
 0x4b1   : > { %v12724_v10 = vpack.c.bf16 %v6531_v52, %v11078_v25  ;;  %v7315_v30 = vshll.u32 %v12737_v56, 16  ;;  %v7990_v52 = vrot.slane %v12653_v55, 1  ;;  %v7987_v1 = vrot.slane %v12737_v56, 1 }
 0x4b2   : > { %v7479_v57 = vshll.u32 %v12726_v15, 16  ;;  %v7998_v36 = vrot.slane %v12758_v35, 1  ;;  %v7308_v53 = vshrl.u32 %v12658_v60, 16  ;;  %v7996_v54 = vrot.slane %v12765_v3, 1 }
 0x4b3   : > { %7085 = vmatmul.mubr.bf16.gmra.mrb[88].mxu0 %v11203_v47  ;;  %v7487_v25 = vshll.u32 %v12724_v10, 16  ;;  %v7325_v47 = vor.u32 %v12680_v40, %v7320_v4  ;;  %v7343_v4 = vshll.u32 %v10730_v26, 16  ;;  %v7312_v40 = vrot.slane %v7310_v11, 1 }
 0x4b4   : > { %7092 = vmatprep.mubr.bf16.mxu0 %v12724_v10  ;;  %v12751_v48 = vrot.slane %v7479_v57, 1  ;;  %v7317_v17 = vrot.slane %v7315_v30, 1  ;;  %v12781_v23 = vsel %vm3742_vm10, %v7990_v52, %v7994_v61  ;;  %v7339_v62 = vshrl.u32 %v12653_v55, 16  ;;  %v10758_v55 = vld [vmem:[#allocation4 + $0x40] ss:$8 sps:$4 sm:$0xff]  }
 0x4b5   : > { %v12745_v12 = vrot.slane %v7487_v25, 1  ;;  %v7330_v32 = vsel %vm3148_vm9, %v7325_v47, %v7329_v18  ;;  %v7345_v20 = vrot.slane %v7343_v4, 1  ;;  %v12788_v41 = vsel %vm3742_vm10, %v7987_v1, %v7992_v58  ;;  %v10741_v47 = vld [vmem:[%s13267_s3 + $0x110] sm:$0xff]  }
 0x4b6   : > { %v12769_v44 = vsel %vm3148_vm9, %v7477_v38, %v12751_v48  ;;  %v12793_v60 = vsel %vm3742_vm10, %v7994_v61, %v7998_v36  ;;  %v7313_v34 = vor.u32 %v7312_v40, %v7308_v53  ;;  %v12801_v33 = vsel %vm3742_vm10, %v7992_v58, %v7996_v54  ;;  %v10743_v61 = vld [vmem:[%s13267_s3 + $0x118] sm:$0xff]   ;;  %v10744_v53 = vld [vmem:[%s13267_s3 + $0x160] sm:$0xff]  }
 0x4b7   : > { %v12762_v28 = vsel %vm3148_vm9, %v7485_v6, %v12745_v12  ;;  %v7341_v45 = vor.u32 %v7339_v62, %v7329_v18  ;;  %v7335_v9 = vshll.u32 %v12756_v7, 16  ;;  %v7359_v63 = vshll.u32 %v12758_v35, 16 }
 0x4b8   : > { %v7318_v5 = vsel %vm3148_vm9, %v7313_v34, %v7317_v17  ;;  %v7331_v57 = vshrl.u32 %v12737_v56, 16  ;;  %v7355_v6 = vshrl.u32 %v10730_v26, 16  ;;  %v7351_v40 = vshll.u32 %v12765_v3, 16 }
 0x4b9   : > { %v7346_v25 = vsel %vm3148_vm9, %v7341_v45, %v7345_v20  ;;  %v7337_v18 = vrot.slane %v7335_v9, 1  ;;  %v7361_v11 = vrot.slane %v7359_v63, 1  ;;  %v7371_v58 = vshrl.u32 %v12758_v35, 16  ;;  %v10746_v45 = vld [vmem:[%s13267_s3 + $0x168] sm:$0xff]  }
 0x4ba   : > { %v7333_v38 = vor.u32 %v7331_v57, %v7317_v17  ;;  %v7357_v30 = vor.u32 %v7355_v6, %v7345_v20  ;;  %v7347_v17 = vshrl.u32 %v12756_v7, 16  ;;  %v7353_v62 = vrot.slane %v7351_v40, 1  ;;  %v10747_v9 = vld [vmem:[%s13267_s3 + $0x128] sm:$0xff]   ;;  %v10753_v57 = vld [vmem:[%s13267_s3 + $0x138] sm:$0xff]  }
 0x4bb   : > { %7093 = vmatmul.mubr.bf16.gmra.mrb[92].mxu0 %v12726_v15  ;;  %v7373_v20 = vor.u32 %v7371_v58, %v7361_v11  ;;  %v7363_v7 = vshrl.u32 %v12765_v3, 16 }
 0x4bc   : > { %7659 = vmatprep.mubr.bf16.mxu0 %v7330_v32  ;;  %v10742_v32 = vld [vmem:[%s13267_s3 + $0x158] sm:$0xff]   ;;  %v7338_v4 = vsel %vm3148_vm9, %v7333_v38, %v7337_v18  ;;  %v7362_v26 = vsel %vm3148_vm9, %v7357_v30, %v7361_v11  ;;  %v7349_v34 = vor.u32 %v7347_v17, %v7337_v18  ;;  %v12862_v18 = vld [vmem:[#allocation4 + $0xc0] sm:$0xff] }
 0x4bd   : > { %v7365_v63 = vor.u32 %v7363_v7, %v7353_v62 }
 0x4c3   : > { %7660 = vmatmul.mubr.bf16.vlgmr.msra.gmra.mrb[96].mxu0 %v7318_v5  ;;  %v7378_v5 = vsel %vm3148_vm9, %v7373_v20, %v12665_v46  ;;  %v10752_v46 = vld [vmem:[%s13267_s3 + $0x178] sm:$0xff]  }
 0x4c4   : > { %7667 = vmatprep.mubr.bf16.mxu0 %v7346_v25  ;;  %9716 = vmatpush3.bf16.msra.mxu0 %v10733_v8  ;;  %v10745_v8 = vld [vmem:[%s13267_s3 + $0x120] sm:$0xff]   ;;  %v10748_v25 = vld [vmem:[%s13267_s3 + $0x170] sm:$0xff]  }
 0x4c5   : > { %9717 = vmatprep.subr.bf16.mxu0 %v10738_v24  ;;  %v7354_v24 = vsel %vm3148_vm9, %v7349_v34, %v7353_v62 }
 0x4c8   : > { %9718 = vmatpush3.bf16.msra.mxu0 %v10739_v21  ;;  %v10749_v21 = vld [vmem:[%s13267_s3 + $0x130] sm:$0xff]  }
 0x4c9   : > { %9719 = vmatprep.subr.bf16.mxu0 %v10740_v27  ;;  %v7370_v27 = vsel %vm3148_vm9, %v7365_v63, %v12674_v22  ;;  %v7173_v22 = vld [vmem:[#allocation4 + $0xc0] sm:$0x11] }
 0x4cb   : > { %7668 = vmatmul.mubr.bf16.gmra.mrb[100].mxu0 %v7338_v4 }
 0x4cc   : > { %7675 = vmatprep.mubr.bf16.mxu0 %v7362_v26  ;;  %9720 = vmatpush3.bf16.msra.mxu0 %v10741_v47 }
 0x4cd   : > { %9721 = vmatprep.subr.bf16.mxu0 %v10742_v32 }
 0x4d0   : > { %9722 = vmatpush3.bf16.msra.mxu0 %v10743_v61 }
 0x4d1   : > { %9723 = vmatprep.subr.bf16.mxu0 %v10744_v53 }
 0x4d3   : > { %7676 = vmatmul.mubr.bf16.gmra.mrb[104].mxu0 %v7354_v24  ;;  %v10765_v24 = vld [vmem:[#allocation4 + $0x74] ss:$8 sps:$4 sm:$0xff]  }
 0x4d4   : > { %7683 = vmatprep.mubr.bf16.mxu0 %v7378_v5  ;;  %9724 = vmatpush3.bf16.msra.mxu0 %v10745_v8 }
 0x4d5   : > { %9725 = vmatprep.subr.bf16.mxu0 %v10746_v45  ;;  %v10764_v45 = vld [vmem:[#allocation4 + $0x60] ss:$8 sps:$4 sm:$0xff]  }
 0x4d6   : > { %v8008_v7 = vrot.slane %v10764_v45, 1 }
 0x4d8   : > { %9726 = vmatpush3.bf16.msra.mxu0 %v10747_v9 }
 0x4d9   : > { %9727 = vmatprep.subr.bf16.mxu0 %v10748_v25  ;;  %v8014_v25 = vrot.slane %v10765_v24, 1  ;;  %v7852_v24 = vld [vmem:[#allocation4 + $0xc0] sm:$0x11] }
 0x4db   : > { %7684 = vmatmul.mubr.bf16.gmra.mrb[108].mxu0 %v7370_v27 }
 0x4dc   : > { %7691 = vmatprep.mubr.bf16.mxu0 %v12684_v49  ;;  %9728 = vmatpush3.bf16.msra.mxu0 %v10749_v21  ;;  %v9297_v49 = vcombine.high %v7173_v22, %v7173_v22 }
 0x4dd   : > { %9729 = vmatprep.subr.bf16.mxu0 %v10752_v46 }
 0x4e0   : > { %9730 = vmatpush3.bf16.msra.mxu0 %v10753_v57 }
 0x4e1   : > { %8582 = vmatprep.subr.bf16.mxu0 %v12862_v18 }
 0x4e3   : > { %7692 = vmatmul.mubr.bf16.gmra.mrb[112].mxu0 %v12691_v14  ;;  %v7503_v14 = vshll.u32 %v9297_v49, 16 }
 0x4e4   : > { %7699 = vmatprep.mubr.bf16.mxu0 %v12698_v19  ;;  %v7499_v19 = vshrl.u32 %v12724_v10, 16 }
 0x4eb   : > { %7700 = vmatmul.mubr.bf16.gmra.mrb[116].mxu0 %v12701_v31  ;;  %v9296_v31 = vcombine.low %v7173_v22, %v7173_v22  ;;  %v10767_v22 = vld [vmem:[#allocation4 + $0x70] ss:$8 sps:$4 sm:$0xff]  }
 0x4ec   : > { %7707 = vmatprep.mubr.bf16.mxu0 %v12707_v13  ;;  %v7501_v13 = vor.u32 %v7499_v19, %v12745_v12 }
 0x4f3   : > { %7708 = vmatmul.mubr.bf16.gmra.mrb[120].mxu0 %v12712_v51  ;;  %v7505_v51 = vrot.slane %v7503_v14, 1  ;;  %v10768_v14 = vld [vmem:[#allocation4 + $0x84] ss:$8 sps:$4 sm:$0xff]  }
 0x4f4   : > { %7715 = vmatprep.mubr.bf16.mxu0 %v12717_v59  ;;  %v7495_v59 = vshll.u32 %v9296_v31, 16  ;;  %v8012_v31 = vrot.slane %v10767_v22, 1 }
 0x4fb   : > { %7716 = vmatmul.mubr.bf16.gmra.mrb[124].mxu0 %v12721_v50  ;;  %v7828_v50 = vld [vmem:[#allocation4] sm:$0xee] }
 0x4fc   : > { %7723 = vmatprep.mubr.bf16.mxu0 %v12729_v43  ;;  %v7506_v43 = vsel %vm3148_vm9, %v7501_v13, %v7505_v51  ;;  %v8018_v51 = vrot.slane %v10768_v14, 1 }
 0x503   : > { %7724 = vmatmul.mubr.bf16.gmra.mrb[128].mxu0 %v12734_v2  ;;  %v7491_v2 = vshrl.u32 %v12726_v15, 16 }
 0x504   : > { %7731 = vmatprep.mubr.bf16.mxu0 %v12743_v29  ;;  %v9315_v29 = vcombine.high %v7828_v50, %v12641_v16 }
 0x506   : > { %v7989_v6 = vrot.slane %v9315_v29, 1  ;;  %v8013_v29 = vsel %vm3742_vm10, %v8008_v7, %v8012_v31 }
 0x508   : > { %v7991_v12 = vsel %vm3742_vm10, %v7989_v6, %v7990_v52  ;;  %v10759_v52 = vld [vmem:[#allocation4 + $0x54] ss:$8 sps:$4 sm:$0xff]  }
 0x509   : > { %v8006_v4 = vrot.slane %v10759_v52, 1  ;;  %v10771_v6 = vld [vmem:[#allocation4 + $0x94] ss:$8 sps:$4 sm:$0xff]   ;;  %v10773_v52 = vld [vmem:[#allocation4 + $0x90] ss:$8 sps:$4 sm:$0xff]  }
 0x50b   : > { %7732 = vmatmul.mubr.bf16.gmra.mrb[132].mxu0 %v12749_v39  ;;  %v7493_v39 = vor.u32 %v7491_v2, %v12751_v48  ;;  %v10756_v48 = vld [vmem:[#allocation4 + $0x44] ss:$8 sps:$4 sm:$0xff]  }
 0x50c   : > { %7739 = vmatprep.mubr.bf16.mxu0 %v12762_v28  ;;  %v7497_v28 = vrot.slane %v7495_v59, 1  ;;  %v8002_v30 = vrot.slane %v10756_v48, 1 }
 0x50e   : > { %v7498_v11 = vsel %vm3148_vm9, %v7493_v39, %v7497_v28  ;;  %v8007_v35 = vsel %vm3742_vm10, %v8002_v30, %v8006_v4  ;;  %v10770_v39 = vld [vmem:[#allocation4 + $0x80] ss:$8 sps:$4 sm:$0xff]   ;;  %v8019_v28 = vsel %vm3742_vm10, %v8014_v25, %v8018_v51  ;;  %vm8578_vm9 = vcmask 523264  }
 0x513   : > { %7740 = vmatmul.mubr.bf16.gmra.mrb[136].mxu0 %v12769_v44  ;;  %v9314_v44 = vcombine.low %v7828_v50, %v12641_v16  ;;  %v8003_v16 = vsel %vm3742_vm10, %v7998_v36, %v8002_v30  ;;  %v10762_v36 = vld [vmem:[#allocation4 + $0x64] ss:$8 sps:$4 sm:$0xff]  }
 0x514   : > { %7747 = vmatprep.mubr.bf16.mxu0 %v7506_v43  ;;  %v8010_v17 = vrot.slane %v10762_v36, 1 }
 0x515   : > { %v7986_v38 = vrot.slane %v9314_v44, 1 }
 0x516   : > { %v8015_v49 = vsel %vm3742_vm10, %v8010_v17, %v8014_v25 }
 0x517   : > { %v7988_v47 = vsel %vm3742_vm10, %v7986_v38, %v7987_v1  ;;  %v8000_v1 = vrot.slane %v10758_v55, 1  ;;  %v8022_v38 = vrot.slane %v10771_v6, 1 }
 0x51b   : > { %7748 = vmatmul.mubr.bf16.gmra.mrb[140].mxu0 %v7498_v11 }
 0x51c   : > { %8188 = vmatprep.mubr.bf16.mxu0 %v7991_v12  ;;  %v8016_v12 = vrot.slane %v10770_v39, 1 }
 0x523   : > { %8189 = vmatmul.mubr.bf16.vlgmr.msra.gmra.mrb[144].mxu0 %v7988_v47 }
 0x524   : > { %8196 = vmatprep.mubr.bf16.mxu0 %v12781_v23 }
 0x52b   : > { %8197 = vmatmul.mubr.bf16.gmra.mrb[148].mxu0 %v12788_v41 }
 0x52c   : > { %8204 = vmatprep.mubr.bf16.mxu0 %v12793_v60  ;;  %v8001_v60 = vsel %vm3742_vm10, %v7996_v54, %v8000_v1  ;;  %v8011_v54 = vsel %vm3742_vm10, %v8006_v4, %v8010_v17  ;;  %v8020_v4 = vrot.slane %v10773_v52, 1 }
 0x533   : > { %8205 = vmatmul.mubr.bf16.gmra.mrb[152].mxu0 %v12801_v33  ;;  %v10761_v33 = vld [vmem:[#allocation4 + $0x50] ss:$8 sps:$4 sm:$0xff]  }
 0x534   : > { %8212 = vmatprep.mubr.bf16.mxu0 %v8003_v16  ;;  %v8004_v58 = vrot.slane %v10761_v33, 1  ;;  %v8017_v16 = vsel %vm3742_vm10, %v8012_v31, %v8016_v12 }
 0x536   : > { %v9555_v56 = vpop.f32.mrb[48].mxu0  ;;  %v8005_v3 = vsel %vm3742_vm10, %v8000_v1, %v8004_v58  ;;  %v8009_v57 = vsel %vm3742_vm10, %v8004_v58, %v8008_v7  ;;  %v10774_v1 = vld [vmem:[#allocation4 + $0xa4] ss:$8 sps:$4 sm:$0xff]   ;;  %v10776_v58 = vld [vmem:[#allocation4 + $0xa0] ss:$8 sps:$4 sm:$0xff]  }
 0x537   : > { %v9556_v32 = vpop.f32.mrb[49].mxu0 }
 0x538   : > { %v12899_v23 = vadd.f32 %v9556_v32, %v9555_v56  ;;  %v9558_v41 = vpop.f32.mrb[50].mxu0  ;;  %v8023_v56 = vsel %vm3742_vm10, %v8018_v51, %v8022_v38  ;;  %v9338_v51 = vcombine.low %v7852_v24, %v7852_v24 }
 0x539   : > { %v9559_v40 = vpop.f32.mrb[51].mxu0 }
 0x53a   : > { %v12901_v26 = vadd.f32 %v9559_v40, %v9558_v41  ;;  %v8026_v40 = vrot.slane %v10774_v1, 1 }
 0x53b   : > { %8213 = vmatmul.mubr.bf16.gmra.mrb[156].mxu0 %v8001_v60 }
 0x53c   : > { %8220 = vmatprep.mubr.bf16.mxu0 %v8007_v35 }
 0x53e   : > { %v9561_v61 = vpop.f32.mrb[52].mxu0 }
 0x53f   : > { %v9562_v53 = vpop.f32.mrb[53].mxu0 }
 0x540   : > { %v12907_v62 = vadd.f32 %v9562_v53, %v9561_v61  ;;  %v9564_v20 = vpop.f32.mrb[54].mxu0  ;;  %v8021_v61 = vsel %vm3742_vm10, %v8016_v12, %v8020_v4  ;;  %v8027_v53 = vsel %vm3742_vm10, %v8022_v38, %v8026_v40 }
 0x541   : > { %v9565_v34 = vpop.f32.mrb[55].mxu0 }
 0x542   : > { %v12909_v8 = vadd.f32 %v9565_v34, %v9564_v20  ;;  %v8024_v20 = vrot.slane %v10776_v58, 1 }
 0x543   : > { %8221 = vmatmul.mubr.bf16.gmra.mrb[160].mxu0 %v8005_v3  ;;  %v8030_v3 = vrot.slane %v12724_v10, 1 }
 0x544   : > { %8228 = vmatprep.mubr.bf16.mxu0 %v8011_v54 }
 0x545   : > { %v8031_v25 = vsel %vm3742_vm10, %v8026_v40, %v8030_v3 }
 0x546   : > { %v9567_v5 = vpop.f32.mrb[56].mxu0 }
 0x547   : > { %v9568_v9 = vpop.f32.mrb[57].mxu0 }
 0x548   : > { %v12913_v63 = vadd.f32 %v9568_v9, %v9567_v5  ;;  %v9570_v21 = vpop.f32.mrb[58].mxu0  ;;  %v8025_v9 = vsel %vm3742_vm10, %v8020_v4, %v8024_v20 }
 0x549   : > { %v9571_v46 = vpop.f32.mrb[59].mxu0 }
 0x54a   : > { %v12915_v27 = vadd.f32 %v9571_v46, %v9570_v21  ;;  %v9339_v21 = vcombine.high %v7852_v24, %v7852_v24 }
 0x54b   : > { %8229 = vmatmul.mubr.bf16.gmra.mrb[164].mxu0 %v8009_v57  ;;  %v8028_v57 = vrot.slane %v12726_v15, 1 }
 0x54c   : > { %8236 = vmatprep.mubr.bf16.mxu0 %v8015_v49  ;;  %v8034_v49 = vrot.slane %v9339_v21, 1 }
 0x54e   : > { %v9573_v19 = vpop.f32.mrb[60].mxu0 }
 0x54f   : > { %v9574_v13 = vpop.f32.mrb[61].mxu0 }
 0x550   : > { %v12919_v59 = vadd.f32 %v9574_v13, %v9573_v19  ;;  %v9576_v50 = vpop.f32.mrb[62].mxu0  ;;  %v8029_v13 = vsel %vm3742_vm10, %v8024_v20, %v8028_v57 }
 0x551   : > { %v9577_v43 = vpop.f32.mrb[63].mxu0 }
 0x552   : > { %v12921_v2 = vadd.f32 %v9577_v43, %v9576_v50  ;;  %v8035_v50 = vsel %vm3742_vm10, %v8030_v3, %v8034_v49 }
 0x553   : > { %8237 = vmatmul.mubr.bf16.gmra.mrb[168].mxu0 %v8013_v29  ;;  %v8032_v29 = vrot.slane %v9338_v51, 1 }
 0x554   : > { %8244 = vmatprep.mubr.bf16.mxu0 %v8019_v28 }
 0x555   : > { %v8033_v12 = vsel %vm3742_vm10, %v8028_v57, %v8032_v29 }
 0x556   : > { %v9579_v11 = vpop.f32.mrb[64].mxu0 }
 0x557   : > { %v9580_v44 = vpop.f32.mrb[65].mxu0 }
 0x558   : > { %v12925_v47 = vadd.f32 %v9580_v44, %v9579_v11  ;;  %v9582_v48 = vpop.f32.mrb[66].mxu0 }
 0x559   : > { %v9583_v30 = vpop.f32.mrb[67].mxu0 }
 0x55a   : > { %v12927_v55 = vadd.f32 %v9583_v30, %v9582_v48 }
 0x55b   : > { %8245 = vmatmul.mubr.bf16.gmra.mrb[172].mxu0 %v8017_v16 }
 0x55c   : > { %8252 = vmatprep.mubr.bf16.mxu0 %v8023_v56 }
 0x55e   : > { %v9585_v32 = vpop.f32.mrb[68].mxu0 }
 0x55f   : > { %v9586_v41 = vpop.f32.mrb[69].mxu0 }
 0x560   : > { %v12931_v60 = vadd.f32 %v9586_v41, %v9585_v32  ;;  %v9588_v33 = vpop.f32.mrb[70].mxu0 }
 0x561   : > { %v9589_v35 = vpop.f32.mrb[71].mxu0 }
 0x562   : > { %v12933_v36 = vadd.f32 %v9589_v35, %v9588_v33 }
 0x563   : > { %8253 = vmatmul.mubr.bf16.gmra.mrb[176].mxu0 %v8021_v61 }
 0x564   : > { %8260 = vmatprep.mubr.bf16.mxu0 %v8027_v53 }
 0x566   : > { %v9591_v17 = vpop.f32.mrb[72].mxu0 }
 0x567   : > { %v9592_v34 = vpop.f32.mrb[73].mxu0 }
 0x568   : > { %v12938_v45 = vadd.f32 %v9592_v34, %v9591_v17  ;;  %v9594_v54 = vpop.f32.mrb[74].mxu0 }
 0x569   : > { %v9595_v5 = vpop.f32.mrb[75].mxu0 }
 0x56a   : > { %v12940_v7 = vadd.f32 %v9595_v5, %v9594_v54 }
 0x56b   : > { %8261 = vmatmul.mubr.bf16.gmra.mrb[180].mxu0 %v8025_v9 }
 0x56c   : > { %8268 = vmatprep.mubr.bf16.mxu0 %v8031_v25 }
 0x56e   : > { %v9597_v46 = vpop.f32.mrb[76].mxu0 }
 0x56f   : > { %v9598_v22 = vpop.f32.mrb[77].mxu0 }
 0x570   : > { %v12945_v10 = vadd.f32 %v9598_v22, %v9597_v46  ;;  %v9600_v14 = vpop.f32.mrb[78].mxu0 }
 0x571   : > { %v9601_v19 = vpop.f32.mrb[79].mxu0 }
 0x572   : > { %v12947_v31 = vadd.f32 %v9601_v19, %v9600_v14 }
 0x573   : > { %8269 = vmatmul.mubr.bf16.gmra.mrb[184].mxu0 %v8029_v13 }
 0x574   : > { %8276 = vmatprep.mubr.bf16.mxu0 %v8035_v50 }
 0x576   : > { %v9603_v43 = vpop.f32.mrb[80].mxu0 }
 0x577   : > { %v9604_v39 = vpop.f32.mrb[81].mxu0 }
 0x578   : > { %v12951_v28 = vadd.f32 %v9604_v39, %v9603_v43  ;;  %v9606_v15 = vpop.f32.mrb[82].mxu0 }
 0x579   : > { %v9607_v6 = vpop.f32.mrb[83].mxu0 }
 0x57a   : > { %v12953_v11 = vadd.f32 %v9607_v6, %v9606_v15 }
 0x57b   : > { %8277 = vmatmul.mubr.bf16.gmra.mrb[188].mxu0 %v8033_v12 }
 0x57e   : > { %v9609_v44 = vpop.f32.mrb[84].mxu0 }
 0x57f   : > { %v9610_v38 = vpop.f32.mrb[85].mxu0 }
 0x580   : > { %v12956_v48 = vadd.f32 %v9610_v38, %v9609_v44  ;;  %v9612_v30 = vpop.f32.mrb[86].mxu0 }
 0x581   : > { %v9613_v16 = vpop.f32.mrb[87].mxu0 }
 0x582   : > { %v12958_v52 = vadd.f32 %v9613_v16, %v9612_v30 }
 0x586   : > { %v9615_v56 = vpop.f32.mrb[88].mxu0 }
 0x587   : > { %v9616_v1 = vpop.f32.mrb[89].mxu0 }
 0x588   : > { %v12960_v32 = vadd.f32 %v9616_v1, %v9615_v56  ;;  %v9618_v4 = vpop.f32.mrb[90].mxu0 }
 0x589   : > { %v9619_v41 = vpop.f32.mrb[91].mxu0 }
 0x58a   : > { %v12962_v40 = vadd.f32 %v9619_v41, %v9618_v4 }
 0x58e   : > { %v9621_v33 = vpop.f32.mrb[92].mxu0 }
 0x58f   : > { %v9622_v35 = vpop.f32.mrb[93].mxu0 }
 0x590   : > { %v12964_v61 = vadd.f32 %v9622_v35, %v9621_v33  ;;  %v9624_v58 = vpop.f32.mrb[94].mxu0 }
 0x591   : > { %v9625_v53 = vpop.f32.mrb[95].mxu0 }
 0x592   : > { %v12966_v17 = vadd.f32 %v9625_v53, %v9624_v58 }
 0x596   : > { %v9643_v20 = vpop.f32.mrb[96].mxu0 }
 0x597   : > { %v9644_v34 = vpop.f32.mrb[97].mxu0 }
 0x598   : > { %v9645_v3 = vadd.f32 %v9644_v34, %v9643_v20  ;;  %v9646_v54 = vpop.f32.mrb[98].mxu0 }
 0x599   : > { %v9647_v24 = vpop.f32.mrb[99].mxu0 }
 0x59a   : > { %v12969_v5 = vadd.f32 %v9645_v3, %v12899_v23  ;;  %v9648_v9 = vadd.f32 %v9647_v24, %v9646_v54 }
 0x59c   : > { %v12972_v25 = vadd.f32 %v9648_v9, %v12901_v26 }
 0x59e   : > { %v9649_v21 = vpop.f32.mrb[100].mxu0 }
 0x59f   : > { %v9650_v46 = vpop.f32.mrb[101].mxu0 }
 0x5a0   : > { %v9651_v57 = vadd.f32 %v9650_v46, %v9649_v21  ;;  %v9652_v22 = vpop.f32.mrb[102].mxu0 }
 0x5a1   : > { %v9653_v49 = vpop.f32.mrb[103].mxu0 }
 0x5a2   : > { %v12975_v14 = vadd.f32 %v9651_v57, %v12907_v62  ;;  %v9654_v19 = vadd.f32 %v9653_v49, %v9652_v22 }
 0x5a4   : > { %v12978_v13 = vadd.f32 %v9654_v19, %v12909_v8 }
 0x5a6   : > { %v9655_v51 = vpop.f32.mrb[104].mxu0 }
 0x5a7   : > { %v9656_v50 = vpop.f32.mrb[105].mxu0 }
 0x5a8   : > { %v9657_v23 = vadd.f32 %v9656_v50, %v9655_v51  ;;  %v9658_v43 = vpop.f32.mrb[106].mxu0 }
 0x5a9   : > { %v9659_v29 = vpop.f32.mrb[107].mxu0 }
 0x5aa   : > { %v12981_v26 = vadd.f32 %v9657_v23, %v12913_v63  ;;  %v9660_v39 = vadd.f32 %v9659_v29, %v9658_v43 }
 0x5ac   : > { %v12984_v15 = vadd.f32 %v9660_v39, %v12915_v27 }
 0x5ae   : > { %v9661_v6 = vpop.f32.mrb[108].mxu0 }
 0x5af   : > { %v9662_v12 = vpop.f32.mrb[109].mxu0 }
 0x5b0   : > { %v9663_v62 = vadd.f32 %v9662_v12, %v9661_v6  ;;  %v9664_v44 = vpop.f32.mrb[110].mxu0 }
 0x5b1   : > { %v9665_v38 = vpop.f32.mrb[111].mxu0 }
 0x5b2   : > { %v12987_v8 = vadd.f32 %v9663_v62, %v12919_v59  ;;  %v9666_v30 = vadd.f32 %v9665_v38, %v9664_v44 }
 0x5b4   : > { %v12990_v16 = vadd.f32 %v9666_v30, %v12921_v2 }
 0x5b6   : > { %v9667_v56 = vpop.f32.mrb[112].mxu0 }
 0x5b7   : > { %v9668_v1 = vpop.f32.mrb[113].mxu0 }
 0x5b8   : > { %v9669_v63 = vadd.f32 %v9668_v1, %v9667_v56  ;;  %v9670_v4 = vpop.f32.mrb[114].mxu0 }
 0x5b9   : > { %v9671_v41 = vpop.f32.mrb[115].mxu0 }
 0x5ba   : > { %v12993_v27 = vadd.f32 %v9669_v63, %v12925_v47  ;;  %v9672_v33 = vadd.f32 %v9671_v41, %v9670_v4 }
 0x5bc   : > { %v12996_v35 = vadd.f32 %v9672_v33, %v12927_v55 }
 0x5be   : > { %v9673_v58 = vpop.f32.mrb[116].mxu0 }
 0x5bf   : > { %v9674_v53 = vpop.f32.mrb[117].mxu0 }
 0x5c0   : > { %v9675_v59 = vadd.f32 %v9674_v53, %v9673_v58  ;;  %v9676_v20 = vpop.f32.mrb[118].mxu0 }
 0x5c1   : > { %v9677_v34 = vpop.f32.mrb[119].mxu0 }
 0x5c2   : > { %v12999_v2 = vadd.f32 %v9675_v59, %v12931_v60  ;;  %v9678_v3 = vadd.f32 %v9677_v34, %v9676_v20 }
 0x5c4   : > { %v13002_v54 = vadd.f32 %v9678_v3, %v12933_v36 }
 0x5c6   : > { %v9679_v24 = vpop.f32.mrb[120].mxu0 }
 0x5c7   : > { %v9680_v9 = vpop.f32.mrb[121].mxu0 }
 0x5c8   : > { %v9681_v47 = vadd.f32 %v9680_v9, %v9679_v24  ;;  %v9682_v21 = vpop.f32.mrb[122].mxu0 }
 0x5c9   : > { %v9683_v46 = vpop.f32.mrb[123].mxu0 }
 0x5ca   : > { %v13005_v55 = vadd.f32 %v9681_v47, %v12938_v45  ;;  %v9684_v57 = vadd.f32 %v9683_v46, %v9682_v21 }
 0x5cc   : > { %v13008_v22 = vadd.f32 %v9684_v57, %v12940_v7  ;;  %v8552_v57 = vmul.u32 24, %v11808_v42 }
 0x5ce   : > { %v9685_v49 = vpop.f32.mrb[124].mxu0 }
 0x5cf   : > { %v9686_v19 = vpop.f32.mrb[125].mxu0 }
 0x5d0   : > { %v9687_v60 = vadd.f32 %v9686_v19, %v9685_v49  ;;  %v9688_v51 = vpop.f32.mrb[126].mxu0 }
 0x5d1   : > { %v9689_v50 = vpop.f32.mrb[127].mxu0 }
 0x5d2   : > { %v13011_v36 = vadd.f32 %v9687_v60, %v12945_v10  ;;  %v9690_v23 = vadd.f32 %v9689_v50, %v9688_v51  ;;  %v8555_v51 = vadd.s32 16, %v8552_v57 }
 0x5d4   : > { %v13014_v43 = vadd.f32 %v9690_v23, %v12947_v31 }
 0x5d6   : > { %v9691_v29 = vpop.f32.mrb[128].mxu0 }
 0x5d7   : > { %v9692_v39 = vpop.f32.mrb[129].mxu0 }
 0x5d8   : > { %v9693_v45 = vadd.f32 %v9692_v39, %v9691_v29  ;;  %v9694_v6 = vpop.f32.mrb[130].mxu0 }
 0x5d9   : > { %v9695_v12 = vpop.f32.mrb[131].mxu0 }
 0x5da   : > { %v13017_v7 = vadd.f32 %v9693_v45, %v12951_v28  ;;  %v9696_v62 = vadd.f32 %v9695_v12, %v9694_v6  ;;  %v10781_v45 = vld [vmem:[%s13268_s4 + $0x10] sm:$0xff]  }
 0x5dc   : > { %v13020_v44 = vadd.f32 %v9696_v62, %v12953_v11 }
 0x5de   : > { %v9697_v38 = vpop.f32.mrb[132].mxu0 }
 0x5df   : > { %v9698_v30 = vpop.f32.mrb[133].mxu0 }
 0x5e0   : > { %v9699_v10 = vadd.f32 %v9698_v30, %v9697_v38  ;;  %v9700_v56 = vpop.f32.mrb[134].mxu0 }
 0x5e1   : > { %v9701_v1 = vpop.f32.mrb[135].mxu0 }
 0x5e2   : > { %v13023_v31 = vadd.f32 %v9699_v10, %v12956_v48  ;;  %v9702_v63 = vadd.f32 %v9701_v1, %v9700_v56 }
 0x5e4   : > { %v13026_v4 = vadd.f32 %v9702_v63, %v12958_v52 }
 0x5e6   : > { %v9703_v41 = vpop.f32.mrb[136].mxu0 }
 0x5e7   : > { %v9704_v33 = vpop.f32.mrb[137].mxu0 }
 0x5e8   : > { %v9705_v28 = vadd.f32 %v9704_v33, %v9703_v41  ;;  %v9706_v58 = vpop.f32.mrb[138].mxu0 }
 0x5e9   : > { %v9707_v53 = vpop.f32.mrb[139].mxu0 }
 0x5ea   : > { %v13029_v11 = vadd.f32 %v9705_v28, %v12960_v32  ;;  %v9708_v59 = vadd.f32 %v9707_v53, %v9706_v58  ;;  %v8550_v32 = vand.u32 127, %v1642_v37  ;;  %v13051_v37 = vld [vmem:[%s13270_s6 + $0x9] ss:$0 sm:$0xff] }
 0x5ec   : > { %v13032_v20 = vadd.f32 %v9708_v59, %v12962_v40  ;;  %v8551_v60 = vadd.s32 128, %v8550_v32  ;;  %vm8553_vm4 = vcmp.ge.s32.totalorder %v8550_v32, %v8552_v57  ;;  %vm8556_vm8 = vcmp.lt.s32.totalorder %v8550_v32, %v8555_v51 }
 0x5ed   : > { %vm13056_vm10 = vmand %vm8553_vm4, %vm8556_vm8 }
 0x5ee   : > { %v9709_v34 = vpop.f32.mrb[140].mxu0  ;;  %vm8554_vm5 = vcmp.ge.s32.totalorder %v8551_v60, %v8552_v57  ;;  %vm8557_vm6 = vcmp.lt.s32.totalorder %v8551_v60, %v8555_v51  ;;  %vm9383_vm11 = vmpackc.low %vm13056_vm10, %vm13056_vm10 }
 0x5ef   : > { %v9710_v3 = vpop.f32.mrb[141].mxu0  ;;  %vm8559_vm7 = vmand %vm8554_vm5, %vm8557_vm6 }
 0x5f0   : > { %v9711_v48 = vadd.f32 %v9710_v3, %v9709_v34  ;;  %v9712_v24 = vpop.f32.mrb[142].mxu0  ;;  %v9381_v39 = vsel %vm8559_vm7, 1.0, %v11270_v0 }
 0x5f1   : > { %v9713_v9 = vpop.f32.mrb[143].mxu0 }
 0x5f2   : > { %v13035_v52 = vadd.f32 %v9711_v48, %v12964_v61  ;;  %v9714_v47 = vadd.f32 %v9713_v9, %v9712_v24  ;;  %v13045_v61 = vld [vmem:[%s13270_s6 + $0x8] ss:$0 sm:$0xff] }
 0x5f4   : > { %v13038_v21 = vadd.f32 %v9714_v47, %v12966_v17 }
 0x5f6   : > { %v9731_v46 = vpop.f32.mrb[144].mxu0 }
 0x5f7   : > { %v9732_v49 = vpop.f32.mrb[145].mxu0 }
 0x5f8   : > { %v9733_v40 = vadd.f32 %v9732_v49, %v9731_v46  ;;  %v9734_v19 = vpop.f32.mrb[146].mxu0 }
 0x5f9   : > { %v9735_v50 = vpop.f32.mrb[147].mxu0 }
 0x5fa   : > { %v8285_v17 = vadd.f32 %v9733_v40, %v12969_v5  ;;  %v9736_v23 = vadd.f32 %v9735_v50, %v9734_v19  ;;  %v8565_v5 = vpack.c.bf16 %v9381_v39, %v9381_v39 }
 0x5fc   : > { %v8357_v42 = vmul.f32 %v8285_v17, %v13045_v61  ;;  %v8286_v29 = vadd.f32 %v9736_v23, %v12972_v25  ;;  %9382 = vmatprep.mubr.msk.bf16.mxu0 %vm8578_vm9, %v8565_v5 }
 0x5fe   : > { %v8381_v6 = vadd.f32 %v8357_v42, %v13051_v37  ;;  %v8358_v12 = vmul.f32 %v8286_v29, %v13045_v61  ;;  %v9737_v62 = vpop.f32.mrb[148].mxu0 }
 0x5ff   : > { %v9738_v38 = vpop.f32.mrb[149].mxu0 }
 0x600   : > { %v9356_v30 = vmul.f32 -1.442695, %v8381_v6  ;;  %v8382_v10 = vadd.f32 %v8358_v12, %v13051_v37  ;;  %v9739_v56 = vadd.f32 %v9738_v38, %v9737_v62  ;;  %v9740_v25 = vpop.f32.mrb[150].mxu0 }
 0x601   : > { %v9741_v1 = vpop.f32.mrb[151].mxu0 }
 0x602   : > { %11083 = vpow2.f32 %v9356_v30  ;;  %v9357_v63 = vmul.f32 -1.442695, %v8382_v10  ;;  %v8287_v41 = vadd.f32 %v9739_v56, %v12975_v14  ;;  %v9742_v33 = vadd.f32 %v9741_v1, %v9740_v25 }
 0x604   : > { %11085 = vpow2.f32 %v9357_v63  ;;  %v8359_v28 = vmul.f32 %v8287_v41, %v13045_v61  ;;  %v8288_v58 = vadd.f32 %v9742_v33, %v12978_v13 }
 0x606   : > { %v8383_v53 = vadd.f32 %v8359_v28, %v13051_v37  ;;  %v8360_v59 = vmul.f32 %v8288_v58, %v13045_v61  ;;  %v9743_v34 = vpop.f32.mrb[152].mxu0 }
 0x607   : > { %v9744_v3 = vpop.f32.mrb[153].mxu0 }
 0x608   : > { %v9358_v48 = vmul.f32 -1.442695, %v8383_v53  ;;  %v8384_v24 = vadd.f32 %v8360_v59, %v13051_v37  ;;  %v9745_v9 = vadd.f32 %v9744_v3, %v9743_v34  ;;  %v9746_v47 = vpop.f32.mrb[154].mxu0 }
 0x609   : > { %v9747_v46 = vpop.f32.mrb[155].mxu0 }
 0x60a   : > { %11087 = vpow2.f32 %v9358_v48  ;;  %v9359_v14 = vmul.f32 -1.442695, %v8384_v24  ;;  %v8289_v32 = vadd.f32 %v9745_v9, %v12981_v26  ;;  %v9748_v57 = vadd.f32 %v9747_v46, %v9746_v47 }
 0x60c   : > { %v11084_v49 = vpop.eup %11083  ;;  %11089 = vpow2.f32 %v9359_v14  ;;  %v8361_v13 = vmul.f32 %v8289_v32, %v13045_v61  ;;  %v8290_v40 = vadd.f32 %v9748_v57, %v12984_v15 }
 0x60d   : > { %v8477_v19 = vadd.f32 1.0, %v11084_v49 }
 0x60e   : > { %v11086_v60 = vpop.eup %11085  ;;  %v8385_v51 = vadd.f32 %v8361_v13, %v13051_v37  ;;  %v8362_v50 = vmul.f32 %v8290_v40, %v13045_v61  ;;  %v9749_v17 = vpop.f32.mrb[156].mxu0 }
 0x60f   : > { %v8478_v23 = vadd.f32 1.0, %v11086_v60  ;;  %v9750_v42 = vpop.f32.mrb[157].mxu0  ;;  %11091 = vrcp.f32 %v8477_v19 }
 0x610   : > { %v9360_v29 = vmul.f32 -1.442695, %v8385_v51  ;;  %v8386_v26 = vadd.f32 %v8362_v50, %v13051_v37  ;;  %v9751_v39 = vadd.f32 %v9750_v42, %v9749_v17  ;;  %v9752_v5 = vpop.f32.mrb[158].mxu0 }
 0x611   : > { %11093 = vrcp.f32 %v8478_v23  ;;  %v9753_v6 = vpop.f32.mrb[159].mxu0 }
 0x612   : > { %11095 = vpow2.f32 %v9360_v29  ;;  %v9361_v12 = vmul.f32 -1.442695, %v8386_v26  ;;  %v8291_v15 = vadd.f32 %v9751_v39, %v12987_v8  ;;  %v9754_v62 = vadd.f32 %v9753_v6, %v9752_v5 }
 0x614   : > { %v11088_v38 = vpop.eup %11087  ;;  %11097 = vpow2.f32 %v9361_v12  ;;  %v8363_v30 = vmul.f32 %v8291_v15, %v13045_v61  ;;  %v8292_v10 = vadd.f32 %v9754_v62, %v12990_v16 }
 0x615   : > { %v8479_v56 = vadd.f32 1.0, %v11088_v38 }
 0x616   : > { %v11090_v25 = vpop.eup %11089  ;;  %v8387_v1 = vadd.f32 %v8363_v30, %v13051_v37  ;;  %v8364_v63 = vmul.f32 %v8292_v10, %v13045_v61  ;;  %v9755_v41 = vpop.f32.mrb[160].mxu0 }
 0x617   : > { %v8480_v33 = vadd.f32 1.0, %v11090_v25  ;;  %v9756_v28 = vpop.f32.mrb[161].mxu0  ;;  %11099 = vrcp.f32 %v8479_v56 }
 0x618   : > { %v9362_v58 = vmul.f32 -1.442695, %v8387_v1  ;;  %v8388_v8 = vadd.f32 %v8364_v63, %v13051_v37  ;;  %v9757_v53 = vadd.f32 %v9756_v28, %v9755_v41  ;;  %v9758_v59 = vpop.f32.mrb[162].mxu0 }
 0x619   : > { %11101 = vrcp.f32 %v8480_v33  ;;  %v9759_v34 = vpop.f32.mrb[163].mxu0  ;;  %v11092_v3 = vpop.eup %11091 }
 0x61a   : > { %11103 = vpow2.f32 %v9362_v58  ;;  %v9363_v16 = vmul.f32 -1.442695, %v8388_v8  ;;  %v8293_v48 = vadd.f32 %v9757_v53, %v12993_v27  ;;  %v9760_v24 = vadd.f32 %v9759_v34, %v9758_v59 }
 0x61b   : > { %v11094_v9 = vpop.eup %11093 }
 0x61c   : > { %v11096_v47 = vpop.eup %11095  ;;  %11105 = vpow2.f32 %v9363_v16  ;;  %v8365_v46 = vmul.f32 %v8293_v48, %v13045_v61  ;;  %v8294_v14 = vadd.f32 %v9760_v24, %v12996_v35  ;;  %v8566_v32 = vpack.c.bf16 %v11094_v9, %v11092_v3 }
 0x61d   : > { %v8481_v57 = vadd.f32 1.0, %v11096_v47 }
 0x61e   : > { %v11098_v49 = vpop.eup %11097  ;;  %v8389_v13 = vadd.f32 %v8365_v46, %v13051_v37  ;;  %v8366_v40 = vmul.f32 %v8294_v14, %v13045_v61  ;;  %v9761_v19 = vpop.f32.mrb[164].mxu0  ;;  %8583 = vmatpush1.bf16.msra.mxu0 %v8566_v32 }
 0x61f   : > { %v8482_v60 = vadd.f32 1.0, %v11098_v49  ;;  %v9762_v51 = vpop.f32.mrb[165].mxu0  ;;  %8584 = vmatprep.subr.bf16.mxu0 %v12862_v18  ;;  %11107 = vrcp.f32 %v8481_v57 }
 0x620   : > { %v9364_v27 = vmul.f32 -1.442695, %v8389_v13  ;;  %v8390_v50 = vadd.f32 %v8366_v40, %v13051_v37  ;;  %v9763_v17 = vadd.f32 %v9762_v51, %v9761_v19  ;;  %v9764_v23 = vpop.f32.mrb[166].mxu0 }
 0x621   : > { %11109 = vrcp.f32 %v8482_v60  ;;  %v9765_v35 = vpop.f32.mrb[167].mxu0  ;;  %v11100_v42 = vpop.eup %11099 }
 0x622   : > { %11111 = vpow2.f32 %v9364_v27  ;;  %v9365_v29 = vmul.f32 -1.442695, %v8390_v50  ;;  %v8295_v26 = vadd.f32 %v9763_v17, %v12999_v2  ;;  %v9766_v39 = vadd.f32 %v9765_v35, %v9764_v23 }
 0x623   : > { %v11102_v5 = vpop.eup %11101 }
 0x624   : > { %v11104_v6 = vpop.eup %11103  ;;  %11113 = vpow2.f32 %v9365_v29  ;;  %v8367_v12 = vmul.f32 %v8295_v26, %v13045_v61  ;;  %v8296_v15 = vadd.f32 %v9766_v39, %v13002_v54  ;;  %v8567_v62 = vpack.c.bf16 %v11102_v5, %v11100_v42 }
 0x625   : > { %v8483_v38 = vadd.f32 1.0, %v11104_v6 }
 0x626   : > { %v11106_v30 = vpop.eup %11105  ;;  %v8391_v10 = vadd.f32 %v8367_v12, %v13051_v37  ;;  %v8368_v56 = vmul.f32 %v8296_v15, %v13045_v61  ;;  %v9767_v25 = vpop.f32.mrb[168].mxu0  ;;  %8585 = vmatpush1.bf16.msra.mxu0 %v8567_v62 }
 0x627   : > { %v8484_v1 = vadd.f32 1.0, %v11106_v30  ;;  %v9768_v63 = vpop.f32.mrb[169].mxu0  ;;  %8586 = vmatprep.subr.bf16.mxu0 %v12862_v18  ;;  %11115 = vrcp.f32 %v8483_v38 }
 0x628   : > { %v9366_v2 = vmul.f32 -1.442695, %v8391_v10  ;;  %v8392_v41 = vadd.f32 %v8368_v56, %v13051_v37  ;;  %v9769_v33 = vadd.f32 %v9768_v63, %v9767_v25  ;;  %v9770_v28 = vpop.f32.mrb[170].mxu0 }
 0x629   : > { %11117 = vrcp.f32 %v8484_v1  ;;  %v9771_v54 = vpop.f32.mrb[171].mxu0  ;;  %v11108_v58 = vpop.eup %11107 }
 0x62a   : > { %11119 = vpow2.f32 %v9366_v2  ;;  %v9367_v8 = vmul.f32 -1.442695, %v8392_v41  ;;  %v8297_v53 = vadd.f32 %v9769_v33, %v13005_v55  ;;  %v9772_v59 = vadd.f32 %v9771_v54, %v9770_v28 }
 0x62b   : > { %v11110_v34 = vpop.eup %11109 }
 0x62c   : > { %v11112_v3 = vpop.eup %11111  ;;  %11121 = vpow2.f32 %v9367_v8  ;;  %v8369_v16 = vmul.f32 %v8297_v53, %v13045_v61  ;;  %v8298_v48 = vadd.f32 %v9772_v59, %v13008_v22  ;;  %v8568_v24 = vpack.c.bf16 %v11110_v34, %v11108_v58 }
 0x62d   : > { %v8485_v9 = vadd.f32 1.0, %v11112_v3 }
 0x62e   : > { %v11114_v47 = vpop.eup %11113  ;;  %v8393_v46 = vadd.f32 %v8369_v16, %v13051_v37  ;;  %v8370_v14 = vmul.f32 %v8298_v48, %v13045_v61  ;;  %v9773_v32 = vpop.f32.mrb[172].mxu0  ;;  %8587 = vmatpush1.bf16.msra.mxu0 %v8568_v24 }
 0x62f   : > { %v8486_v57 = vadd.f32 1.0, %v11114_v47  ;;  %v9774_v49 = vpop.f32.mrb[173].mxu0  ;;  %8588 = vmatprep.subr.bf16.mxu0 %v12862_v18  ;;  %11123 = vrcp.f32 %v8485_v9 }
 0x630   : > { %v9368_v55 = vmul.f32 -1.442695, %v8393_v46  ;;  %v8394_v13 = vadd.f32 %v8370_v14, %v13051_v37  ;;  %v9775_v40 = vadd.f32 %v9774_v49, %v9773_v32  ;;  %v9776_v19 = vpop.f32.mrb[174].mxu0 }
 0x631   : > { %11125 = vrcp.f32 %v8486_v57  ;;  %v9777_v22 = vpop.f32.mrb[175].mxu0  ;;  %v11116_v60 = vpop.eup %11115 }
 0x632   : > { %11127 = vpow2.f32 %v9368_v55  ;;  %v9369_v51 = vmul.f32 -1.442695, %v8394_v13  ;;  %v8299_v27 = vadd.f32 %v9775_v40, %v13011_v36  ;;  %v9778_v50 = vadd.f32 %v9777_v22, %v9776_v19 }
 0x633   : > { %v11118_v17 = vpop.eup %11117 }
 0x634   : > { %v11120_v23 = vpop.eup %11119  ;;  %11129 = vpow2.f32 %v9369_v51  ;;  %v8371_v35 = vmul.f32 %v8299_v27, %v13045_v61  ;;  %v8300_v42 = vadd.f32 %v9778_v50, %v13014_v43  ;;  %v8569_v29 = vpack.c.bf16 %v11118_v17, %v11116_v60 }
 0x635   : > { %v8487_v26 = vadd.f32 1.0, %v11120_v23 }
 0x636   : > { %v11122_v39 = vpop.eup %11121  ;;  %v8395_v5 = vadd.f32 %v8371_v35, %v13051_v37  ;;  %v8372_v6 = vmul.f32 %v8300_v42, %v13045_v61  ;;  %v9779_v12 = vpop.f32.mrb[176].mxu0  ;;  %8589 = vmatpush1.bf16.msra.mxu0 %v8569_v29 }
 0x637   : > { %v8488_v15 = vadd.f32 1.0, %v11122_v39  ;;  %v9780_v62 = vpop.f32.mrb[177].mxu0  ;;  %8590 = vmatprep.subr.bf16.mxu0 %v12862_v18  ;;  %11131 = vrcp.f32 %v8487_v26 }
 0x638   : > { %v9370_v36 = vmul.f32 -1.442695, %v8395_v5  ;;  %v8396_v38 = vadd.f32 %v8372_v6, %v13051_v37  ;;  %v9781_v30 = vadd.f32 %v9780_v62, %v9779_v12  ;;  %v9782_v10 = vpop.f32.mrb[178].mxu0 }
 0x639   : > { %11133 = vrcp.f32 %v8488_v15  ;;  %v9783_v43 = vpop.f32.mrb[179].mxu0  ;;  %v11124_v56 = vpop.eup %11123 }
 0x63a   : > { %11135 = vpow2.f32 %v9370_v36  ;;  %v9371_v25 = vmul.f32 -1.442695, %v8396_v38  ;;  %v8301_v1 = vadd.f32 %v9781_v30, %v13017_v7  ;;  %v9784_v63 = vadd.f32 %v9783_v43, %v9782_v10 }
 0x63b   : > { %v11126_v2 = vpop.eup %11125 }
 0x63c   : > { %v11128_v41 = vpop.eup %11127  ;;  %11137 = vpow2.f32 %v9371_v25  ;;  %v8373_v33 = vmul.f32 %v8301_v1, %v13045_v61  ;;  %v8302_v28 = vadd.f32 %v9784_v63, %v13020_v44  ;;  %v8570_v54 = vpack.c.bf16 %v11126_v2, %v11124_v56 }
 0x63d   : > { %v8489_v58 = vadd.f32 1.0, %v11128_v41 }
 0x63e   : > { %v11130_v8 = vpop.eup %11129  ;;  %v8397_v53 = vadd.f32 %v8373_v33, %v13051_v37  ;;  %v8374_v59 = vmul.f32 %v8302_v28, %v13045_v61  ;;  %v9785_v34 = vpop.f32.mrb[180].mxu0  ;;  %8591 = vmatpush1.bf16.msra.mxu0 %v8570_v54 }
 0x63f   : > { %v8490_v3 = vadd.f32 1.0, %v11130_v8  ;;  %v9786_v16 = vpop.f32.mrb[181].mxu0  ;;  %8592 = vmatprep.subr.bf16.mxu0 %v12862_v18  ;;  %11139 = vrcp.f32 %v8489_v58 }
 0x640   : > { %v9372_v7 = vmul.f32 -1.442695, %v8397_v53  ;;  %v8398_v48 = vadd.f32 %v8374_v59, %v13051_v37  ;;  %v9787_v24 = vadd.f32 %v9786_v16, %v9785_v34  ;;  %v9788_v9 = vpop.f32.mrb[182].mxu0 }
 0x641   : > { %11141 = vrcp.f32 %v8490_v3  ;;  %v9789_v44 = vpop.f32.mrb[183].mxu0  ;;  %v11132_v47 = vpop.eup %11131 }
 0x642   : > { %11143 = vpow2.f32 %v9372_v7  ;;  %v9373_v46 = vmul.f32 -1.442695, %v8398_v48  ;;  %v8303_v14 = vadd.f32 %v9787_v24, %v13023_v31  ;;  %v9790_v32 = vadd.f32 %v9789_v44, %v9788_v9  ;;  %v13121_v31 = vld [vmem:[#allocation4 + $0xc0] sm:$0xff] }
 0x643   : > { %v11134_v57 = vpop.eup %11133 }
 0x644   : > { %v11136_v49 = vpop.eup %11135  ;;  %11145 = vpow2.f32 %v9373_v46  ;;  %v8375_v55 = vmul.f32 %v8303_v14, %v13045_v61  ;;  %v8304_v18 = vadd.f32 %v9790_v32, %v13026_v4  ;;  %v8571_v13 = vpack.c.bf16 %v11134_v57, %v11132_v47 }
 0x645   : > { %v8491_v40 = vadd.f32 1.0, %v11136_v49 }
 0x646   : > { %v11138_v19 = vpop.eup %11137  ;;  %v8399_v22 = vadd.f32 %v8375_v55, %v13051_v37  ;;  %v8376_v60 = vmul.f32 %v8304_v18, %v13045_v61  ;;  %v9791_v51 = vpop.f32.mrb[184].mxu0  ;;  %8593 = vmatpush1.bf16.msra.mxu0 %v8571_v13 }
 0x647   : > { %v8492_v27 = vadd.f32 1.0, %v11138_v19  ;;  %v9792_v50 = vpop.f32.mrb[185].mxu0  ;;  %8594 = vmatprep.subr.bf16.mxu0 %v13121_v31  ;;  %11147 = vrcp.f32 %v8491_v40 }
 0x648   : > { %v9374_v17 = vmul.f32 -1.442695, %v8399_v22  ;;  %v8400_v23 = vadd.f32 %v8376_v60, %v13051_v37  ;;  %v9793_v4 = vadd.f32 %v9792_v50, %v9791_v51  ;;  %v9794_v35 = vpop.f32.mrb[186].mxu0 }
 0x649   : > { %11149 = vrcp.f32 %v8492_v27  ;;  %v9795_v42 = vpop.f32.mrb[187].mxu0  ;;  %v11140_v29 = vpop.eup %11139 }
 0x64a   : > { %11151 = vpow2.f32 %v9374_v17  ;;  %v9375_v26 = vmul.f32 -1.442695, %v8400_v23  ;;  %v8305_v39 = vadd.f32 %v9793_v4, %v13029_v11  ;;  %v9796_v5 = vadd.f32 %v9795_v42, %v9794_v35  ;;  %v10779_v4 = vld [vmem:[%s13268_s4] sm:$0xff]   ;;  %v10782_v42 = vld [vmem:[%s13268_s4 + $0x18] sm:$0xff]  }
 0x64b   : > { %v11142_v6 = vpop.eup %11141  ;;  %v11278_v35 = vmov 1.0|1.0  }
 0x64c   : > { %v11144_v12 = vpop.eup %11143  ;;  %11153 = vpow2.f32 %v9375_v26  ;;  %v8377_v15 = vmul.f32 %v8305_v39, %v13045_v61  ;;  %v8306_v62 = vadd.f32 %v9796_v5, %v13032_v20  ;;  %v8572_v36 = vpack.c.bf16 %v11142_v6, %v11140_v29  ;;  %v10783_v29 = vld [vmem:[%s13268_s4 + $0x20] sm:$0xff]   ;;  %v10784_v26 = vld [vmem:[%s13268_s4 + $0x28] sm:$0xff]   ;;  %v10785_v39 = vld [vmem:[%s13268_s4 + $0x30] sm:$0xff]  }
 0x64d   : > { %v8493_v38 = vadd.f32 1.0, %v11144_v12  ;;  %v10786_v5 = vld [vmem:[%s13268_s4 + $0x38] sm:$0xff]   ;;  %v10787_v12 = vld [vmem:[%s13269_s5] sm:$0xff]  }
 0x64e   : > { %v11146_v30 = vpop.eup %11145  ;;  %v8401_v10 = vadd.f32 %v8377_v15, %v13051_v37  ;;  %v8378_v43 = vmul.f32 %v8306_v62, %v13045_v61  ;;  %v9797_v56 = vpop.f32.mrb[188].mxu0  ;;  %8595 = vmatpush1.bf16.msra.mxu0 %v8572_v36 }
 0x64f   : > { %v8494_v25 = vadd.f32 1.0, %v11146_v30  ;;  %v9798_v1 = vpop.f32.mrb[189].mxu0  ;;  %8596 = vmatprep.subr.bf16.mxu0 %v13121_v31  ;;  %11155 = vrcp.f32 %v8493_v38  ;;  %v10788_v30 = vld [vmem:[%s13269_s5 + $0x8] sm:$0xff]  }
 0x650   : > { %v9376_v11 = vmul.f32 -1.442695, %v8401_v10  ;;  %v8402_v63 = vadd.f32 %v8378_v43, %v13051_v37  ;;  %v9799_v2 = vadd.f32 %v9798_v1, %v9797_v56  ;;  %v9800_v41 = vpop.f32.mrb[190].mxu0  ;;  %v10789_v10 = vld [vmem:[%s13269_s5 + $0x10] sm:$0xff]   ;;  %v10790_v43 = vld [vmem:[%s13269_s5 + $0x18] sm:$0xff]   ;;  %v10791_v56 = vld [vmem:[%s13269_s5 + $0x20] sm:$0xff]  }
 0x651   : > { %11157 = vrcp.f32 %v8494_v25  ;;  %v9801_v20 = vpop.f32.mrb[191].mxu0  ;;  %v11148_v33 = vpop.eup %11147  ;;  %v10792_v25 = vld [vmem:[%s13269_s5 + $0x28] sm:$0xff]   ;;  %v10793_v1 = vld [vmem:[%s13269_s5 + $0x30] sm:$0xff]  }
 0x652   : > { %11159 = vpow2.f32 %v9376_v11  ;;  %v9377_v28 = vmul.f32 -1.442695, %v8402_v63  ;;  %v8307_v54 = vadd.f32 %v9799_v2, %v13035_v52  ;;  %v9802_v58 = vadd.f32 %v9801_v20, %v9800_v41  ;;  %v10794_v11 = vld [vmem:[%s13269_s5 + $0x38] sm:$0xff]   ;;  %v291_v63 = vld [vmem:[%s13270_s6 + $0x4] ss:$0 sm:$0xff] }
 0x653   : > { %v11150_v8 = vpop.eup %11149 }
 0x654   : > { %v11152_v53 = vpop.eup %11151  ;;  %11161 = vpow2.f32 %v9377_v28  ;;  %v8379_v59 = vmul.f32 %v8307_v54, %v13045_v61  ;;  %v8308_v34 = vadd.f32 %v9802_v58, %v13038_v21  ;;  %v8573_v3 = vpack.c.bf16 %v11150_v8, %v11148_v33 }
 0x655   : > { %v8495_v16 = vadd.f32 1.0, %v11152_v53 }
 0x656   : > { %v11154_v7 = vpop.eup %11153  ;;  %v8403_v48 = vadd.f32 %v8379_v59, %v13051_v37  ;;  %v8380_v24 = vmul.f32 %v8308_v34, %v13045_v61  ;;  %8597 = vmatpush1.bf16.msra.mxu0 %v8573_v3 }
 0x657   : > { %v8496_v9 = vadd.f32 1.0, %v11154_v7  ;;  %8598 = vmatprep.subr.bf16.mxu0 %v13121_v31  ;;  %11163 = vrcp.f32 %v8495_v16 }
 0x658   : > { %v9378_v52 = vmul.f32 -1.442695, %v8403_v48  ;;  %v8404_v44 = vadd.f32 %v8380_v24, %v13051_v37 }
 0x659   : > { %11165 = vrcp.f32 %v8496_v9  ;;  %v11156_v47 = vpop.eup %11155 }
 0x65a   : > { %11167 = vpow2.f32 %v9378_v52  ;;  %v9379_v46 = vmul.f32 -1.442695, %v8404_v44 }
 0x65b   : > { %v11158_v21 = vpop.eup %11157 }
 0x65c   : > { %v11160_v14 = vpop.eup %11159  ;;  %11169 = vpow2.f32 %v9379_v46  ;;  %v8574_v32 = vpack.c.bf16 %v11158_v21, %v11156_v47 }
 0x65d   : > { %v8497_v57 = vadd.f32 1.0, %v11160_v14 }
 0x65e   : > { %v11162_v49 = vpop.eup %11161  ;;  %8599 = vmatpush1.bf16.msra.mxu0 %v8574_v32 }
 0x65f   : > { %v8498_v61 = vadd.f32 1.0, %v11162_v49  ;;  %8600 = vmatprep.subr.bf16.mxu0 %v13121_v31  ;;  %11171 = vrcp.f32 %v8497_v57 }
 0x661   : > { %11173 = vrcp.f32 %v8498_v61  ;;  %v11164_v55 = vpop.eup %11163 }
 0x663   : > { %v11166_v18 = vpop.eup %11165 }
 0x664   : > { %v11168_v13 = vpop.eup %11167  ;;  %v8575_v37 = vpack.c.bf16 %v11166_v18, %v11164_v55 }
 0x665   : > { %v8499_v40 = vadd.f32 1.0, %v11168_v13 }
 0x666   : > { %v11170_v19 = vpop.eup %11169  ;;  %8601 = vmatpush1.bf16.msra.mxu0 %v8575_v37 }
 0x667   : > { %v8500_v22 = vadd.f32 1.0, %v11170_v19  ;;  %8602 = vmatprep.subr.bf16.mxu0 %v13121_v31  ;;  %11175 = vrcp.f32 %v8499_v40 }
 0x669   : > { %11177 = vrcp.f32 %v8500_v22  ;;  %v11172_v60 = vpop.eup %11171 }
 0x66b   : > { %v11174_v51 = vpop.eup %11173 }
 0x66c   : > { %v8576_v27 = vpack.c.bf16 %v11174_v51, %v11172_v60 }
 0x66e   : > { %8603 = vmatpush1.bf16.msra.mxu0 %v8576_v27 }
 0x66f   : > { %8604 = vmatprep.subr.bf16.mxu0 %v13121_v31  ;;  %v10780_v31 = vld [vmem:[%s13268_s4 + $0x8] sm:$0xff]  }
 0x671   : > { %v11176_v50 = vpop.eup %11175 }
 0x673   : > { %v11178_v17 = vpop.eup %11177 }
 0x674   : > { %v8577_v23 = vpack.c.bf16 %v11178_v17, %v11176_v50 }
 0x676   : > { %8605 = vmatpush1.bf16.msra.mxu0 %v8577_v23 }
 0x677   : > { %9849 = vmatprep.subr.bf16.mxu0 %v11270_v0 }
 0x679   : > { %9384 = vmatmul.mubr.msk.bf16.vlgmr.msra.gmra.mrb[192].mxu0 %vm9383_vm11, %v11278_v35 }
 0x67a   : > { %9850 = vmatpush3.bf16.msra.mxu0 %v10779_v4  ;;  %9865 = vmatprep.mubr.msk.bf16.mxu0 %vm11279_vm1, %v11270_v0 }
 0x67b   : > { %9851 = vmatprep.subr.bf16.mxu0 %v11270_v0 }
 0x67e   : > { %9852 = vmatpush3.bf16.msra.mxu0 %v10780_v31 }
 0x67f   : > { %9853 = vmatprep.subr.bf16.mxu0 %v11270_v0 }
 0x682   : > { %9854 = vmatpush3.bf16.msra.mxu0 %v10781_v45 }
 0x683   : > { %9855 = vmatprep.subr.bf16.mxu0 %v11270_v0 }
 0x686   : > { %9856 = vmatpush3.bf16.msra.mxu0 %v10782_v42 }
 0x687   : > { %9857 = vmatprep.subr.bf16.mxu0 %v11270_v0 }
 0x68a   : > { %9858 = vmatpush3.bf16.msra.mxu0 %v10783_v29 }
 0x68b   : > { %9859 = vmatprep.subr.bf16.mxu0 %v11270_v0 }
 0x68e   : > { %9860 = vmatpush3.bf16.msra.mxu0 %v10784_v26 }
 0x68f   : > { %9861 = vmatprep.subr.bf16.mxu0 %v11270_v0 }
 0x692   : > { %9862 = vmatpush3.bf16.msra.mxu0 %v10785_v39 }
 0x693   : > { %9863 = vmatprep.subr.bf16.mxu0 %v11270_v0 }
 0x696   : > { %9864 = vmatpush3.bf16.msra.mxu0 %v10786_v5 }
 0x697   : > { %9869 = vmatprep.subr.bf16.mxu0 %v11270_v0 }
 0x74c   : > { %v8616_v6 = vpop.f32.mrb[192].mxu0 }
 0x74d   : > { %v8622_v15 = vpack.c.bf16 %v8616_v6, %v8616_v6  ;;  %v8618_v62 = vpop.f32.mrb[193].mxu0 }
 0x74e   : > { %v8619_v36 = vpop.f32.mrb[194].mxu0 }
 0x74f   : > { %v8620_v38 = vpop.f32.mrb[195].mxu0  ;;  %9866 = vmatmul.mubr.bf16.vlgmr.msra.gmra.mrb[196].mxu0 %v8622_v15 }
 0x750   : > { %9870 = vmatpush3.bf16.msra.mxu0 %v10787_v12  ;;  %9885 = vmatprep.mubr.msk.bf16.mxu0 %vm11279_vm1, %v11270_v0 }
 0x751   : > { %9871 = vmatprep.subr.bf16.mxu0 %v11270_v0 }
 0x754   : > { %9872 = vmatpush3.bf16.msra.mxu0 %v10788_v30 }
 0x755   : > { %9873 = vmatprep.subr.bf16.mxu0 %v11270_v0 }
 0x758   : > { %9874 = vmatpush3.bf16.msra.mxu0 %v10789_v10 }
 0x759   : > { %9875 = vmatprep.subr.bf16.mxu0 %v11270_v0 }
 0x75c   : > { %9876 = vmatpush3.bf16.msra.mxu0 %v10790_v43 }
 0x75d   : > { %9877 = vmatprep.subr.bf16.mxu0 %v11270_v0 }
 0x760   : > { %9878 = vmatpush3.bf16.msra.mxu0 %v10791_v56 }
 0x761   : > { %9879 = vmatprep.subr.bf16.mxu0 %v11270_v0 }
 0x764   : > { %9880 = vmatpush3.bf16.msra.mxu0 %v10792_v25 }
 0x765   : > { %9881 = vmatprep.subr.bf16.mxu0 %v11270_v0 }
 0x768   : > { %9882 = vmatpush3.bf16.msra.mxu0 %v10793_v1 }
 0x769   : > { %9883 = vmatprep.subr.bf16.mxu0 %v11270_v0  ;;  %v292_v0 = vld [vmem:[%s13270_s6 + $0xc] ss:$0 sm:$0xff] }
 0x76c   : > { %9884 = vmatpush3.bf16.msra.mxu0 %v10794_v11 }
 0x822   : > { %v8721_v2 = vpop.f32.mrb[196].mxu0 }
 0x823   : > { %v8722_v41 = vadd.f32 %v8721_v2, %v291_v63  ;;  %v9867_v20 = vpop.f32.mrb[197].mxu0 }
 0x824   : > { %v8724_v33 = vpop.f32.mrb[198].mxu0 }
 0x825   : > { %v8727_v28 = vpack.c.bf16 %v8722_v41, %v8722_v41  ;;  %v9868_v54 = vpop.f32.mrb[199].mxu0 }
 0x827   : > { %9886 = vmatmul.mubr.bf16.vlgmr.msra.gmra.mrb[200].mxu0 %v8727_v28 }
 0x8fa   : > { %v8826_v58 = vpop.f32.mrb[200].mxu0 }
 0x8fb   : > { %v8827_v8 = vadd.f32 %v8826_v58, %v292_v0  ;;  %v9887_v53 = vpop.f32.mrb[201].mxu0 }
 0x8fc   : > { %v8829_v59 = vpop.f32.mrb[202].mxu0 }
 0x8fd   : > { %8832 = vst [vmem:[%s274_s14] sm:$0xff] %v8827_v8  ;;  %v9888_v34 = vpop.f32.mrb[203].mxu0 }
 0x8fe   : > { %11219 = shalt.err (!%p11216_p3)
}
 0x8ff   : > { %s11220_s23 = scalar_lea.hbm %s13222_s18, 128  ;;  %s11224_s9 = scalar_lea.hbm %s13271_s7, 256 }
 0x900   : > { %p11221_p4 = scmp.ne.s32.totalorder %s13222_s18, %s11220_s23  ;;  %p11225_p9 = scmp.lt.u32.totalorder %s13222_s18, %s13271_s7 }
 0x901   : > { %p11226_p10 = scmp.lt.u32.totalorder %s11224_s9, %s11220_s23  ;;  %p11228_p12 = scmp.lt.u32.totalorder %s11220_s23, %s13222_s18 }
 0x902   : > { %p11222_p7 = pnand %p11221_p4, %p11359_p5 }
 0x903   : > { %p11227_p11 = por %p11226_p10, %p11225_p9 }
 0x904   : > { %p11223_p8 = pneg %p11222_p7 }
 0x905   : > { %p11229_p13 = por %p11228_p12, %p11227_p11 }
 0x907   : > { %p11230_p0 = pnand %p11229_p13, %p11223_p8 }
 0x909   : > { %11233 = shalt.err (!%p11230_p0)
}
 0x90a   : > { %10098 = dma.vmem_to_hbm [thread:$0]  (%p11359_p5), %s13224_s15, 128, %s13222_s18, %s8834_s19  }
 0x90b PF: > { %p10104_p1 = scmp.ge.s32.totalorder %s11268_s27, 2  ;;  %s8859_s16 = sand.u32 1, %s11256_s24  }
 0x90c   : > { %s8860_s17 = scalar_lea.sflag [#allocation7], %s8859_s16 }
 0x90d   : > { %p10101_p2 = pnand %p10104_p1, %p11363_p6 }
 0x90f   : > { %11251 = dma.done.wait (!%p10101_p2), %s8860_s17, 128  }
 0x910   : > { %11253 = vsyncadd (!%p10101_p2), %s8860_s17, 4294967168  ;;  %p17_p3 = scmp.ge.s32.totalorder %s11346_s30, 4   ;;  %s13277_s24 = smov %s11260_s25 }
 0x911   : > { %s13278_s25 = smov %s11264_s26  ;;  %s13279_s26 = smov %s11357_s10 }
 0x912   : > { %s13280_s27 = smov %s11346_s30  ;;  %19 = sbr.rel (!%p17_p3) target bundleno = 3 (0x3), region = 92 }
 0x919   :  { %8865 = vsyncpa [#allocation7], 1 }
 0x91a   :  { %8867 = vsyncpa [#allocation7 + $0x1], 1 }

</bundles_post_ra>
